<compile_context>
chip_gen: v5e
topology: v5e:2x2
jax: 0.10.0
libtpu: 0.0.40
codegen_flags: <defaults>
</compile_context>

<pallas_src>
import functools
import math

import jax
import jax.numpy as jnp
from jax.experimental import pallas as pl
from jax.experimental.pallas import tpu as pltpu


def _layer_norm(x, gamma, beta, eps=1e-5):
    mu = jnp.mean(x, axis=-1, keepdims=True)
    var = jnp.mean((x - mu) ** 2, axis=-1, keepdims=True)
    return (x - mu) * jax.lax.rsqrt(var + eps) * gamma + beta


def _quick_gelu(x):
    return x * jax.nn.sigmoid(1.702 * x)


def resblock_kernel(
    x_ref, mask_ref,
    ln1_g_ref, ln1_b_ref,
    in_wt_ref, in_b_ref,      # (D, 3D) bf16 (1/sqrt(hd) folded into q cols), (1, 3D) f32
    out_wt_ref, out_b_ref,    # (H, hd, D) bf16, (1, D) f32
    ln2_g_ref, ln2_b_ref,
    fc_wt_ref, fc_b_ref,      # (D, 4D) bf16, (1, 4D) f32
    proj_wt_ref, proj_b_ref,  # (4D, D) bf16, (1, D) f32
    o_ref,
    *, n_head: int,
):
    # One grid step == B_T batch elements.
    x = x_ref[...].astype(jnp.float32)        # (B_T, L, D) residual stream, f32
    mask = mask_ref[...].astype(jnp.float32)  # (B_T, L, L) additive mask
    bt, L, D = x.shape
    hd = D // n_head
    M = bt * L

    x2 = x.reshape(M, D)                      # flatten batch*seq -> MXU M rows

    # ---- ln_1 (f32) ----
    h = _layer_norm(x2, ln1_g_ref[0], ln1_b_ref[0])

    # ---- fused QKV projection: bf16 MXU, f32 accumulate (scale pre-folded) ----
    qkv = jnp.dot(h.astype(jnp.bfloat16), in_wt_ref[...],
                  preferred_element_type=jnp.float32) + in_b_ref[0]   # (M, 3D)

    # head split via static lane slices + leading-axis stack (no vector transpose)
    def split_heads(off):
        cols = [qkv[:, off + hh * hd: off + (hh + 1) * hd]
                .astype(jnp.bfloat16).reshape(bt, L, hd)
                for hh in range(n_head)]
        return jnp.stack(cols, axis=0).reshape(n_head * bt, L, hd)   # n = h*bt + b

    q3 = split_heads(0)
    k3 = split_heads(D)
    v3 = split_heads(2 * D)

    # batched scores over all (head, batch) pairs, softmax in f32
    s = jnp.einsum("nqd,nkd->nqk", q3, k3,
                   preferred_element_type=jnp.float32)                # (H*B_T, L, L)
    s = (s.reshape(n_head, bt, L, L) + mask[None, :, :, :]).reshape(n_head * bt, L, L)
    s = s - jnp.max(s, axis=-1, keepdims=True)
    # TODO(synk): on v6e/v7x the exp/sigmoid could run on bf16 EUP; kept f32 for accuracy.
    p = jnp.exp(s)
    denom = jnp.sum(p, axis=-1, keepdims=True)

    # deferred normalization: PV first, then 1/denom on the EUP
    o_un = jnp.einsum("nqk,nkd->nqd", p.astype(jnp.bfloat16), v3,
                      preferred_element_type=jnp.float32)             # (H*B_T, L, hd)
    o_h = (o_un * pl.reciprocal(denom, approx=True)).astype(jnp.bfloat16)
    o_heads = o_h.reshape(n_head, M, hd)      # per-head (M, hd) slabs, no relayout

    # per-head output projection with host-reshaped (H, hd, D) weight (all MXU)
    attn = jnp.dot(o_heads[0], out_wt_ref[0], preferred_element_type=jnp.float32)
    for hh in range(1, n_head):
        attn = attn + jnp.dot(o_heads[hh], out_wt_ref[hh],
                              preferred_element_type=jnp.float32)
    attn = attn + out_b_ref[0]

    x2 = x2 + attn

    # ---- ln_2 + MLP (c_fc -> QuickGELU -> c_proj) ----
    h2 = _layer_norm(x2, ln2_g_ref[0], ln2_b_ref[0])
    ff = jnp.dot(h2.astype(jnp.bfloat16), fc_wt_ref[...],
                 preferred_element_type=jnp.float32) + fc_b_ref[0]
    ff = _quick_gelu(ff)
    ff = jnp.dot(ff.astype(jnp.bfloat16), proj_wt_ref[...],
                 preferred_element_type=jnp.float32) + proj_b_ref[0]

    o_ref[...] = (x2 + ff).reshape(bt, L, D).astype(o_ref.dtype)


def _vmem_limit_bytes():
    """Per-generation VMEM limit with headroom (v5e/v6e: ~96 MiB, v7x: ~48 MiB)."""
    cap = 64 * 1024 * 1024
    try:
        info = pltpu.get_tpu_info()
        cap = int(getattr(info, "vmem_capacity_bytes", cap))
    except Exception:
        pass
    return int(min(max(cap - 16 * 1024 * 1024, 32 * 1024 * 1024), 96 * 1024 * 1024))


def _pick_batch_tile(N, L, n_head, target_rows=512, score_budget_bytes=8 * 1024 * 1024):
    """Largest divisor of N with B_T*L <= target_rows and bounded (H*B_T,L,L) f32 temp."""
    by_rows = max(1, target_rows // max(1, L))
    by_scores = max(1, score_budget_bytes // max(1, n_head * L * L * 4))
    cap = max(1, min(N, by_rows, by_scores))
    for bt in range(cap, 0, -1):
        if N % bt == 0:
            return bt
    return 1


def residual_attention_block(x_nld, mask_nll, p, n_head):
    """x_nld: (N, L, D) f32, mask_nll: (N, L, L) bf16/f32 additive mask, p: prepped params."""
    N, L, D = x_nld.shape
    bt = _pick_batch_tile(N, L, n_head)

    weights = [
        p["ln1_g"], p["ln1_b"],
        p["in_wt"], p["in_b"],
        p["out_wt"], p["out_b"],
        p["ln2_g"], p["ln2_b"],
        p["fc_wt"], p["fc_b"],
        p["proj_wt"], p["proj_b"],
    ]

    def build_and_call(single_buffer_weights):
        def wspec(w):
            kwargs = {}
            if single_buffer_weights:
                # constant index_map -> never re-fetched; single-buffer to halve VMEM
                kwargs["pipeline_mode"] = pl.Buffered(1)
            return pl.BlockSpec(w.shape, (lambda b, _nd=w.ndim: (0,) * _nd), **kwargs)

        return pl.pallas_call(
            functools.partial(resblock_kernel, n_head=n_head),
            out_shape=jax.ShapeDtypeStruct((N, L, D), jnp.float32),
            grid_spec=pltpu.PrefetchScalarGridSpec(
                num_scalar_prefetch=0,
                grid=(N // bt,),
                in_specs=[
                    pl.BlockSpec((bt, L, D), lambda b: (b, 0, 0)),   # x
                    pl.BlockSpec((bt, L, L), lambda b: (b, 0, 0)),   # mask
                ] + [wspec(w) for w in weights],
                out_specs=pl.BlockSpec((bt, L, D), lambda b: (b, 0, 0)),
            ),
            # TODO(synk): on v7x use pltpu.CORE_PARALLEL on the batch axis to split
            # across the 2 TensorCores; plain "parallel" is kept for portability.
            compiler_params=pltpu.CompilerParams(
                dimension_semantics=("parallel",),
                vmem_limit_bytes=_vmem_limit_bytes()),
        )(x_nld, mask_nll, *weights)

    try:
        return build_and_call(True)
    except Exception:
        # Fallback to default (double) buffering if Buffered(1) is unsupported.
        return build_and_call(False)


def prepare_params(params, n_head):
    """One-time host prep: pre-transpose for `act @ W`, fold 1/sqrt(hd) into q cols,
    reshape out_w to (H, hd, D), cast matmul weights to bf16."""
    prepped = []
    for p in params:
        D = p["in_w"].shape[1]
        hd = D // n_head
        scale = 1.0 / math.sqrt(hd)
        col_scale = jnp.concatenate([jnp.full((D,), scale, jnp.float32),
                                     jnp.ones((2 * D,), jnp.float32)])
        in_wt = (p["in_w"].T.astype(jnp.float32) * col_scale[None, :]).astype(jnp.bfloat16)
        in_b = p["in_b"].astype(jnp.float32) * col_scale[None, :]
        out_wt = p["out_w"].T.astype(jnp.float32).reshape(n_head, hd, D).astype(jnp.bfloat16)
        prepped.append({
            "ln1_g": p["ln1_g"].astype(jnp.float32),
            "ln1_b": p["ln1_b"].astype(jnp.float32),
            "in_wt": in_wt,                                  # (D, 3D) bf16, q-scaled
            "in_b": in_b,                                    # (1, 3D) f32, q-scaled
            "out_wt": out_wt,                                # (H, hd, D) bf16
            "out_b": p["out_b"].astype(jnp.float32),
            "ln2_g": p["ln2_g"].astype(jnp.float32),
            "ln2_b": p["ln2_b"].astype(jnp.float32),
            "fc_wt": p["fc_w"].T.astype(jnp.bfloat16),       # (D, 4D)
            "fc_b": p["fc_b"].astype(jnp.float32),
            "proj_wt": p["proj_w"].T.astype(jnp.bfloat16),   # (4D, D)
            "proj_b": p["proj_b"].astype(jnp.float32),
        })
    return prepped


def transformer_forward(x_lnd, attn_mask, prepped_params, n_head):
    """Matches Transformer.forward: x (L, N, D), attn_mask (N, L, L) additive."""
    x = jnp.transpose(x_lnd, (1, 0, 2)).astype(jnp.float32)   # (N, L, D), once per stack
    mask = attn_mask.astype(jnp.bfloat16)                     # halve mask DMA traffic
    # TODO(synk): fuse the layer loop into one pallas_call (grid=(batch_tiles, layers))
    # when per-layer activation HBM traffic dominates weight bytes.
    for p in prepped_params:
        x = residual_attention_block(x, mask, p, n_head)
    return jnp.transpose(x, (1, 0, 2))                         # back to (L, N, D)


# ------------------------- pure-JAX reference (f32, torch-layout params) -----
def _ref_block(x, mask, p, n_head):
    N, L, D = x.shape
    hd = D // n_head

    def ln(v, g, b):
        mu = jnp.mean(v, -1, keepdims=True)
        var = jnp.mean((v - mu) ** 2, -1, keepdims=True)
        return (v - mu) * jax.lax.rsqrt(var + 1e-5) * g[0] + b[0]

    h = ln(x, p["ln1_g"], p["ln1_b"])
    qkv = h @ p["in_w"].T + p["in_b"][0]
    q, k, v = jnp.split(qkv, 3, axis=-1)
    q = q.reshape(N, L, n_head, hd).transpose(0, 2, 1, 3) / (hd ** 0.5)
    k = k.reshape(N, L, n_head, hd).transpose(0, 2, 1, 3)
    v = v.reshape(N, L, n_head, hd).transpose(0, 2, 1, 3)
    s = jnp.einsum("bhqd,bhkd->bhqk", q, k) + mask[:, None]
    a = jax.nn.softmax(s, axis=-1)
    o = jnp.einsum("bhqk,bhkd->bhqd", a, v).transpose(0, 2, 1, 3).reshape(N, L, D)
    x = x + (o @ p["out_w"].T + p["out_b"][0])
    h2 = ln(x, p["ln2_g"], p["ln2_b"])
    ff = h2 @ p["fc_w"].T + p["fc_b"][0]
    ff = ff * jax.nn.sigmoid(1.702 * ff)
    ff = ff @ p["proj_w"].T + p["proj_b"][0]
    return x + ff


def transformer_ref(x_lnd, attn_mask, params, n_head):
    x = jnp.transpose(x_lnd, (1, 0, 2)).astype(jnp.float32)
    for p in params:
        x = _ref_block(x, attn_mask.astype(jnp.float32), p, n_head)
    return jnp.transpose(x, (1, 0, 2))


# ------------------------- parameter init (torch layout) -------------------------
def init_params(key, width, layers):
    params = []
    for _ in range(layers):
        keys = jax.random.split(key, 7)
        key = keys[0]
        p = {
            "ln1_g": jnp.ones((1, width), jnp.float32),
            "ln1_b": jnp.zeros((1, width), jnp.float32),
            "in_w": 0.02 * jax.random.normal(keys[1], (3 * width, width), jnp.float32),
            "in_b": jnp.zeros((1, 3 * width), jnp.float32),
            "out_w": 0.02 * jax.random.normal(keys[2], (width, width), jnp.float32),
            "out_b": jnp.zeros((1, width), jnp.float32),
            "ln2_g": jnp.ones((1, width), jnp.float32),
            "ln2_b": jnp.zeros((1, width), jnp.float32),
            "fc_w": 0.02 * jax.random.normal(keys[3], (4 * width, width), jnp.float32),
            "fc_b": jnp.zeros((1, 4 * width), jnp.float32),
            "proj_w": 0.02 * jax.random.normal(keys[4], (width, 4 * width), jnp.float32),
            "proj_b": jnp.zeros((1, width), jnp.float32),
        }
        params.append(p)
    return params


if __name__ == "__main__":
    # Small but lane-friendly sizes: seq=8, batch=2, width=128 (one lane tile),
    # 4 heads (head_dim=32), 2 layers.
    L, N, D, H, LAYERS = 8, 2, 128, 4, 2

    key = jax.random.PRNGKey(0)
    kx, kp = jax.random.split(key)
    x = jax.random.normal(kx, (L, N, D), jnp.float32)          # (seq, batch, width)

    # Additive attention mask (N, L, L): causal, -1e9 above the diagonal
    # (module semantics: per-batch mask, repeat_interleave'd over heads).
    causal = jnp.triu(jnp.full((L, L), -1e9, jnp.float32), k=1)
    attn_mask = jnp.broadcast_to(causal, (N, L, L))

    params = init_params(kp, D, LAYERS)
    prepped = prepare_params(params, H)   # one-time: transpose + scale-fold + bf16 cast

    out = jax.block_until_ready(transformer_forward(x, attn_mask, prepped, H))
    ref = jax.block_until_ready(transformer_ref(x, attn_mask, params, H))

    assert out.shape == (L, N, D)
    # bf16 matmul inputs + approx reciprocal => looser tolerance vs f32 reference.
    max_err = float(jnp.max(jnp.abs(out - ref)))
    assert jnp.allclose(out, ref, atol=2e-2, rtol=2e-2), f"mismatch vs ref, max_err={max_err}"

    print("KERNEL_OK")
</pallas_src>

<mosaic_0001>
module attributes {stable_mosaic.version = 11 : i64} {
  func.func @resblock_kernel(%arg0: i32, %arg1: memref<2x8x128xf32, #tpu.memory_space<vmem>>, %arg2: memref<2x8x8xbf16, #tpu.memory_space<vmem>>, %arg3: memref<1x128xf32, #tpu.memory_space<vmem>>, %arg4: memref<1x128xf32, #tpu.memory_space<vmem>>, %arg5: memref<128x384xbf16, #tpu.memory_space<vmem>>, %arg6: memref<1x384xf32, #tpu.memory_space<vmem>>, %arg7: memref<4x32x128xbf16, #tpu.memory_space<vmem>>, %arg8: memref<1x128xf32, #tpu.memory_space<vmem>>, %arg9: memref<1x128xf32, #tpu.memory_space<vmem>>, %arg10: memref<1x128xf32, #tpu.memory_space<vmem>>, %arg11: memref<128x512xbf16, #tpu.memory_space<vmem>>, %arg12: memref<1x512xf32, #tpu.memory_space<vmem>>, %arg13: memref<512x128xbf16, #tpu.memory_space<vmem>>, %arg14: memref<1x128xf32, #tpu.memory_space<vmem>>, %arg15: memref<2x8x128xf32, #tpu.memory_space<vmem>>) attributes {dimension_semantics = [#tpu.dimension_semantics<parallel>], iteration_bounds = array<i64: 1>, scalar_prefetch = 0 : i64, scratch_operands = 0 : i64, tpu.core_type = #tpu.core_type<tc>, window_params = [{transform_indices = @transform_0, window_bounds = array<i64: 2, 8, 128>}, {transform_indices = @transform_1, window_bounds = array<i64: 2, 8, 8>}, {pipeline_mode = #tpu.pipeline_mode<synchronous>, transform_indices = @transform_2, window_bounds = array<i64: 1, 128>}, {pipeline_mode = #tpu.pipeline_mode<synchronous>, transform_indices = @transform_3, window_bounds = array<i64: 1, 128>}, {pipeline_mode = #tpu.pipeline_mode<synchronous>, transform_indices = @transform_4, window_bounds = array<i64: 128, 384>}, {pipeline_mode = #tpu.pipeline_mode<synchronous>, transform_indices = @transform_5, window_bounds = array<i64: 1, 384>}, {pipeline_mode = #tpu.pipeline_mode<synchronous>, transform_indices = @transform_6, window_bounds = array<i64: 4, 32, 128>}, {pipeline_mode = #tpu.pipeline_mode<synchronous>, transform_indices = @transform_7, window_bounds = array<i64: 1, 128>}, {pipeline_mode = #tpu.pipeline_mode<synchronous>, transform_indices = @transform_8, window_bounds = array<i64: 1, 128>}, {pipeline_mode = #tpu.pipeline_mode<synchronous>, transform_indices = @transform_9, window_bounds = array<i64: 1, 128>}, {pipeline_mode = #tpu.pipeline_mode<synchronous>, transform_indices = @transform_10, window_bounds = array<i64: 128, 512>}, {pipeline_mode = #tpu.pipeline_mode<synchronous>, transform_indices = @transform_11, window_bounds = array<i64: 1, 512>}, {pipeline_mode = #tpu.pipeline_mode<synchronous>, transform_indices = @transform_12, window_bounds = array<i64: 512, 128>}, {pipeline_mode = #tpu.pipeline_mode<synchronous>, transform_indices = @transform_13, window_bounds = array<i64: 1, 128>}, {transform_indices = @transform_14, window_bounds = array<i64: 2, 8, 128>}]} {
    %c0 = arith.constant 0 : index
    %c0_0 = arith.constant 0 : index
    %c0_1 = arith.constant 0 : index
    %0 = vector.load %arg1[%c0, %c0_0, %c0_1] : memref<2x8x128xf32, #tpu.memory_space<vmem>>, vector<2x8x128xf32>
    %c0_2 = arith.constant 0 : index
    %c0_3 = arith.constant 0 : index
    %c0_4 = arith.constant 0 : index
    %1 = vector.load %arg2[%c0_2, %c0_3, %c0_4] : memref<2x8x8xbf16, #tpu.memory_space<vmem>>, vector<2x8x8xbf16>
    %2 = arith.extf %1 : vector<2x8x8xbf16> to vector<2x8x8xf32>
    %3 = vector.shape_cast %0 : vector<2x8x128xf32> to vector<16x128xf32>
    %c0_5 = arith.constant 0 : index
    %c0_6 = arith.constant 0 : index
    %4 = vector.load %arg3[%c0_5, %c0_6] : memref<1x128xf32, #tpu.memory_space<vmem>>, vector<1x128xf32>
    %5 = vector.shape_cast %4 : vector<1x128xf32> to vector<128xf32>
    %c0_7 = arith.constant 0 : index
    %c0_8 = arith.constant 0 : index
    %6 = vector.load %arg4[%c0_7, %c0_8] : memref<1x128xf32, #tpu.memory_space<vmem>>, vector<1x128xf32>
    %7 = vector.shape_cast %6 : vector<1x128xf32> to vector<128xf32>
    %cst = arith.constant dense<0.000000e+00> : vector<16xf32>
    %8 = vector.multi_reduction <add>, %3, %cst [1] : vector<16x128xf32> to vector<16xf32>
    %9 = vector.shape_cast %8 : vector<16xf32> to vector<16x1xf32>
    %cst_9 = arith.constant 1.280000e+02 : f32
    %10 = vector.broadcast %cst_9 : f32 to vector<16x1xf32>
    %11 = arith.divf %9, %10 : vector<16x1xf32>
    %12 = vector.broadcast %11 : vector<16x1xf32> to vector<16x128xf32>
    %13 = arith.subf %3, %12 : vector<16x128xf32>
    %14 = arith.mulf %13, %13 : vector<16x128xf32>
    %cst_10 = arith.constant dense<0.000000e+00> : vector<16xf32>
    %15 = vector.multi_reduction <add>, %14, %cst_10 [1] : vector<16x128xf32> to vector<16xf32>
    %16 = vector.shape_cast %15 : vector<16xf32> to vector<16x1xf32>
    %cst_11 = arith.constant 1.280000e+02 : f32
    %17 = vector.broadcast %cst_11 : f32 to vector<16x1xf32>
    %18 = arith.divf %16, %17 : vector<16x1xf32>
    %19 = vector.broadcast %11 : vector<16x1xf32> to vector<16x128xf32>
    %20 = arith.subf %3, %19 : vector<16x128xf32>
    %cst_12 = arith.constant 9.99999974E-6 : f32
    %21 = vector.broadcast %cst_12 : f32 to vector<16x1xf32>
    %22 = arith.addf %18, %21 : vector<16x1xf32>
    %23 = math.rsqrt %22 : vector<16x1xf32>
    %24 = vector.broadcast %23 : vector<16x1xf32> to vector<16x128xf32>
    %25 = arith.mulf %20, %24 : vector<16x128xf32>
    %26 = vector.shape_cast %5 : vector<128xf32> to vector<1x128xf32>
    %27 = vector.broadcast %26 : vector<1x128xf32> to vector<16x128xf32>
    %28 = arith.mulf %25, %27 : vector<16x128xf32>
    %29 = vector.shape_cast %7 : vector<128xf32> to vector<1x128xf32>
    %30 = vector.broadcast %29 : vector<1x128xf32> to vector<16x128xf32>
    %31 = arith.addf %28, %30 : vector<16x128xf32>
    %32 = arith.truncf %31 : vector<16x128xf32> to vector<16x128xbf16>
    %c0_13 = arith.constant 0 : index
    %c0_14 = arith.constant 0 : index
    %33 = vector.load %arg5[%c0_13, %c0_14] : memref<128x384xbf16, #tpu.memory_space<vmem>>, vector<128x384xbf16>
    %cst_15 = arith.constant dense<0.000000e+00> : vector<16x384xf32>
    %34 = tpu.matmul %32, %33, %cst_15 {dimension_numbers = #tpu.dot_dimension_numbers<[1], [0], [0], [1], [0, 0, 1, 1], [], []>} : vector<16x128xbf16>, vector<128x384xbf16>, vector<16x384xf32> -> vector<16x384xf32>
    %c0_16 = arith.constant 0 : index
    %c0_17 = arith.constant 0 : index
    %35 = vector.load %arg6[%c0_16, %c0_17] : memref<1x384xf32, #tpu.memory_space<vmem>>, vector<1x384xf32>
    %36 = vector.shape_cast %35 : vector<1x384xf32> to vector<384xf32>
    %37 = vector.shape_cast %36 : vector<384xf32> to vector<1x384xf32>
    %38 = vector.broadcast %37 : vector<1x384xf32> to vector<16x384xf32>
    %39 = arith.addf %34, %38 : vector<16x384xf32>
    %40 = vector.extract_strided_slice %39 {offsets = [0, 0], sizes = [16, 32], strides = [1, 1]} : vector<16x384xf32> to vector<16x32xf32>
    %41 = arith.truncf %40 : vector<16x32xf32> to vector<16x32xbf16>
    %42 = vector.shape_cast %41 : vector<16x32xbf16> to vector<2x8x32xbf16>
    %43 = vector.extract_strided_slice %39 {offsets = [0, 32], sizes = [16, 32], strides = [1, 1]} : vector<16x384xf32> to vector<16x32xf32>
    %44 = arith.truncf %43 : vector<16x32xf32> to vector<16x32xbf16>
    %45 = vector.shape_cast %44 : vector<16x32xbf16> to vector<2x8x32xbf16>
    %46 = vector.extract_strided_slice %39 {offsets = [0, 64], sizes = [16, 32], strides = [1, 1]} : vector<16x384xf32> to vector<16x32xf32>
    %47 = arith.truncf %46 : vector<16x32xf32> to vector<16x32xbf16>
    %48 = vector.shape_cast %47 : vector<16x32xbf16> to vector<2x8x32xbf16>
    %49 = vector.extract_strided_slice %39 {offsets = [0, 96], sizes = [16, 32], strides = [1, 1]} : vector<16x384xf32> to vector<16x32xf32>
    %50 = arith.truncf %49 : vector<16x32xf32> to vector<16x32xbf16>
    %51 = vector.shape_cast %50 : vector<16x32xbf16> to vector<2x8x32xbf16>
    %52 = vector.shape_cast %42 : vector<2x8x32xbf16> to vector<1x2x8x32xbf16>
    %53 = vector.shape_cast %45 : vector<2x8x32xbf16> to vector<1x2x8x32xbf16>
    %54 = vector.shape_cast %48 : vector<2x8x32xbf16> to vector<1x2x8x32xbf16>
    %55 = vector.shape_cast %51 : vector<2x8x32xbf16> to vector<1x2x8x32xbf16>
    %56 = tpu.concatenate %52, %53, %54, %55 in 0 : vector<1x2x8x32xbf16>, vector<1x2x8x32xbf16>, vector<1x2x8x32xbf16>, vector<1x2x8x32xbf16> -> vector<4x2x8x32xbf16>
    %57 = vector.shape_cast %56 : vector<4x2x8x32xbf16> to vector<8x8x32xbf16>
    %58 = vector.extract_strided_slice %39 {offsets = [0, 128], sizes = [16, 32], strides = [1, 1]} : vector<16x384xf32> to vector<16x32xf32>
    %59 = arith.truncf %58 : vector<16x32xf32> to vector<16x32xbf16>
    %60 = vector.shape_cast %59 : vector<16x32xbf16> to vector<2x8x32xbf16>
    %61 = vector.extract_strided_slice %39 {offsets = [0, 160], sizes = [16, 32], strides = [1, 1]} : vector<16x384xf32> to vector<16x32xf32>
    %62 = arith.truncf %61 : vector<16x32xf32> to vector<16x32xbf16>
    %63 = vector.shape_cast %62 : vector<16x32xbf16> to vector<2x8x32xbf16>
    %64 = vector.extract_strided_slice %39 {offsets = [0, 192], sizes = [16, 32], strides = [1, 1]} : vector<16x384xf32> to vector<16x32xf32>
    %65 = arith.truncf %64 : vector<16x32xf32> to vector<16x32xbf16>
    %66 = vector.shape_cast %65 : vector<16x32xbf16> to vector<2x8x32xbf16>
    %67 = vector.extract_strided_slice %39 {offsets = [0, 224], sizes = [16, 32], strides = [1, 1]} : vector<16x384xf32> to vector<16x32xf32>
    %68 = arith.truncf %67 : vector<16x32xf32> to vector<16x32xbf16>
    %69 = vector.shape_cast %68 : vector<16x32xbf16> to vector<2x8x32xbf16>
    %70 = vector.shape_cast %60 : vector<2x8x32xbf16> to vector<1x2x8x32xbf16>
    %71 = vector.shape_cast %63 : vector<2x8x32xbf16> to vector<1x2x8x32xbf16>
    %72 = vector.shape_cast %66 : vector<2x8x32xbf16> to vector<1x2x8x32xbf16>
    %73 = vector.shape_cast %69 : vector<2x8x32xbf16> to vector<1x2x8x32xbf16>
    %74 = tpu.concatenate %70, %71, %72, %73 in 0 : vector<1x2x8x32xbf16>, vector<1x2x8x32xbf16>, vector<1x2x8x32xbf16>, vector<1x2x8x32xbf16> -> vector<4x2x8x32xbf16>
    %75 = vector.shape_cast %74 : vector<4x2x8x32xbf16> to vector<8x8x32xbf16>
    %76 = vector.extract_strided_slice %39 {offsets = [0, 256], sizes = [16, 32], strides = [1, 1]} : vector<16x384xf32> to vector<16x32xf32>
    %77 = arith.truncf %76 : vector<16x32xf32> to vector<16x32xbf16>
    %78 = vector.shape_cast %77 : vector<16x32xbf16> to vector<2x8x32xbf16>
    %79 = vector.extract_strided_slice %39 {offsets = [0, 288], sizes = [16, 32], strides = [1, 1]} : vector<16x384xf32> to vector<16x32xf32>
    %80 = arith.truncf %79 : vector<16x32xf32> to vector<16x32xbf16>
    %81 = vector.shape_cast %80 : vector<16x32xbf16> to vector<2x8x32xbf16>
    %82 = vector.extract_strided_slice %39 {offsets = [0, 320], sizes = [16, 32], strides = [1, 1]} : vector<16x384xf32> to vector<16x32xf32>
    %83 = arith.truncf %82 : vector<16x32xf32> to vector<16x32xbf16>
    %84 = vector.shape_cast %83 : vector<16x32xbf16> to vector<2x8x32xbf16>
    %85 = vector.extract_strided_slice %39 {offsets = [0, 352], sizes = [16, 32], strides = [1, 1]} : vector<16x384xf32> to vector<16x32xf32>
    %86 = arith.truncf %85 : vector<16x32xf32> to vector<16x32xbf16>
    %87 = vector.shape_cast %86 : vector<16x32xbf16> to vector<2x8x32xbf16>
    %88 = vector.shape_cast %78 : vector<2x8x32xbf16> to vector<1x2x8x32xbf16>
    %89 = vector.shape_cast %81 : vector<2x8x32xbf16> to vector<1x2x8x32xbf16>
    %90 = vector.shape_cast %84 : vector<2x8x32xbf16> to vector<1x2x8x32xbf16>
    %91 = vector.shape_cast %87 : vector<2x8x32xbf16> to vector<1x2x8x32xbf16>
    %92 = tpu.concatenate %88, %89, %90, %91 in 0 : vector<1x2x8x32xbf16>, vector<1x2x8x32xbf16>, vector<1x2x8x32xbf16>, vector<1x2x8x32xbf16> -> vector<4x2x8x32xbf16>
    %93 = vector.shape_cast %92 : vector<4x2x8x32xbf16> to vector<8x8x32xbf16>
    "tpu.trace_start"() <{level = 10 : i32, message = "nqd,nkd->nqk"}> : () -> ()
    %cst_18 = arith.constant dense<0.000000e+00> : vector<8x8x8xf32>
    %94 = tpu.matmul %57, %75, %cst_18 {dimension_numbers = #tpu.dot_dimension_numbers<[2], [2], [1], [1], [0, 0, 0, 1, 1, 1], [0], [0]>} : vector<8x8x32xbf16>, vector<8x8x32xbf16>, vector<8x8x8xf32> -> vector<8x8x8xf32>
    "tpu.trace_stop"() : () -> ()
    %95 = vector.shape_cast %94 : vector<8x8x8xf32> to vector<4x2x8x8xf32>
    %96 = vector.shape_cast %2 : vector<2x8x8xf32> to vector<1x2x8x8xf32>
    %97 = vector.broadcast %96 : vector<1x2x8x8xf32> to vector<4x2x8x8xf32>
    %98 = arith.addf %95, %97 : vector<4x2x8x8xf32>
    %99 = vector.shape_cast %98 : vector<4x2x8x8xf32> to vector<8x8x8xf32>
    %cst_19 = arith.constant dense<0xFF800000> : vector<8x8xf32>
    %100 = vector.multi_reduction <maximumf>, %99, %cst_19 [2] : vector<8x8x8xf32> to vector<8x8xf32>
    %101 = vector.shape_cast %100 : vector<8x8xf32> to vector<8x8x1xf32>
    %102 = vector.broadcast %101 : vector<8x8x1xf32> to vector<8x8x8xf32>
    %103 = arith.subf %99, %102 : vector<8x8x8xf32>
    %104 = math.exp %103 : vector<8x8x8xf32>
    %cst_20 = arith.constant dense<0.000000e+00> : vector<8x8xf32>
    %105 = vector.multi_reduction <add>, %104, %cst_20 [2] : vector<8x8x8xf32> to vector<8x8xf32>
    %106 = vector.shape_cast %105 : vector<8x8xf32> to vector<8x8x1xf32>
    %107 = arith.truncf %104 : vector<8x8x8xf32> to vector<8x8x8xbf16>
    "tpu.trace_start"() <{level = 10 : i32, message = "nqk,nkd->nqd"}> : () -> ()
    %cst_21 = arith.constant dense<0.000000e+00> : vector<8x8x32xf32>
    %108 = tpu.matmul %107, %93, %cst_21 {dimension_numbers = #tpu.dot_dimension_numbers<[2], [1], [1], [2], [0, 0, 0, 1, 1, 2], [0], [0]>} : vector<8x8x8xbf16>, vector<8x8x32xbf16>, vector<8x8x32xf32> -> vector<8x8x32xf32>
    "tpu.trace_stop"() : () -> ()
    %109 = tpu.reciprocal %106 {approx = true} : vector<8x8x1xf32> -> vector<8x8x1xf32>
    %110 = vector.broadcast %109 : vector<8x8x1xf32> to vector<8x8x32xf32>
    %111 = arith.mulf %108, %110 : vector<8x8x32xf32>
    %112 = arith.truncf %111 : vector<8x8x32xf32> to vector<8x8x32xbf16>
    %113 = vector.shape_cast %112 : vector<8x8x32xbf16> to vector<4x16x32xbf16>
    %114 = vector.extract_strided_slice %113 {offsets = [0, 0, 0], sizes = [1, 16, 32], strides = [1, 1, 1]} : vector<4x16x32xbf16> to vector<1x16x32xbf16>
    %115 = vector.shape_cast %114 : vector<1x16x32xbf16> to vector<16x32xbf16>
    %c0_22 = arith.constant 0 : index
    %c0_23 = arith.constant 0 : index
    %c0_24 = arith.constant 0 : index
    %116 = vector.load %arg7[%c0_22, %c0_23, %c0_24] : memref<4x32x128xbf16, #tpu.memory_space<vmem>>, vector<1x32x128xbf16>
    %117 = vector.shape_cast %116 : vector<1x32x128xbf16> to vector<32x128xbf16>
    %cst_25 = arith.constant dense<0.000000e+00> : vector<16x128xf32>
    %118 = tpu.matmul %115, %117, %cst_25 {dimension_numbers = #tpu.dot_dimension_numbers<[1], [0], [0], [1], [0, 0, 1, 1], [], []>} : vector<16x32xbf16>, vector<32x128xbf16>, vector<16x128xf32> -> vector<16x128xf32>
    %119 = vector.extract_strided_slice %113 {offsets = [1, 0, 0], sizes = [1, 16, 32], strides = [1, 1, 1]} : vector<4x16x32xbf16> to vector<1x16x32xbf16>
    %120 = vector.shape_cast %119 : vector<1x16x32xbf16> to vector<16x32xbf16>
    %c1 = arith.constant 1 : index
    %c0_26 = arith.constant 0 : index
    %c0_27 = arith.constant 0 : index
    %121 = vector.load %arg7[%c1, %c0_26, %c0_27] : memref<4x32x128xbf16, #tpu.memory_space<vmem>>, vector<1x32x128xbf16>
    %122 = vector.shape_cast %121 : vector<1x32x128xbf16> to vector<32x128xbf16>
    %cst_28 = arith.constant dense<0.000000e+00> : vector<16x128xf32>
    %123 = tpu.matmul %120, %122, %cst_28 {dimension_numbers = #tpu.dot_dimension_numbers<[1], [0], [0], [1], [0, 0, 1, 1], [], []>} : vector<16x32xbf16>, vector<32x128xbf16>, vector<16x128xf32> -> vector<16x128xf32>
    %124 = arith.addf %118, %123 : vector<16x128xf32>
    %125 = vector.extract_strided_slice %113 {offsets = [2, 0, 0], sizes = [1, 16, 32], strides = [1, 1, 1]} : vector<4x16x32xbf16> to vector<1x16x32xbf16>
    %126 = vector.shape_cast %125 : vector<1x16x32xbf16> to vector<16x32xbf16>
    %c2 = arith.constant 2 : index
    %c0_29 = arith.constant 0 : index
    %c0_30 = arith.constant 0 : index
    %127 = vector.load %arg7[%c2, %c0_29, %c0_30] : memref<4x32x128xbf16, #tpu.memory_space<vmem>>, vector<1x32x128xbf16>
    %128 = vector.shape_cast %127 : vector<1x32x128xbf16> to vector<32x128xbf16>
    %cst_31 = arith.constant dense<0.000000e+00> : vector<16x128xf32>
    %129 = tpu.matmul %126, %128, %cst_31 {dimension_numbers = #tpu.dot_dimension_numbers<[1], [0], [0], [1], [0, 0, 1, 1], [], []>} : vector<16x32xbf16>, vector<32x128xbf16>, vector<16x128xf32> -> vector<16x128xf32>
    %130 = arith.addf %124, %129 : vector<16x128xf32>
    %131 = vector.extract_strided_slice %113 {offsets = [3, 0, 0], sizes = [1, 16, 32], strides = [1, 1, 1]} : vector<4x16x32xbf16> to vector<1x16x32xbf16>
    %132 = vector.shape_cast %131 : vector<1x16x32xbf16> to vector<16x32xbf16>
    %c3 = arith.constant 3 : index
    %c0_32 = arith.constant 0 : index
    %c0_33 = arith.constant 0 : index
    %133 = vector.load %arg7[%c3, %c0_32, %c0_33] : memref<4x32x128xbf16, #tpu.memory_space<vmem>>, vector<1x32x128xbf16>
    %134 = vector.shape_cast %133 : vector<1x32x128xbf16> to vector<32x128xbf16>
    %cst_34 = arith.constant dense<0.000000e+00> : vector<16x128xf32>
    %135 = tpu.matmul %132, %134, %cst_34 {dimension_numbers = #tpu.dot_dimension_numbers<[1], [0], [0], [1], [0, 0, 1, 1], [], []>} : vector<16x32xbf16>, vector<32x128xbf16>, vector<16x128xf32> -> vector<16x128xf32>
    %136 = arith.addf %130, %135 : vector<16x128xf32>
    %c0_35 = arith.constant 0 : index
    %c0_36 = arith.constant 0 : index
    %137 = vector.load %arg8[%c0_35, %c0_36] : memref<1x128xf32, #tpu.memory_space<vmem>>, vector<1x128xf32>
    %138 = vector.shape_cast %137 : vector<1x128xf32> to vector<128xf32>
    %139 = vector.shape_cast %138 : vector<128xf32> to vector<1x128xf32>
    %140 = vector.broadcast %139 : vector<1x128xf32> to vector<16x128xf32>
    %141 = arith.addf %136, %140 : vector<16x128xf32>
    %142 = arith.addf %3, %141 : vector<16x128xf32>
    %c0_37 = arith.constant 0 : index
    %c0_38 = arith.constant 0 : index
    %143 = vector.load %arg9[%c0_37, %c0_38] : memref<1x128xf32, #tpu.memory_space<vmem>>, vector<1x128xf32>
    %144 = vector.shape_cast %143 : vector<1x128xf32> to vector<128xf32>
    %c0_39 = arith.constant 0 : index
    %c0_40 = arith.constant 0 : index
    %145 = vector.load %arg10[%c0_39, %c0_40] : memref<1x128xf32, #tpu.memory_space<vmem>>, vector<1x128xf32>
    %146 = vector.shape_cast %145 : vector<1x128xf32> to vector<128xf32>
    %cst_41 = arith.constant dense<0.000000e+00> : vector<16xf32>
    %147 = vector.multi_reduction <add>, %142, %cst_41 [1] : vector<16x128xf32> to vector<16xf32>
    %148 = vector.shape_cast %147 : vector<16xf32> to vector<16x1xf32>
    %cst_42 = arith.constant 1.280000e+02 : f32
    %149 = vector.broadcast %cst_42 : f32 to vector<16x1xf32>
    %150 = arith.divf %148, %149 : vector<16x1xf32>
    %151 = vector.broadcast %150 : vector<16x1xf32> to vector<16x128xf32>
    %152 = arith.subf %142, %151 : vector<16x128xf32>
    %153 = arith.mulf %152, %152 : vector<16x128xf32>
    %cst_43 = arith.constant dense<0.000000e+00> : vector<16xf32>
    %154 = vector.multi_reduction <add>, %153, %cst_43 [1] : vector<16x128xf32> to vector<16xf32>
    %155 = vector.shape_cast %154 : vector<16xf32> to vector<16x1xf32>
    %cst_44 = arith.constant 1.280000e+02 : f32
    %156 = vector.broadcast %cst_44 : f32 to vector<16x1xf32>
    %157 = arith.divf %155, %156 : vector<16x1xf32>
    %158 = vector.broadcast %150 : vector<16x1xf32> to vector<16x128xf32>
    %159 = arith.subf %142, %158 : vector<16x128xf32>
    %cst_45 = arith.constant 9.99999974E-6 : f32
    %160 = vector.broadcast %cst_45 : f32 to vector<16x1xf32>
    %161 = arith.addf %157, %160 : vector<16x1xf32>
    %162 = math.rsqrt %161 : vector<16x1xf32>
    %163 = vector.broadcast %162 : vector<16x1xf32> to vector<16x128xf32>
    %164 = arith.mulf %159, %163 : vector<16x128xf32>
    %165 = vector.shape_cast %144 : vector<128xf32> to vector<1x128xf32>
    %166 = vector.broadcast %165 : vector<1x128xf32> to vector<16x128xf32>
    %167 = arith.mulf %164, %166 : vector<16x128xf32>
    %168 = vector.shape_cast %146 : vector<128xf32> to vector<1x128xf32>
    %169 = vector.broadcast %168 : vector<1x128xf32> to vector<16x128xf32>
    %170 = arith.addf %167, %169 : vector<16x128xf32>
    %171 = arith.truncf %170 : vector<16x128xf32> to vector<16x128xbf16>
    %c0_46 = arith.constant 0 : index
    %c0_47 = arith.constant 0 : index
    %172 = vector.load %arg11[%c0_46, %c0_47] : memref<128x512xbf16, #tpu.memory_space<vmem>>, vector<128x512xbf16>
    %cst_48 = arith.constant dense<0.000000e+00> : vector<16x512xf32>
    %173 = tpu.matmul %171, %172, %cst_48 {dimension_numbers = #tpu.dot_dimension_numbers<[1], [0], [0], [1], [0, 0, 1, 1], [], []>} : vector<16x128xbf16>, vector<128x512xbf16>, vector<16x512xf32> -> vector<16x512xf32>
    %c0_49 = arith.constant 0 : index
    %c0_50 = arith.constant 0 : index
    %174 = vector.load %arg12[%c0_49, %c0_50] : memref<1x512xf32, #tpu.memory_space<vmem>>, vector<1x512xf32>
    %175 = vector.shape_cast %174 : vector<1x512xf32> to vector<512xf32>
    %176 = vector.shape_cast %175 : vector<512xf32> to vector<1x512xf32>
    %177 = vector.broadcast %176 : vector<1x512xf32> to vector<16x512xf32>
    %178 = arith.addf %173, %177 : vector<16x512xf32>
    %cst_51 = arith.constant 1.702000e+00 : f32
    %179 = vector.broadcast %cst_51 : f32 to vector<16x512xf32>
    %180 = arith.mulf %179, %178 : vector<16x512xf32>
    %181 = arith.negf %180 : vector<16x512xf32>
    %182 = math.exp %181 : vector<16x512xf32>
    %cst_52 = arith.constant 1.000000e+00 : f32
    %183 = vector.broadcast %cst_52 : f32 to vector<16x512xf32>
    %184 = arith.addf %183, %182 : vector<16x512xf32>
    %185 = arith.divf %183, %184 : vector<16x512xf32>
    %186 = arith.mulf %178, %185 : vector<16x512xf32>
    %187 = arith.truncf %186 : vector<16x512xf32> to vector<16x512xbf16>
    %c0_53 = arith.constant 0 : index
    %c0_54 = arith.constant 0 : index
    %188 = vector.load %arg13[%c0_53, %c0_54] : memref<512x128xbf16, #tpu.memory_space<vmem>>, vector<512x128xbf16>
    %cst_55 = arith.constant dense<0.000000e+00> : vector<16x128xf32>
    %189 = tpu.matmul %187, %188, %cst_55 {dimension_numbers = #tpu.dot_dimension_numbers<[1], [0], [0], [1], [0, 0, 1, 1], [], []>} : vector<16x512xbf16>, vector<512x128xbf16>, vector<16x128xf32> -> vector<16x128xf32>
    %c0_56 = arith.constant 0 : index
    %c0_57 = arith.constant 0 : index
    %190 = vector.load %arg14[%c0_56, %c0_57] : memref<1x128xf32, #tpu.memory_space<vmem>>, vector<1x128xf32>
    %191 = vector.shape_cast %190 : vector<1x128xf32> to vector<128xf32>
    %192 = vector.shape_cast %191 : vector<128xf32> to vector<1x128xf32>
    %193 = vector.broadcast %192 : vector<1x128xf32> to vector<16x128xf32>
    %194 = arith.addf %189, %193 : vector<16x128xf32>
    %195 = arith.addf %142, %194 : vector<16x128xf32>
    %196 = vector.shape_cast %195 : vector<16x128xf32> to vector<2x8x128xf32>
    %c0_58 = arith.constant 0 : index
    %c0_59 = arith.constant 0 : index
    %c0_60 = arith.constant 0 : index
    %197 = vector.load %arg15[%c0_58, %c0_59, %c0_60] : memref<2x8x128xf32, #tpu.memory_space<vmem>>, vector<2x8x128xf32>
    tpu.vector_store %arg15[%c0_58, %c0_59, %c0_60], %196 {strides = array<i32>} : memref<2x8x128xf32, #tpu.memory_space<vmem>>, vector<2x8x128xf32>,
    return
  }
  func.func @transform_0(%arg0: i32) -> (i32, i32, i32) {
    %c0_i32 = arith.constant 0 : i32
    %c0_i32_0 = arith.constant 0 : i32
    %c0_i32_1 = arith.constant 0 : i32
    return %arg0, %c0_i32, %c0_i32_0 : i32, i32, i32
  }
  func.func @transform_1(%arg0: i32) -> (i32, i32, i32) {
    %c0_i32 = arith.constant 0 : i32
    %c0_i32_0 = arith.constant 0 : i32
    %c0_i32_1 = arith.constant 0 : i32
    return %arg0, %c0_i32, %c0_i32_0 : i32, i32, i32
  }
  func.func @transform_2(%arg0: i32) -> (i32, i32) {
    %c0_i32 = arith.constant 0 : i32
    %c0_i32_0 = arith.constant 0 : i32
    %c0_i32_1 = arith.constant 0 : i32
    return %c0_i32, %c0_i32_0 : i32, i32
  }
  func.func @transform_3(%arg0: i32) -> (i32, i32) {
    %c0_i32 = arith.constant 0 : i32
    %c0_i32_0 = arith.constant 0 : i32
    %c0_i32_1 = arith.constant 0 : i32
    return %c0_i32, %c0_i32_0 : i32, i32
  }
  func.func @transform_4(%arg0: i32) -> (i32, i32) {
    %c0_i32 = arith.constant 0 : i32
    %c0_i32_0 = arith.constant 0 : i32
    %c0_i32_1 = arith.constant 0 : i32
    return %c0_i32, %c0_i32_0 : i32, i32
  }
  func.func @transform_5(%arg0: i32) -> (i32, i32) {
    %c0_i32 = arith.constant 0 : i32
    %c0_i32_0 = arith.constant 0 : i32
    %c0_i32_1 = arith.constant 0 : i32
    return %c0_i32, %c0_i32_0 : i32, i32
  }
  func.func @transform_6(%arg0: i32) -> (i32, i32, i32) {
    %c0_i32 = arith.constant 0 : i32
    %c0_i32_0 = arith.constant 0 : i32
    %c0_i32_1 = arith.constant 0 : i32
    %c0_i32_2 = arith.constant 0 : i32
    return %c0_i32, %c0_i32_0, %c0_i32_1 : i32, i32, i32
  }
  func.func @transform_7(%arg0: i32) -> (i32, i32) {
    %c0_i32 = arith.constant 0 : i32
    %c0_i32_0 = arith.constant 0 : i32
    %c0_i32_1 = arith.constant 0 : i32
    return %c0_i32, %c0_i32_0 : i32, i32
  }
  func.func @transform_8(%arg0: i32) -> (i32, i32) {
    %c0_i32 = arith.constant 0 : i32
    %c0_i32_0 = arith.constant 0 : i32
    %c0_i32_1 = arith.constant 0 : i32
    return %c0_i32, %c0_i32_0 : i32, i32
  }
  func.func @transform_9(%arg0: i32) -> (i32, i32) {
    %c0_i32 = arith.constant 0 : i32
    %c0_i32_0 = arith.constant 0 : i32
    %c0_i32_1 = arith.constant 0 : i32
    return %c0_i32, %c0_i32_0 : i32, i32
  }
  func.func @transform_10(%arg0: i32) -> (i32, i32) {
    %c0_i32 = arith.constant 0 : i32
    %c0_i32_0 = arith.constant 0 : i32
    %c0_i32_1 = arith.constant 0 : i32
    return %c0_i32, %c0_i32_0 : i32, i32
  }
  func.func @transform_11(%arg0: i32) -> (i32, i32) {
    %c0_i32 = arith.constant 0 : i32
    %c0_i32_0 = arith.constant 0 : i32
    %c0_i32_1 = arith.constant 0 : i32
    return %c0_i32, %c0_i32_0 : i32, i32
  }
  func.func @transform_12(%arg0: i32) -> (i32, i32) {
    %c0_i32 = arith.constant 0 : i32
    %c0_i32_0 = arith.constant 0 : i32
    %c0_i32_1 = arith.constant 0 : i32
    return %c0_i32, %c0_i32_0 : i32, i32
  }
  func.func @transform_13(%arg0: i32) -> (i32, i32) {
    %c0_i32 = arith.constant 0 : i32
    %c0_i32_0 = arith.constant 0 : i32
    %c0_i32_1 = arith.constant 0 : i32
    return %c0_i32, %c0_i32_0 : i32, i32
  }
  func.func @transform_14(%arg0: i32) -> (i32, i32, i32) {
    %c0_i32 = arith.constant 0 : i32
    %c0_i32_0 = arith.constant 0 : i32
    %c0_i32_1 = arith.constant 0 : i32
    return %arg0, %c0_i32, %c0_i32_0 : i32, i32, i32
  }
}

module attributes {stable_mosaic.version = 11 : i64} {
  func.func @resblock_kernel(%arg0: i32, %arg1: memref<2x8x128xf32, #tpu.memory_space<vmem>>, %arg2: memref<2x8x8xbf16, #tpu.memory_space<vmem>>, %arg3: memref<1x128xf32, #tpu.memory_space<vmem>>, %arg4: memref<1x128xf32, #tpu.memory_space<vmem>>, %arg5: memref<128x384xbf16, #tpu.memory_space<vmem>>, %arg6: memref<1x384xf32, #tpu.memory_space<vmem>>, %arg7: memref<4x32x128xbf16, #tpu.memory_space<vmem>>, %arg8: memref<1x128xf32, #tpu.memory_space<vmem>>, %arg9: memref<1x128xf32, #tpu.memory_space<vmem>>, %arg10: memref<1x128xf32, #tpu.memory_space<vmem>>, %arg11: memref<128x512xbf16, #tpu.memory_space<vmem>>, %arg12: memref<1x512xf32, #tpu.memory_space<vmem>>, %arg13: memref<512x128xbf16, #tpu.memory_space<vmem>>, %arg14: memref<1x128xf32, #tpu.memory_space<vmem>>, %arg15: memref<2x8x128xf32, #tpu.memory_space<vmem>>) attributes {dimension_semantics = [#tpu.dimension_semantics<parallel>], iteration_bounds = array<i64: 1>, scalar_prefetch = 0 : i64, scratch_operands = 0 : i64, tpu.core_type = #tpu.core_type<tc>, window_params = [{transform_indices = @transform_0, window_bounds = array<i64: 2, 8, 128>}, {transform_indices = @transform_1, window_bounds = array<i64: 2, 8, 8>}, {pipeline_mode = #tpu.pipeline_mode<synchronous>, transform_indices = @transform_2, window_bounds = array<i64: 1, 128>}, {pipeline_mode = #tpu.pipeline_mode<synchronous>, transform_indices = @transform_3, window_bounds = array<i64: 1, 128>}, {pipeline_mode = #tpu.pipeline_mode<synchronous>, transform_indices = @transform_4, window_bounds = array<i64: 128, 384>}, {pipeline_mode = #tpu.pipeline_mode<synchronous>, transform_indices = @transform_5, window_bounds = array<i64: 1, 384>}, {pipeline_mode = #tpu.pipeline_mode<synchronous>, transform_indices = @transform_6, window_bounds = array<i64: 4, 32, 128>}, {pipeline_mode = #tpu.pipeline_mode<synchronous>, transform_indices = @transform_7, window_bounds = array<i64: 1, 128>}, {pipeline_mode = #tpu.pipeline_mode<synchronous>, transform_indices = @transform_8, window_bounds = array<i64: 1, 128>}, {pipeline_mode = #tpu.pipeline_mode<synchronous>, transform_indices = @transform_9, window_bounds = array<i64: 1, 128>}, {pipeline_mode = #tpu.pipeline_mode<synchronous>, transform_indices = @transform_10, window_bounds = array<i64: 128, 512>}, {pipeline_mode = #tpu.pipeline_mode<synchronous>, transform_indices = @transform_11, window_bounds = array<i64: 1, 512>}, {pipeline_mode = #tpu.pipeline_mode<synchronous>, transform_indices = @transform_12, window_bounds = array<i64: 512, 128>}, {pipeline_mode = #tpu.pipeline_mode<synchronous>, transform_indices = @transform_13, window_bounds = array<i64: 1, 128>}, {transform_indices = @transform_14, window_bounds = array<i64: 2, 8, 128>}]} {
    %c0 = arith.constant 0 : index
    %c0_0 = arith.constant 0 : index
    %c0_1 = arith.constant 0 : index
    %0 = vector.load %arg1[%c0, %c0_0, %c0_1] : memref<2x8x128xf32, #tpu.memory_space<vmem>>, vector<2x8x128xf32>
    %c0_2 = arith.constant 0 : index
    %c0_3 = arith.constant 0 : index
    %c0_4 = arith.constant 0 : index
    %1 = vector.load %arg2[%c0_2, %c0_3, %c0_4] : memref<2x8x8xbf16, #tpu.memory_space<vmem>>, vector<2x8x8xbf16>
    %2 = arith.extf %1 : vector<2x8x8xbf16> to vector<2x8x8xf32>
    %3 = vector.shape_cast %0 : vector<2x8x128xf32> to vector<16x128xf32>
    %c0_5 = arith.constant 0 : index
    %c0_6 = arith.constant 0 : index
    %4 = vector.load %arg3[%c0_5, %c0_6] : memref<1x128xf32, #tpu.memory_space<vmem>>, vector<1x128xf32>
    %5 = vector.shape_cast %4 : vector<1x128xf32> to vector<128xf32>
    %c0_7 = arith.constant 0 : index
    %c0_8 = arith.constant 0 : index
    %6 = vector.load %arg4[%c0_7, %c0_8] : memref<1x128xf32, #tpu.memory_space<vmem>>, vector<1x128xf32>
    %7 = vector.shape_cast %6 : vector<1x128xf32> to vector<128xf32>
    %cst = arith.constant dense<0.000000e+00> : vector<16xf32>
    %8 = vector.multi_reduction <add>, %3, %cst [1] : vector<16x128xf32> to vector<16xf32>
    %9 = vector.shape_cast %8 : vector<16xf32> to vector<16x1xf32>
    %cst_9 = arith.constant 1.280000e+02 : f32
    %10 = vector.broadcast %cst_9 : f32 to vector<16x1xf32>
    %11 = arith.divf %9, %10 : vector<16x1xf32>
    %12 = vector.broadcast %11 : vector<16x1xf32> to vector<16x128xf32>
    %13 = arith.subf %3, %12 : vector<16x128xf32>
    %14 = arith.mulf %13, %13 : vector<16x128xf32>
    %cst_10 = arith.constant dense<0.000000e+00> : vector<16xf32>
    %15 = vector.multi_reduction <add>, %14, %cst_10 [1] : vector<16x128xf32> to vector<16xf32>
    %16 = vector.shape_cast %15 : vector<16xf32> to vector<16x1xf32>
    %cst_11 = arith.constant 1.280000e+02 : f32
    %17 = vector.broadcast %cst_11 : f32 to vector<16x1xf32>
    %18 = arith.divf %16, %17 : vector<16x1xf32>
    %19 = vector.broadcast %11 : vector<16x1xf32> to vector<16x128xf32>
    %20 = arith.subf %3, %19 : vector<16x128xf32>
    %cst_12 = arith.constant 9.99999974E-6 : f32
    %21 = vector.broadcast %cst_12 : f32 to vector<16x1xf32>
    %22 = arith.addf %18, %21 : vector<16x1xf32>
    %23 = math.rsqrt %22 : vector<16x1xf32>
    %24 = vector.broadcast %23 : vector<16x1xf32> to vector<16x128xf32>
    %25 = arith.mulf %20, %24 : vector<16x128xf32>
    %26 = vector.shape_cast %5 : vector<128xf32> to vector<1x128xf32>
    %27 = vector.broadcast %26 : vector<1x128xf32> to vector<16x128xf32>
    %28 = arith.mulf %25, %27 : vector<16x128xf32>
    %29 = vector.shape_cast %7 : vector<128xf32> to vector<1x128xf32>
    %30 = vector.broadcast %29 : vector<1x128xf32> to vector<16x128xf32>
    %31 = arith.addf %28, %30 : vector<16x128xf32>
    %32 = arith.truncf %31 : vector<16x128xf32> to vector<16x128xbf16>
    %c0_13 = arith.constant 0 : index
    %c0_14 = arith.constant 0 : index
    %33 = vector.load %arg5[%c0_13, %c0_14] : memref<128x384xbf16, #tpu.memory_space<vmem>>, vector<128x384xbf16>
    %cst_15 = arith.constant dense<0.000000e+00> : vector<16x384xf32>
    %34 = tpu.matmul %32, %33, %cst_15 {dimension_numbers = #tpu.dot_dimension_numbers<[1], [0], [0], [1], [0, 0, 1, 1], [], []>} : vector<16x128xbf16>, vector<128x384xbf16>, vector<16x384xf32> -> vector<16x384xf32>
    %c0_16 = arith.constant 0 : index
    %c0_17 = arith.constant 0 : index
    %35 = vector.load %arg6[%c0_16, %c0_17] : memref<1x384xf32, #tpu.memory_space<vmem>>, vector<1x384xf32>
    %36 = vector.shape_cast %35 : vector<1x384xf32> to vector<384xf32>
    %37 = vector.shape_cast %36 : vector<384xf32> to vector<1x384xf32>
    %38 = vector.broadcast %37 : vector<1x384xf32> to vector<16x384xf32>
    %39 = arith.addf %34, %38 : vector<16x384xf32>
    %40 = vector.extract_strided_slice %39 {offsets = [0, 0], sizes = [16, 32], strides = [1, 1]} : vector<16x384xf32> to vector<16x32xf32>
    %41 = arith.truncf %40 : vector<16x32xf32> to vector<16x32xbf16>
    %42 = vector.shape_cast %41 : vector<16x32xbf16> to vector<2x8x32xbf16>
    %43 = vector.extract_strided_slice %39 {offsets = [0, 32], sizes = [16, 32], strides = [1, 1]} : vector<16x384xf32> to vector<16x32xf32>
    %44 = arith.truncf %43 : vector<16x32xf32> to vector<16x32xbf16>
    %45 = vector.shape_cast %44 : vector<16x32xbf16> to vector<2x8x32xbf16>
    %46 = vector.extract_strided_slice %39 {offsets = [0, 64], sizes = [16, 32], strides = [1, 1]} : vector<16x384xf32> to vector<16x32xf32>
    %47 = arith.truncf %46 : vector<16x32xf32> to vector<16x32xbf16>
    %48 = vector.shape_cast %47 : vector<16x32xbf16> to vector<2x8x32xbf16>
    %49 = vector.extract_strided_slice %39 {offsets = [0, 96], sizes = [16, 32], strides = [1, 1]} : vector<16x384xf32> to vector<16x32xf32>
    %50 = arith.truncf %49 : vector<16x32xf32> to vector<16x32xbf16>
    %51 = vector.shape_cast %50 : vector<16x32xbf16> to vector<2x8x32xbf16>
    %52 = vector.shape_cast %42 : vector<2x8x32xbf16> to vector<1x2x8x32xbf16>
    %53 = vector.shape_cast %45 : vector<2x8x32xbf16> to vector<1x2x8x32xbf16>
    %54 = vector.shape_cast %48 : vector<2x8x32xbf16> to vector<1x2x8x32xbf16>
    %55 = vector.shape_cast %51 : vector<2x8x32xbf16> to vector<1x2x8x32xbf16>
    %56 = tpu.concatenate %52, %53, %54, %55 in 0 : vector<1x2x8x32xbf16>, vector<1x2x8x32xbf16>, vector<1x2x8x32xbf16>, vector<1x2x8x32xbf16> -> vector<4x2x8x32xbf16>
    %57 = vector.shape_cast %56 : vector<4x2x8x32xbf16> to vector<8x8x32xbf16>
    %58 = vector.extract_strided_slice %39 {offsets = [0, 128], sizes = [16, 32], strides = [1, 1]} : vector<16x384xf32> to vector<16x32xf32>
    %59 = arith.truncf %58 : vector<16x32xf32> to vector<16x32xbf16>
    %60 = vector.shape_cast %59 : vector<16x32xbf16> to vector<2x8x32xbf16>
    %61 = vector.extract_strided_slice %39 {offsets = [0, 160], sizes = [16, 32], strides = [1, 1]} : vector<16x384xf32> to vector<16x32xf32>
    %62 = arith.truncf %61 : vector<16x32xf32> to vector<16x32xbf16>
    %63 = vector.shape_cast %62 : vector<16x32xbf16> to vector<2x8x32xbf16>
    %64 = vector.extract_strided_slice %39 {offsets = [0, 192], sizes = [16, 32], strides = [1, 1]} : vector<16x384xf32> to vector<16x32xf32>
    %65 = arith.truncf %64 : vector<16x32xf32> to vector<16x32xbf16>
    %66 = vector.shape_cast %65 : vector<16x32xbf16> to vector<2x8x32xbf16>
    %67 = vector.extract_strided_slice %39 {offsets = [0, 224], sizes = [16, 32], strides = [1, 1]} : vector<16x384xf32> to vector<16x32xf32>
    %68 = arith.truncf %67 : vector<16x32xf32> to vector<16x32xbf16>
    %69 = vector.shape_cast %68 : vector<16x32xbf16> to vector<2x8x32xbf16>
    %70 = vector.shape_cast %60 : vector<2x8x32xbf16> to vector<1x2x8x32xbf16>
    %71 = vector.shape_cast %63 : vector<2x8x32xbf16> to vector<1x2x8x32xbf16>
    %72 = vector.shape_cast %66 : vector<2x8x32xbf16> to vector<1x2x8x32xbf16>
    %73 = vector.shape_cast %69 : vector<2x8x32xbf16> to vector<1x2x8x32xbf16>
    %74 = tpu.concatenate %70, %71, %72, %73 in 0 : vector<1x2x8x32xbf16>, vector<1x2x8x32xbf16>, vector<1x2x8x32xbf16>, vector<1x2x8x32xbf16> -> vector<4x2x8x32xbf16>
    %75 = vector.shape_cast %74 : vector<4x2x8x32xbf16> to vector<8x8x32xbf16>
    %76 = vector.extract_strided_slice %39 {offsets = [0, 256], sizes = [16, 32], strides = [1, 1]} : vector<16x384xf32> to vector<16x32xf32>
    %77 = arith.truncf %76 : vector<16x32xf32> to vector<16x32xbf16>
    %78 = vector.shape_cast %77 : vector<16x32xbf16> to vector<2x8x32xbf16>
    %79 = vector.extract_strided_slice %39 {offsets = [0, 288], sizes = [16, 32], strides = [1, 1]} : vector<16x384xf32> to vector<16x32xf32>
    %80 = arith.truncf %79 : vector<16x32xf32> to vector<16x32xbf16>
    %81 = vector.shape_cast %80 : vector<16x32xbf16> to vector<2x8x32xbf16>
    %82 = vector.extract_strided_slice %39 {offsets = [0, 320], sizes = [16, 32], strides = [1, 1]} : vector<16x384xf32> to vector<16x32xf32>
    %83 = arith.truncf %82 : vector<16x32xf32> to vector<16x32xbf16>
    %84 = vector.shape_cast %83 : vector<16x32xbf16> to vector<2x8x32xbf16>
    %85 = vector.extract_strided_slice %39 {offsets = [0, 352], sizes = [16, 32], strides = [1, 1]} : vector<16x384xf32> to vector<16x32xf32>
    %86 = arith.truncf %85 : vector<16x32xf32> to vector<16x32xbf16>
    %87 = vector.shape_cast %86 : vector<16x32xbf16> to vector<2x8x32xbf16>
    %88 = vector.shape_cast %78 : vector<2x8x32xbf16> to vector<1x2x8x32xbf16>
    %89 = vector.shape_cast %81 : vector<2x8x32xbf16> to vector<1x2x8x32xbf16>
    %90 = vector.shape_cast %84 : vector<2x8x32xbf16> to vector<1x2x8x32xbf16>
    %91 = vector.shape_cast %87 : vector<2x8x32xbf16> to vector<1x2x8x32xbf16>
    %92 = tpu.concatenate %88, %89, %90, %91 in 0 : vector<1x2x8x32xbf16>, vector<1x2x8x32xbf16>, vector<1x2x8x32xbf16>, vector<1x2x8x32xbf16> -> vector<4x2x8x32xbf16>
    %93 = vector.shape_cast %92 : vector<4x2x8x32xbf16> to vector<8x8x32xbf16>
    "tpu.trace_start"() <{level = 10 : i32, message = "nqd,nkd->nqk"}> : () -> ()
    %cst_18 = arith.constant dense<0.000000e+00> : vector<8x8x8xf32>
    %94 = tpu.matmul %57, %75, %cst_18 {dimension_numbers = #tpu.dot_dimension_numbers<[2], [2], [1], [1], [0, 0, 0, 1, 1, 1], [0], [0]>} : vector<8x8x32xbf16>, vector<8x8x32xbf16>, vector<8x8x8xf32> -> vector<8x8x8xf32>
    "tpu.trace_stop"() : () -> ()
    %95 = vector.shape_cast %94 : vector<8x8x8xf32> to vector<4x2x8x8xf32>
    %96 = vector.shape_cast %2 : vector<2x8x8xf32> to vector<1x2x8x8xf32>
    %97 = vector.broadcast %96 : vector<1x2x8x8xf32> to vector<4x2x8x8xf32>
    %98 = arith.addf %95, %97 : vector<4x2x8x8xf32>
    %99 = vector.shape_cast %98 : vector<4x2x8x8xf32> to vector<8x8x8xf32>
    %cst_19 = arith.constant dense<0xFF800000> : vector<8x8xf32>
    %100 = vector.multi_reduction <maximumf>, %99, %cst_19 [2] : vector<8x8x8xf32> to vector<8x8xf32>
    %101 = vector.shape_cast %100 : vector<8x8xf32> to vector<8x8x1xf32>
    %102 = vector.broadcast %101 : vector<8x8x1xf32> to vector<8x8x8xf32>
    %103 = arith.subf %99, %102 : vector<8x8x8xf32>
    %104 = math.exp %103 : vector<8x8x8xf32>
    %cst_20 = arith.constant dense<0.000000e+00> : vector<8x8xf32>
    %105 = vector.multi_reduction <add>, %104, %cst_20 [2] : vector<8x8x8xf32> to vector<8x8xf32>
    %106 = vector.shape_cast %105 : vector<8x8xf32> to vector<8x8x1xf32>
    %107 = arith.truncf %104 : vector<8x8x8xf32> to vector<8x8x8xbf16>
    "tpu.trace_start"() <{level = 10 : i32, message = "nqk,nkd->nqd"}> : () -> ()
    %cst_21 = arith.constant dense<0.000000e+00> : vector<8x8x32xf32>
    %108 = tpu.matmul %107, %93, %cst_21 {dimension_numbers = #tpu.dot_dimension_numbers<[2], [1], [1], [2], [0, 0, 0, 1, 1, 2], [0], [0]>} : vector<8x8x8xbf16>, vector<8x8x32xbf16>, vector<8x8x32xf32> -> vector<8x8x32xf32>
    "tpu.trace_stop"() : () -> ()
    %109 = tpu.reciprocal %106 {approx = true} : vector<8x8x1xf32> -> vector<8x8x1xf32>
    %110 = vector.broadcast %109 : vector<8x8x1xf32> to vector<8x8x32xf32>
    %111 = arith.mulf %108, %110 : vector<8x8x32xf32>
    %112 = arith.truncf %111 : vector<8x8x32xf32> to vector<8x8x32xbf16>
    %113 = vector.shape_cast %112 : vector<8x8x32xbf16> to vector<4x16x32xbf16>
    %114 = vector.extract_strided_slice %113 {offsets = [0, 0, 0], sizes = [1, 16, 32], strides = [1, 1, 1]} : vector<4x16x32xbf16> to vector<1x16x32xbf16>
    %115 = vector.shape_cast %114 : vector<1x16x32xbf16> to vector<16x32xbf16>
    %c0_22 = arith.constant 0 : index
    %c0_23 = arith.constant 0 : index
    %c0_24 = arith.constant 0 : index
    %116 = vector.load %arg7[%c0_22, %c0_23, %c0_24] : memref<4x32x128xbf16, #tpu.memory_space<vmem>>, vector<1x32x128xbf16>
    %117 = vector.shape_cast %116 : vector<1x32x128xbf16> to vector<32x128xbf16>
    %cst_25 = arith.constant dense<0.000000e+00> : vector<16x128xf32>
    %118 = tpu.matmul %115, %117, %cst_25 {dimension_numbers = #tpu.dot_dimension_numbers<[1], [0], [0], [1], [0, 0, 1, 1], [], []>} : vector<16x32xbf16>, vector<32x128xbf16>, vector<16x128xf32> -> vector<16x128xf32>
    %119 = vector.extract_strided_slice %113 {offsets = [1, 0, 0], sizes = [1, 16, 32], strides = [1, 1, 1]} : vector<4x16x32xbf16> to vector<1x16x32xbf16>
    %120 = vector.shape_cast %119 : vector<1x16x32xbf16> to vector<16x32xbf16>
    %c1 = arith.constant 1 : index
    %c0_26 = arith.constant 0 : index
    %c0_27 = arith.constant 0 : index
    %121 = vector.load %arg7[%c1, %c0_26, %c0_27] : memref<4x32x128xbf16, #tpu.memory_space<vmem>>, vector<1x32x128xbf16>
    %122 = vector.shape_cast %121 : vector<1x32x128xbf16> to vector<32x128xbf16>
    %cst_28 = arith.constant dense<0.000000e+00> : vector<16x128xf32>
    %123 = tpu.matmul %120, %122, %cst_28 {dimension_numbers = #tpu.dot_dimension_numbers<[1], [0], [0], [1], [0, 0, 1, 1], [], []>} : vector<16x32xbf16>, vector<32x128xbf16>, vector<16x128xf32> -> vector<16x128xf32>
    %124 = arith.addf %118, %123 : vector<16x128xf32>
    %125 = vector.extract_strided_slice %113 {offsets = [2, 0, 0], sizes = [1, 16, 32], strides = [1, 1, 1]} : vector<4x16x32xbf16> to vector<1x16x32xbf16>
    %126 = vector.shape_cast %125 : vector<1x16x32xbf16> to vector<16x32xbf16>
    %c2 = arith.constant 2 : index
    %c0_29 = arith.constant 0 : index
    %c0_30 = arith.constant 0 : index
    %127 = vector.load %arg7[%c2, %c0_29, %c0_30] : memref<4x32x128xbf16, #tpu.memory_space<vmem>>, vector<1x32x128xbf16>
    %128 = vector.shape_cast %127 : vector<1x32x128xbf16> to vector<32x128xbf16>
    %cst_31 = arith.constant dense<0.000000e+00> : vector<16x128xf32>
    %129 = tpu.matmul %126, %128, %cst_31 {dimension_numbers = #tpu.dot_dimension_numbers<[1], [0], [0], [1], [0, 0, 1, 1], [], []>} : vector<16x32xbf16>, vector<32x128xbf16>, vector<16x128xf32> -> vector<16x128xf32>
    %130 = arith.addf %124, %129 : vector<16x128xf32>
    %131 = vector.extract_strided_slice %113 {offsets = [3, 0, 0], sizes = [1, 16, 32], strides = [1, 1, 1]} : vector<4x16x32xbf16> to vector<1x16x32xbf16>
    %132 = vector.shape_cast %131 : vector<1x16x32xbf16> to vector<16x32xbf16>
    %c3 = arith.constant 3 : index
    %c0_32 = arith.constant 0 : index
    %c0_33 = arith.constant 0 : index
    %133 = vector.load %arg7[%c3, %c0_32, %c0_33] : memref<4x32x128xbf16, #tpu.memory_space<vmem>>, vector<1x32x128xbf16>
    %134 = vector.shape_cast %133 : vector<1x32x128xbf16> to vector<32x128xbf16>
    %cst_34 = arith.constant dense<0.000000e+00> : vector<16x128xf32>
    %135 = tpu.matmul %132, %134, %cst_34 {dimension_numbers = #tpu.dot_dimension_numbers<[1], [0], [0], [1], [0, 0, 1, 1], [], []>} : vector<16x32xbf16>, vector<32x128xbf16>, vector<16x128xf32> -> vector<16x128xf32>
    %136 = arith.addf %130, %135 : vector<16x128xf32>
    %c0_35 = arith.constant 0 : index
    %c0_36 = arith.constant 0 : index
    %137 = vector.load %arg8[%c0_35, %c0_36] : memref<1x128xf32, #tpu.memory_space<vmem>>, vector<1x128xf32>
    %138 = vector.shape_cast %137 : vector<1x128xf32> to vector<128xf32>
    %139 = vector.shape_cast %138 : vector<128xf32> to vector<1x128xf32>
    %140 = vector.broadcast %139 : vector<1x128xf32> to vector<16x128xf32>
    %141 = arith.addf %136, %140 : vector<16x128xf32>
    %142 = arith.addf %3, %141 : vector<16x128xf32>
    %c0_37 = arith.constant 0 : index
    %c0_38 = arith.constant 0 : index
    %143 = vector.load %arg9[%c0_37, %c0_38] : memref<1x128xf32, #tpu.memory_space<vmem>>, vector<1x128xf32>
    %144 = vector.shape_cast %143 : vector<1x128xf32> to vector<128xf32>
    %c0_39 = arith.constant 0 : index
    %c0_40 = arith.constant 0 : index
    %145 = vector.load %arg10[%c0_39, %c0_40] : memref<1x128xf32, #tpu.memory_space<vmem>>, vector<1x128xf32>
    %146 = vector.shape_cast %145 : vector<1x128xf32> to vector<128xf32>
    %cst_41 = arith.constant dense<0.000000e+00> : vector<16xf32>
    %147 = vector.multi_reduction <add>, %142, %cst_41 [1] : vector<16x128xf32> to vector<16xf32>
    %148 = vector.shape_cast %147 : vector<16xf32> to vector<16x1xf32>
    %cst_42 = arith.constant 1.280000e+02 : f32
    %149 = vector.broadcast %cst_42 : f32 to vector<16x1xf32>
    %150 = arith.divf %148, %149 : vector<16x1xf32>
    %151 = vector.broadcast %150 : vector<16x1xf32> to vector<16x128xf32>
    %152 = arith.subf %142, %151 : vector<16x128xf32>
    %153 = arith.mulf %152, %152 : vector<16x128xf32>
    %cst_43 = arith.constant dense<0.000000e+00> : vector<16xf32>
    %154 = vector.multi_reduction <add>, %153, %cst_43 [1] : vector<16x128xf32> to vector<16xf32>
    %155 = vector.shape_cast %154 : vector<16xf32> to vector<16x1xf32>
    %cst_44 = arith.constant 1.280000e+02 : f32
    %156 = vector.broadcast %cst_44 : f32 to vector<16x1xf32>
    %157 = arith.divf %155, %156 : vector<16x1xf32>
    %158 = vector.broadcast %150 : vector<16x1xf32> to vector<16x128xf32>
    %159 = arith.subf %142, %158 : vector<16x128xf32>
    %cst_45 = arith.constant 9.99999974E-6 : f32
    %160 = vector.broadcast %cst_45 : f32 to vector<16x1xf32>
    %161 = arith.addf %157, %160 : vector<16x1xf32>
    %162 = math.rsqrt %161 : vector<16x1xf32>
    %163 = vector.broadcast %162 : vector<16x1xf32> to vector<16x128xf32>
    %164 = arith.mulf %159, %163 : vector<16x128xf32>
    %165 = vector.shape_cast %144 : vector<128xf32> to vector<1x128xf32>
    %166 = vector.broadcast %165 : vector<1x128xf32> to vector<16x128xf32>
    %167 = arith.mulf %164, %166 : vector<16x128xf32>
    %168 = vector.shape_cast %146 : vector<128xf32> to vector<1x128xf32>
    %169 = vector.broadcast %168 : vector<1x128xf32> to vector<16x128xf32>
    %170 = arith.addf %167, %169 : vector<16x128xf32>
    %171 = arith.truncf %170 : vector<16x128xf32> to vector<16x128xbf16>
    %c0_46 = arith.constant 0 : index
    %c0_47 = arith.constant 0 : index
    %172 = vector.load %arg11[%c0_46, %c0_47] : memref<128x512xbf16, #tpu.memory_space<vmem>>, vector<128x512xbf16>
    %cst_48 = arith.constant dense<0.000000e+00> : vector<16x512xf32>
    %173 = tpu.matmul %171, %172, %cst_48 {dimension_numbers = #tpu.dot_dimension_numbers<[1], [0], [0], [1], [0, 0, 1, 1], [], []>} : vector<16x128xbf16>, vector<128x512xbf16>, vector<16x512xf32> -> vector<16x512xf32>
    %c0_49 = arith.constant 0 : index
    %c0_50 = arith.constant 0 : index
    %174 = vector.load %arg12[%c0_49, %c0_50] : memref<1x512xf32, #tpu.memory_space<vmem>>, vector<1x512xf32>
    %175 = vector.shape_cast %174 : vector<1x512xf32> to vector<512xf32>
    %176 = vector.shape_cast %175 : vector<512xf32> to vector<1x512xf32>
    %177 = vector.broadcast %176 : vector<1x512xf32> to vector<16x512xf32>
    %178 = arith.addf %173, %177 : vector<16x512xf32>
    %cst_51 = arith.constant 1.702000e+00 : f32
    %179 = vector.broadcast %cst_51 : f32 to vector<16x512xf32>
    %180 = arith.mulf %179, %178 : vector<16x512xf32>
    %181 = arith.negf %180 : vector<16x512xf32>
    %182 = math.exp %181 : vector<16x512xf32>
    %cst_52 = arith.constant 1.000000e+00 : f32
    %183 = vector.broadcast %cst_52 : f32 to vector<16x512xf32>
    %184 = arith.addf %183, %182 : vector<16x512xf32>
    %185 = arith.divf %183, %184 : vector<16x512xf32>
    %186 = arith.mulf %178, %185 : vector<16x512xf32>
    %187 = arith.truncf %186 : vector<16x512xf32> to vector<16x512xbf16>
    %c0_53 = arith.constant 0 : index
    %c0_54 = arith.constant 0 : index
    %188 = vector.load %arg13[%c0_53, %c0_54] : memref<512x128xbf16, #tpu.memory_space<vmem>>, vector<512x128xbf16>
    %cst_55 = arith.constant dense<0.000000e+00> : vector<16x128xf32>
    %189 = tpu.matmul %187, %188, %cst_55 {dimension_numbers = #tpu.dot_dimension_numbers<[1], [0], [0], [1], [0, 0, 1, 1], [], []>} : vector<16x512xbf16>, vector<512x128xbf16>, vector<16x128xf32> -> vector<16x128xf32>
    %c0_56 = arith.constant 0 : index
    %c0_57 = arith.constant 0 : index
    %190 = vector.load %arg14[%c0_56, %c0_57] : memref<1x128xf32, #tpu.memory_space<vmem>>, vector<1x128xf32>
    %191 = vector.shape_cast %190 : vector<1x128xf32> to vector<128xf32>
    %192 = vector.shape_cast %191 : vector<128xf32> to vector<1x128xf32>
    %193 = vector.broadcast %192 : vector<1x128xf32> to vector<16x128xf32>
    %194 = arith.addf %189, %193 : vector<16x128xf32>
    %195 = arith.addf %142, %194 : vector<16x128xf32>
    %196 = vector.shape_cast %195 : vector<16x128xf32> to vector<2x8x128xf32>
    %c0_58 = arith.constant 0 : index
    %c0_59 = arith.constant 0 : index
    %c0_60 = arith.constant 0 : index
    %197 = vector.load %arg15[%c0_58, %c0_59, %c0_60] : memref<2x8x128xf32, #tpu.memory_space<vmem>>, vector<2x8x128xf32>
    tpu.vector_store %arg15[%c0_58, %c0_59, %c0_60], %196 {strides = array<i32>} : memref<2x8x128xf32, #tpu.memory_space<vmem>>, vector<2x8x128xf32>,
    return
  }
  func.func @transform_0(%arg0: i32) -> (i32, i32, i32) {
    %c0_i32 = arith.constant 0 : i32
    %c0_i32_0 = arith.constant 0 : i32
    %c0_i32_1 = arith.constant 0 : i32
    return %arg0, %c0_i32, %c0_i32_0 : i32, i32, i32
  }
  func.func @transform_1(%arg0: i32) -> (i32, i32, i32) {
    %c0_i32 = arith.constant 0 : i32
    %c0_i32_0 = arith.constant 0 : i32
    %c0_i32_1 = arith.constant 0 : i32
    return %arg0, %c0_i32, %c0_i32_0 : i32, i32, i32
  }
  func.func @transform_2(%arg0: i32) -> (i32, i32) {
    %c0_i32 = arith.constant 0 : i32
    %c0_i32_0 = arith.constant 0 : i32
    %c0_i32_1 = arith.constant 0 : i32
    return %c0_i32, %c0_i32_0 : i32, i32
  }
  func.func @transform_3(%arg0: i32) -> (i32, i32) {
    %c0_i32 = arith.constant 0 : i32
    %c0_i32_0 = arith.constant 0 : i32
    %c0_i32_1 = arith.constant 0 : i32
    return %c0_i32, %c0_i32_0 : i32, i32
  }
  func.func @transform_4(%arg0: i32) -> (i32, i32) {
    %c0_i32 = arith.constant 0 : i32
    %c0_i32_0 = arith.constant 0 : i32
    %c0_i32_1 = arith.constant 0 : i32
    return %c0_i32, %c0_i32_0 : i32, i32
  }
  func.func @transform_5(%arg0: i32) -> (i32, i32) {
    %c0_i32 = arith.constant 0 : i32
    %c0_i32_0 = arith.constant 0 : i32
    %c0_i32_1 = arith.constant 0 : i32
    return %c0_i32, %c0_i32_0 : i32, i32
  }
  func.func @transform_6(%arg0: i32) -> (i32, i32, i32) {
    %c0_i32 = arith.constant 0 : i32
    %c0_i32_0 = arith.constant 0 : i32
    %c0_i32_1 = arith.constant 0 : i32
    %c0_i32_2 = arith.constant 0 : i32
    return %c0_i32, %c0_i32_0, %c0_i32_1 : i32, i32, i32
  }
  func.func @transform_7(%arg0: i32) -> (i32, i32) {
    %c0_i32 = arith.constant 0 : i32
    %c0_i32_0 = arith.constant 0 : i32
    %c0_i32_1 = arith.constant 0 : i32
    return %c0_i32, %c0_i32_0 : i32, i32
  }
  func.func @transform_8(%arg0: i32) -> (i32, i32) {
    %c0_i32 = arith.constant 0 : i32
    %c0_i32_0 = arith.constant 0 : i32
    %c0_i32_1 = arith.constant 0 : i32
    return %c0_i32, %c0_i32_0 : i32, i32
  }
  func.func @transform_9(%arg0: i32) -> (i32, i32) {
    %c0_i32 = arith.constant 0 : i32
    %c0_i32_0 = arith.constant 0 : i32
    %c0_i32_1 = arith.constant 0 : i32
    return %c0_i32, %c0_i32_0 : i32, i32
  }
  func.func @transform_10(%arg0: i32) -> (i32, i32) {
    %c0_i32 = arith.constant 0 : i32
    %c0_i32_0 = arith.constant 0 : i32
    %c0_i32_1 = arith.constant 0 : i32
    return %c0_i32, %c0_i32_0 : i32, i32
  }
  func.func @transform_11(%arg0: i32) -> (i32, i32) {
    %c0_i32 = arith.constant 0 : i32
    %c0_i32_0 = arith.constant 0 : i32
    %c0_i32_1 = arith.constant 0 : i32
    return %c0_i32, %c0_i32_0 : i32, i32
  }
  func.func @transform_12(%arg0: i32) -> (i32, i32) {
    %c0_i32 = arith.constant 0 : i32
    %c0_i32_0 = arith.constant 0 : i32
    %c0_i32_1 = arith.constant 0 : i32
    return %c0_i32, %c0_i32_0 : i32, i32
  }
  func.func @transform_13(%arg0: i32) -> (i32, i32) {
    %c0_i32 = arith.constant 0 : i32
    %c0_i32_0 = arith.constant 0 : i32
    %c0_i32_1 = arith.constant 0 : i32
    return %c0_i32, %c0_i32_0 : i32, i32
  }
  func.func @transform_14(%arg0: i32) -> (i32, i32, i32) {
    %c0_i32 = arith.constant 0 : i32
    %c0_i32_0 = arith.constant 0 : i32
    %c0_i32_1 = arith.constant 0 : i32
    return %arg0, %c0_i32, %c0_i32_0 : i32, i32, i32
  }
}

</mosaic_0001>

<bundles_post_ra>
// kernel: tpu_custom_call.1
= control target key start
LH: loop header
LB: loop body
LE: loop exit
PB: predicated region body
PF: predicated region fallthrough
CT: control target
= control target key end

     0   :  { %19 = vsyncpa [#allocation3], 0  ;;  %s3283_s0 = inlined_call_operand.hbm [shape: f32[2,8,128], index: 0, kind: input, shape index: {}]   ;;  %s3284_s1 = inlined_call_operand.hbm [shape: bf16[2,8,8], index: 1, kind: input, shape index: {}]   ;;  %s3285_s2 = inlined_call_operand.hbm [shape: f32[1,128], index: 2, kind: input, shape index: {}]   ;;  %s3286_s3 = inlined_call_operand.hbm [shape: f32[1,128], index: 3, kind: input, shape index: {}]   ;;  %s3287_s4 = inlined_call_operand.hbm [shape: bf16[128,384], index: 4, kind: input, shape index: {}]   ;;  %s3288_s5 = inlined_call_operand.vmem [shape: f32[1,384], index: 5, kind: input, shape index: {}]   ;;  %s3289_s6 = inlined_call_operand.hbm [shape: bf16[4,32,128], index: 6, kind: input, shape index: {}]   ;;  %s3290_s7 = inlined_call_operand.hbm [shape: f32[1,128], index: 7, kind: input, shape index: {}]   ;;  %s3291_s8 = inlined_call_operand.hbm [shape: f32[1,128], index: 8, kind: input, shape index: {}]   ;;  %s3292_s9 = inlined_call_operand.vmem [shape: f32[1,128], index: 9, kind: input, shape index: {}]   ;;  %s3293_s10 = inlined_call_operand.hbm [shape: bf16[128,512], index: 10, kind: input, shape index: {}]   ;;  %s3294_s11 = inlined_call_operand.vmem [shape: f32[1,512], index: 11, kind: input, shape index: {}]   ;;  %s3295_s12 = inlined_call_operand.hbm [shape: bf16[512,128], index: 12, kind: input, shape index: {}]   ;;  %s3296_s13 = inlined_call_operand.vmem [shape: f32[1,128], index: 13, kind: input, shape index: {}]   ;;  %s3297_s14 = inlined_call_operand.hbm [shape: f32[2,8,128], index: 14, kind: output, shape index: {}]  }
   0x1   :  { %20 = vsyncpa [#allocation6], 0 }
   0x2   :  { %21 = vsyncpa [#allocation9], 0 }
   0x3   :  { %22 = vsyncpa [#allocation12], 0 }
   0x4   :  { %23 = vsyncpa [#allocation15], 0 }
   0x5   :  { %24 = vsyncpa [#allocation18], 0  ;;  %s43_s15 = sshll.u32 %s3284_s1, 4  ;;  %s44_s15 = int_to_ptr.hbm [resolvable:$true] %s43_s15 }
   0x6   :  { %25 = vsyncpa [#allocation4], 0  ;;  %s2826_s16 = smov [#allocation5]   ;;  %s68_s20 = sshll.u32 %s3286_s3, 4  ;;  %s69_s20 = int_to_ptr.hbm [resolvable:$true] %s68_s20 }
   0x7   :  { %s45_s17 = sshll.u32 %s2826_s16, 4  ;;  %s2827_s21 = smov 64   ;;  %s46_s17 = int_to_ptr.vmem [resolvable:$true] %s45_s17 }
   0x8   :  { %s2828_s22 = smov 4   ;;  %s2829_s23 = smov [#allocation8]  }
   0x9   :  { %51 = dma.hbm_to_vmem [thread:$0]  %s44_s15, 128, %s46_s17, [#allocation6], %s2827_s21, %s2827_s21, %s2828_s22  }
   0xa   :  { %s70_s24 = sshll.u32 %s2829_s23, 4  ;;  %s93_s26 = sshll.u32 %s3289_s6, 4  ;;  %s71_s24 = int_to_ptr.vmem [resolvable:$true] %s70_s24  ;;  %s94_s26 = int_to_ptr.hbm [resolvable:$true] %s93_s26 }
   0xb   :  { %73 = dma.hbm_to_vmem [thread:$0]  %s69_s20, 16, %s71_s24, [#allocation9]  }
   0xc   :  { %s118_s3 = sshll.u32 %s3291_s8, 4  ;;  %s2830_s29 = smov [#allocation11]   ;;  %s119_s3 = int_to_ptr.hbm [resolvable:$true] %s118_s3 }
   0xd   :  { %s95_s30 = sshll.u32 %s2830_s29, 4  ;;  %s2831_s15 = smov [#allocation14]   ;;  %s96_s30 = int_to_ptr.vmem [resolvable:$true] %s95_s30 }
   0xe   :  { %101 = dma.hbm_to_vmem [thread:$0]  %s94_s26, 1024, %s96_s30, [#allocation12], %s2827_s21, %s2827_s21, %s2828_s22  }
   0xf   :  { %s120_s16 = sshll.u32 %s2831_s15, 4  ;;  %s30_s6 = sshll.u32 %s3283_s0, 4  ;;  %s121_s16 = int_to_ptr.vmem [resolvable:$true] %s120_s16  ;;  %s31_s6 = int_to_ptr.hbm [resolvable:$true] %s30_s6 }
  0x10   :  { %123 = dma.hbm_to_vmem [thread:$0]  %s119_s3, 16, %s121_s16, [#allocation15]  }
  0x11   :  { %s2832_s19 = smov [#allocation2]   ;;  %s57_s24 = sshll.u32 %s3285_s2, 4  ;;  %s58_s24 = int_to_ptr.hbm [resolvable:$true] %s57_s24 }
  0x12   :  { %s32_s20 = sshll.u32 %s2832_s19, 4  ;;  %s2833_s25 = smov 128   ;;  %s33_s20 = int_to_ptr.vmem [resolvable:$true] %s32_s20 }
  0x13   :  { %s2834_s1 = smov 8   ;;  %s2835_s26 = smov [#allocation7]  }
  0x14   :  { %38 = dma.hbm_to_vmem [thread:$0]  %s31_s6, 256, %s33_s20, [#allocation3], %s2833_s25, %s2833_s25, %s2834_s1  }
  0x15   :  { %s59_s27 = sshll.u32 %s2835_s26, 4  ;;  %s78_s3 = sshll.u32 %s3287_s4, 4  ;;  %s60_s27 = int_to_ptr.vmem [resolvable:$true] %s59_s27  ;;  %s79_s3 = int_to_ptr.hbm [resolvable:$true] %s78_s3 }
  0x16   :  { %62 = dma.hbm_to_vmem [thread:$0]  %s58_s24, 16, %s60_s27, [#allocation6]  }
  0x17   :  { %s2836_s29 = smov [#allocation10]   ;;  %s107_s16 = sshll.u32 %s3290_s7, 4  ;;  %s108_s16 = int_to_ptr.hbm [resolvable:$true] %s107_s16 }
  0x18   :  { %s80_s30 = sshll.u32 %s2836_s29, 4  ;;  %s2837_s17 = smov 192   ;;  %s81_s30 = int_to_ptr.vmem [resolvable:$true] %s80_s30 }
  0x19   :  { %s2838_s18 = smov 12   ;;  %s2839_s6 = smov [#allocation13]  }
  0x1a   :  { %86 = dma.hbm_to_vmem [thread:$0]  %s79_s3, 3072, %s81_s30, [#allocation9], %s2837_s17, %s2837_s17, %s2838_s18  }
  0x1b   :  { %s109_s19 = sshll.u32 %s2839_s6, 4  ;;  %s130_s4 = sshll.u32 %s3293_s10, 4  ;;  %s110_s19 = int_to_ptr.vmem [resolvable:$true] %s109_s19  ;;  %s131_s4 = int_to_ptr.hbm [resolvable:$true] %s130_s4 }
  0x1c   :  { %112 = dma.hbm_to_vmem [thread:$0]  %s108_s16, 16, %s110_s19, [#allocation12]  }
  0x1d   :  { %s2840_s23 = smov [#allocation16]   ;;  %s145_s7 = sshll.u32 %s3295_s12, 4  ;;  %s146_s7 = int_to_ptr.hbm [resolvable:$true] %s145_s7 }
  0x1e   :  { %s132_s24 = sshll.u32 %s2840_s23, 4  ;;  %s2841_s0 = smov 256   ;;  %s133_s24 = int_to_ptr.vmem [resolvable:$true] %s132_s24 }
  0x1f   :  { %s2842_s28 = smov 16   ;;  %s2843_s3 = smov [#allocation17]  }
  0x20   :  { %138 = dma.hbm_to_vmem [thread:$0]  %s131_s4, 4096, %s133_s24, [#allocation15], %s2841_s0, %s2841_s0, %s2842_s28  }
  0x21   :  { %s147_s29 = sshll.u32 %s2843_s3, 4  ;;  %s148_s29 = int_to_ptr.vmem [resolvable:$true] %s147_s29 }
  0x22   :  { %153 = dma.hbm_to_vmem [thread:$0]  %s146_s7, 4096, %s148_s29, [#allocation18], %s2827_s21, %s2827_s21, %s2828_s22  }
  0x23   :  { %2812 = dma.done.wait [#allocation3], 256  }
  0x24   :  { %2813 = vsyncadd [#allocation3], 4294967040 }
  0x25   :  { %2814 = dma.done.wait [#allocation6], 144  }
  0x26   :  { %2815 = vsyncadd [#allocation6], 4294967152 }
  0x27   :  { %2816 = dma.done.wait [#allocation9], 3088  }
  0x28   :  { %2817 = vsyncadd [#allocation9], 4294964208 }
  0x29   :  { %2818 = dma.done.wait [#allocation12], 1040  }
  0x2a   :  { %2819 = vsyncadd [#allocation12], 4294966256 }
  0x2b   :  { %2820 = dma.done.wait [#allocation15], 4112  }
  0x2c   :  { %2821 = vsyncadd [#allocation15], 4294963184 }
  0x2d   :  { %2822 = dma.done.wait [#allocation18], 4096  }
  0x2e   :  { %2823 = vsyncadd [#allocation18], 4294963200  ;;  %v2965_v0 = vld [vmem:[#allocation2] sm:$0xff]  ;;  %v2968_v1 = vld [vmem:[#allocation2 + $0x8] sm:$0xff]  ;;  %v2844_v2 = vmov 128.0   ;;  %vm521_vm7 = vcmask 261120  }
  0x2f   :  { %205 = vadd.xlane.f32.xlu0 %v2965_v0  ;;  %2474 = vrcp.f32 %v2844_v2  ;;  %v2020_v17 = vld [vmem:[#allocation10 + $0xa8] sm:$0xf]  ;;  %v2368_v18 = vld [vmem:[#allocation10 + $0xb0] sm:$0xf0]  ;;  %v2367_v19 = vld [vmem:[#allocation10 + $0xac] sm:$0xf] }
  0x30   :  { %v2021_v20 = vor.u32 %v2368_v18, %v2020_v17  ;;  %v2022_v21 = vld [vmem:[#allocation10 + $0xb4] sm:$0xf0]  ;;  %v2028_v22 = vld [vmem:[#allocation10 + $0xb0] sm:$0xf]  ;;  %v2369_v23 = vld [vmem:[#allocation10 + $0xb8] sm:$0xf0] }
  0x31   :  { %v2025_v24 = vor.u32 %v2367_v19, %v2022_v21  ;;  %v2029_v25 = vor.u32 %v2369_v23, %v2028_v22  ;;  %v2008_v26 = vld [vmem:[#allocation10 + $0x90] sm:$0xf]  ;;  %v2365_v27 = vld [vmem:[#allocation10 + $0x98] sm:$0xf0]  ;;  %v2364_v28 = vld [vmem:[#allocation10 + $0x94] sm:$0xf] }
  0x32   :  { %431 = vmatpush.bf16.msra.mxu0 %v2021_v20  ;;  %v2009_v29 = vor.u32 %v2365_v27, %v2008_v26  ;;  %v2010_v30 = vld [vmem:[#allocation10 + $0x9c] sm:$0xf0]  ;;  %v2016_v31 = vld [vmem:[#allocation10 + $0x98] sm:$0xf]  ;;  %v2366_v32 = vld [vmem:[#allocation10 + $0xa0] sm:$0xf0] }
  0x33   :  { %445 = vmatpush.bf16.msra.mxu1 %v2025_v24  ;;  %459 = vmatpush.bf16.msra.mxu2 %v2029_v25  ;;  %v2013_v33 = vor.u32 %v2364_v28, %v2010_v30  ;;  %v2017_v34 = vor.u32 %v2366_v32, %v2016_v31  ;;  %v1996_v35 = vld [vmem:[#allocation10 + $0x78] sm:$0xf]  ;;  %v2362_v36 = vld [vmem:[#allocation10 + $0x80] sm:$0xf0]  ;;  %v2361_v37 = vld [vmem:[#allocation10 + $0x7c] sm:$0xf] }
  0x34   :  { %v1997_v38 = vor.u32 %v2362_v36, %v1996_v35  ;;  %v1998_v39 = vld [vmem:[#allocation10 + $0x84] sm:$0xf0]  ;;  %v2004_v40 = vld [vmem:[#allocation10 + $0x80] sm:$0xf]  ;;  %v2363_v41 = vld [vmem:[#allocation10 + $0x88] sm:$0xf0] }
  0x35   :  { %v2475_v3 = vpop.eup %2474  ;;  %v2001_v42 = vor.u32 %v2361_v37, %v1998_v39  ;;  %v2005_v43 = vor.u32 %v2363_v41, %v2004_v40  ;;  %v1984_v44 = vld [vmem:[#allocation10 + $0x60] sm:$0xf]  ;;  %v2359_v45 = vld [vmem:[#allocation10 + $0x68] sm:$0xf0]  ;;  %v2358_v46 = vld [vmem:[#allocation10 + $0x64] sm:$0xf] }
  0x36   :  { %v210_v4 = vmul.f32 128.0, %v2475_v3  ;;  %vm214_vm0 = vweird.f32 %v2475_v3  ;;  %432 = vmatpush.bf16.msra.mxu0 %v2009_v29  ;;  %v1985_v47 = vor.u32 %v2359_v45, %v1984_v44  ;;  %v1986_v48 = vld [vmem:[#allocation10 + $0x6c] sm:$0xf0]  ;;  %v1992_v49 = vld [vmem:[#allocation10 + $0x68] sm:$0xf]  ;;  %s2845_s22 = smov 96  }
  0x37   :  { %207 = vadd.xlane.f32.xlu0 %v2968_v1  ;;  %446 = vmatpush.bf16.msra.mxu1 %v2013_v33  ;;  %v2360_v50 = vld [vmem:[#allocation10 + $0x70] sm:$0xf0]  ;;  %v1989_v51 = vor.u32 %v2358_v46, %v1986_v48  ;;  %v1972_v53 = vld [vmem:[#allocation10 + $0x48] sm:$0xf]  ;;  %v2355_v55 = vld [vmem:[#allocation10 + $0x4c] sm:$0xf] }
  0x38   :  { %v211_v5 = vsub.f32 1.0, %v210_v4  ;;  %460 = vmatpush.bf16.msra.mxu2 %v2017_v34  ;;  %v1993_v52 = vor.u32 %v2360_v50, %v1992_v49  ;;  %v2356_v54 = vld [vmem:[#allocation10 + $0x50] sm:$0xf0]  ;;  %v1974_v57 = vld [vmem:[#allocation10 + $0x54] sm:$0xf0]  ;;  %vm766_vm8 = vcmask 1043456  }
  0x39   :  { %v1973_v56 = vor.u32 %v2356_v54, %v1972_v53  ;;  %v1980_v58 = vld [vmem:[#allocation10 + $0x50] sm:$0xf]  ;;  %v2357_v59 = vld [vmem:[#allocation10 + $0x58] sm:$0xf0]  ;;  %v1977_v60 = vor.u32 %v2355_v55, %v1974_v57  ;;  %v2352_v2 = vld [vmem:[#allocation10 + $0x34] sm:$0xf] }
  0x3a   :  { %v212_v6 = vmul.f32 %v2475_v3, %v211_v5  ;;  %433 = vmatpush.bf16.msra.mxu0 %v1997_v38  ;;  %v1981_v61 = vor.u32 %v2357_v59, %v1980_v58  ;;  %v1960_v62 = vld [vmem:[#allocation10 + $0x30] sm:$0xf]  ;;  %v2353_v63 = vld [vmem:[#allocation10 + $0x38] sm:$0xf0]  ;;  %v1962_v4 = vld [vmem:[#allocation10 + $0x3c] sm:$0xf0] }
  0x3b   :  { %447 = vmatpush.bf16.msra.mxu1 %v2001_v42  ;;  %v1968_v5 = vld [vmem:[#allocation10 + $0x38] sm:$0xf]  ;;  %v1956_v17 = vld [vmem:[#allocation10 + $0x20] sm:$0xf]  ;;  %v2351_v18 = vld [vmem:[#allocation10 + $0x28] sm:$0xf0] }
  0x3c   :  { %v213_v7 = vadd.f32 %v2475_v3, %v212_v6  ;;  %461 = vmatpush.bf16.msra.mxu2 %v2005_v43  ;;  %v2354_v6 = vld [vmem:[#allocation10 + $0x40] sm:$0xf0]  ;;  %v1957_v20 = vor.u32 %v2351_v18, %v1956_v17  ;;  %v1936_v21 = vld [vmem:[#allocation10] sm:$0xf]  ;;  %v2347_v22 = vld [vmem:[#allocation10 + $0x8] sm:$0xf0] }
  0x3d   :  { %v2346_v23 = vld [vmem:[#allocation10 + $0x4] sm:$0xf]  ;;  %v1937_v25 = vor.u32 %v2347_v22, %v1936_v21  ;;  %v1938_v26 = vld [vmem:[#allocation10 + $0xc] sm:$0xf0]  ;;  %v1944_v27 = vld [vmem:[#allocation10 + $0x8] sm:$0xf] }
  0x3e   :  { %v2971_v8 = vsel %vm214_vm0, %v2475_v3, %v213_v7  ;;  %434 = vmatpush.bf16.msra.mxu0 %v1985_v47  ;;  %v1961_v3 = vor.u32 %v2353_v63, %v1960_v62  ;;  %v1965_v7 = vor.u32 %v2352_v2, %v1962_v4  ;;  %v2348_v28 = vld [vmem:[#allocation10 + $0x10] sm:$0xf0]  ;;  %v1941_v30 = vor.u32 %v2346_v23, %v1938_v26  ;;  %v2468_v49 = vld [vmem:[#allocation7] ss:$0 sm:$0xff]  ;;  %v2469_v54 = vld [vmem:[#allocation8] ss:$0 sm:$0xff] }
  0x3f   :  { %448 = vmatpush.bf16.msra.mxu1 %v1989_v51  ;;  %v1945_v31 = vor.u32 %v2348_v28, %v1944_v27  ;;  %vm682_vm9 = vcmask 64512   ;;  %s2847_s16 = smov [#allocation19]   ;;  %s1916_s6 = sshll.u32 %s3297_s14, 4  ;;  %s1917_s6 = int_to_ptr.hbm [resolvable:$true] %s1916_s6 }
  0x40   :  { %462 = vmatpush.bf16.msra.mxu2 %v1993_v52  ;;  %s1914_s17 = sshll.u32 %s2847_s16, 4  ;;  %s1915_s17 = int_to_ptr.vmem [resolvable:$true] %s1914_s17 }
  0x42   :  { %435 = vmatpush.bf16.msra.mxu0 %v1973_v56 }
  0x43   :  { %449 = vmatpush.bf16.msra.mxu1 %v1977_v60 }
  0x44   :  { %463 = vmatpush.bf16.msra.mxu2 %v1981_v61 }
  0x46   :  { %436 = vmatpush.bf16.msra.mxu0 %v1961_v3 }
  0x47   :  { %450 = vmatpush.bf16.msra.mxu1 %v1965_v7 }
  0xa2   :  { %v206_v9 = vpop.xlane.xlu0 %205 }
  0xa3   :  { %v216_v10 = vmul.f32 %v2971_v8, %v206_v9  ;;  %v1969_v9 = vor.u32 %v2354_v6, %v1968_v5 }
  0xa5   :  { %v2975_v11 = vsub.f32 %v2965_v0, %v216_v10  ;;  %464 = vmatpush.bf16.msra.mxu2 %v1969_v9  ;;  %v1948_v10 = vld [vmem:[#allocation10 + $0x18] sm:$0xf] }
  0xa7   :  { %v220_v12 = vmul.f32 %v2975_v11, %v2975_v11 }
  0xa9   :  { %222 = vadd.xlane.f32.xlu1 %v220_v12  ;;  %v2350_v12 = vld [vmem:[#allocation10 + $0x20] sm:$0xf0]  ;;  %465 = vmatpush.bf16.msra.mxu2 %v1957_v20 }
  0xaa   :  { %v208_v13 = vpop.xlane.xlu0 %207 }
  0xab   :  { %v217_v14 = vmul.f32 %v2971_v8, %v208_v13  ;;  %v2349_v13 = vld [vmem:[#allocation10 + $0x1c] sm:$0xf] }
  0xad   :  { %v2981_v15 = vsub.f32 %v2968_v1, %v217_v14  ;;  %v1949_v14 = vor.u32 %v2350_v12, %v1948_v10  ;;  %466 = vmatpush.bf16.msra.mxu2 %v1945_v31 }
  0xaf   :  { %v221_v16 = vmul.f32 %v2981_v15, %v2981_v15  ;;  %437 = vmatpush.bf16.msra.mxu0 %v1949_v14 }
  0xb1   :  { %224 = vadd.xlane.f32.xlu1 %v221_v16  ;;  %v1950_v16 = vld [vmem:[#allocation10 + $0x24] sm:$0xf0] }
  0xb2   :  { %v1953_v19 = vor.u32 %v2349_v13, %v1950_v16 }
  0xb3   :  { %438 = vmatpush.bf16.msra.mxu0 %v1937_v25 }
  0xb4   :  { %451 = vmatpush.bf16.msra.mxu1 %v1953_v19 }
  0xb8   :  { %452 = vmatpush.bf16.msra.mxu1 %v1941_v30 }
 0x11c   :  { %v223_v24 = vpop.xlane.xlu1 %222 }
 0x11d   :  { %v226_v29 = vmul.f32 %v223_v24, %v2971_v8 }
 0x11f   :  { %v228_v32 = vadd.f32 1e-05, %v226_v29 }
 0x121   :  { %2476 = vrsqrt.f32 %v228_v32  ;;  %vm236_vm2 = vweird.f32 %v228_v32 }
 0x124   :  { %v225_v33 = vpop.xlane.xlu1 %224 }
 0x125   :  { %v227_v34 = vmul.f32 %v225_v33, %v2971_v8 }
 0x127   :  { %v2477_v35 = vpop.eup %2476  ;;  %v229_v36 = vadd.f32 1e-05, %v227_v34 }
 0x128   :  { %v231_v37 = vmul.f32 %v2477_v35, %v228_v32  ;;  %vm237_vm1 = vweird.f32 %v2477_v35 }
 0x129   :  { %2478 = vrsqrt.f32 %v229_v36  ;;  %vm238_vm3 = vmor %vm236_vm2, %vm237_vm1  ;;  %vm246_vm5 = vweird.f32 %v229_v36 }
 0x12a   :  { %v232_v38 = vmul.f32 %v2477_v35, %v231_v37 }
 0x12c   :  { %v233_v39 = vmul.f32 0.5, %v232_v38  ;;  %v2443_v38 = vld [vmem:[#allocation5] sm:$0xff]  }
 0x12e   :  { %v234_v40 = vsub.f32 1.5, %v233_v39  ;;  %v2444_v39 = vunpack.c.l.bf16 %v2443_v38 }
 0x12f   :  { %v2479_v41 = vpop.eup %2478 }
 0x130   :  { %v235_v42 = vmul.f32 %v2477_v35, %v234_v40  ;;  %v241_v43 = vmul.f32 %v2479_v41, %v229_v36  ;;  %vm247_vm4 = vweird.f32 %v2479_v41 }
 0x131   :  { %vm248_vm6 = vmor %vm246_vm5, %vm247_vm4 }
 0x132   :  { %v242_v44 = vmul.f32 %v2479_v41, %v241_v43  ;;  %v239_v45 = vsel %vm238_vm3, %v2477_v35, %v235_v42 }
 0x133   :  { %v250_v48 = vmul.f32 %v239_v45, %v2975_v11  ;;  %v295_v11 = vld [vmem:[%s3288_s5] sm:$0x7]  ;;  %s2846_s5 = smov 32  }
 0x134   :  { %v243_v46 = vmul.f32 0.5, %v242_v44  ;;  %v298_v59 = vperm.slane %v295_v11, 1  ;;  %v297_v63 = vperm.slane %v295_v11, 0  ;;  %v299_v22 = vperm.slane %v295_v11, 2 }
 0x135   :  { %v255_v53 = vmul.f32 %v2468_v49, %v250_v48  ;;  %v2445_v48 = vunpack.c.h.bf16 %v2443_v38 }
 0x136   :  { %v244_v47 = vsub.f32 1.5, %v243_v46 }
 0x137   :  { %v260_v56 = vadd.f32 %v2469_v54, %v255_v53 }
 0x138   :  { %v245_v50 = vmul.f32 %v2479_v41, %v244_v47 }
 0x13a   :  { %v249_v51 = vsel %vm248_vm6, %v2479_v41, %v245_v50 }
 0x13b   :  { %v251_v52 = vmul.f32 %v249_v51, %v2981_v15 }
 0x13d   :  { %v256_v55 = vmul.f32 %v2468_v49, %v251_v52 }
 0x13f   :  { %v261_v57 = vadd.f32 %v2469_v54, %v256_v55 }
 0x141   :  { %v262_v58 = vpack.c.bf16 %v261_v57, %v260_v56 }
 0x143   :  { %439 = vmatmul.bf16.vlgmr.msra.gmra.mxu0 %v262_v58  ;;  %453 = vmatmul.bf16.vlgmr.msra.gmra.mxu1 %v262_v58 }
 0x144   :  { %467 = vmatmul.bf16.vlgmr.msra.gmra.mxu2 %v262_v58 }
 0x1c0   :  { %v454_v60 = vpop.f32.mrf.mxu1  ;;  %v440_v15 = vpop.f32.mrf.mxu0 }
 0x1c1   :  { %v455_v61 = vadd.f32 %v454_v60, %v298_v59  ;;  %v441_v3 = vadd.f32 %v440_v15, %v297_v63 }
 0x1c3   :  { %v489_v62 = vpack.c.bf16 %v455_v61, %v455_v61  ;;  %v473_v7 = vpack.c.bf16 %v441_v3, %v441_v3 }
 0x1c5   :  { %493 = vrot.lane.b32.xlu2 %v489_v62, %s2845_s22  ;;  %v526_v2 = vsel %vm521_vm7, %v489_v62, 0 }
 0x1c6   :  { %535 = vmatpush.bf16.xpose.msra.mxu3 %v526_v2 }
 0x1c7   :  { %v468_v18 = vpop.f32.mrf.mxu2 }
 0x1c8   :  { %v456_v4 = vpop.f32.mrf.mxu1  ;;  %v442_v10 = vpop.f32.mrf.mxu0  ;;  %v469_v31 = vadd.f32 %v468_v18, %v299_v22 }
 0x1c9   :  { %v457_v5 = vadd.f32 %v456_v4, %v298_v59  ;;  %v443_v12 = vadd.f32 %v442_v10, %v297_v63 }
 0x1ca   :  { %v3017_v33 = vpack.c.bf16 %v469_v31, %v469_v31 }
 0x1cb   :  { %v490_v6 = vpack.c.bf16 %v457_v5, %v457_v5  ;;  %v474_v13 = vpack.c.bf16 %v443_v12, %v443_v12 }
 0x1cc   :  { %v768_v37 = vsel %vm766_vm8, %v3017_v33, 0 }
 0x1cd   :  { %495 = vrot.lane.b32.xlu1 %v490_v6, %s2845_s22  ;;  %499 = vrot.lane.b32.xlu0 %v490_v6, %s2827_s21  ;;  %v545_v9 = vsel %vm521_vm7, %v490_v6, 0 }
 0x1ce   :  { %477 = vrot.lane.b32.xlu2 %v473_v7, %s2845_s22  ;;  %2030 = vmatmul.msk.bf16.vlgmr.msra.gmra.mxu3 %vm521_vm7, %v473_v7 }
 0x1cf   :  { %554 = vmatpush.bf16.xpose.msrb.mxu3 %v545_v9  ;;  %v470_v21 = vpop.f32.mrf.mxu2 }
 0x1d0   :  { %v471_v24 = vadd.f32 %v470_v21, %v299_v22 }
 0x1d2   :  { %v3011_v25 = vpack.c.bf16 %v471_v24, %v471_v24 }
 0x1d4   :  { %v787_v32 = vsel %vm766_vm8, %v3011_v25, 0 }
 0x1d5   :  { %497 = vrot.lane.b32.xlu0 %v489_v62, %s2827_s21  ;;  %481 = vrot.lane.b32.xlu1 %v473_v7, %s2827_s21 }
 0x1d6   :  { %501 = vrot.lane.b32.xlu2 %v489_v62, %s2846_s5 }
 0x1dd   :  { %503 = vrot.lane.b32.xlu0 %v490_v6, %s2846_s5 }
 0x1de   :  { %483 = vrot.lane.b32.xlu2 %v474_v13, %s2827_s21  ;;  %2031 = vmatmul.msk.bf16.vlgmr.msrb.gmra.mxu3 %vm521_vm7, %v474_v13 }
 0x1e6   :  { %479 = vrot.lane.b32.xlu2 %v474_v13, %s2845_s22 }
 0x1ee   :  { %485 = vrot.lane.b32.xlu2 %v473_v7, %s2846_s5 }
 0x1f6   :  { %487 = vrot.lane.b32.xlu2 %v474_v13, %s2846_s5 }
 0x21f   :  { %v494_v14 = vpop.permute.xlu2 %493 }
 0x220   :  { %v564_v16 = vsel %vm521_vm7, %v494_v14, 0 }
 0x221   :  { %573 = vmatpush.bf16.xpose.msra.mxu3 %v564_v16 }
 0x228   :  { %v478_v17 = vpop.permute.xlu2 %477 }
 0x229   :  { %2032 = vmatmul.msk.bf16.vlgmr.msra.gmra.mxu3 %vm521_vm7, %v478_v17 }
 0x230   :  { %v502_v19 = vpop.permute.xlu2 %501 }
 0x231   :  { %v640_v20 = vsel %vm521_vm7, %v502_v19, 0 }
 0x232   :  { %649 = vmatpush.bf16.xpose.msrb.mxu3 %v640_v20 }
 0x238   :  { %v484_v23 = vpop.permute.xlu2 %483 }
 0x23f   :  { %v496_v26 = vpop.permute.xlu1 %495  ;;  %v500_v27 = vpop.permute.xlu0 %499 }
 0x240   :  { %v480_v28 = vpop.permute.xlu2 %479  ;;  %v583_v29 = vsel %vm521_vm7, %v496_v26, 0  ;;  %v621_v30 = vsel %vm521_vm7, %v500_v27, 0 }
 0x241   :  { %592 = vmatpush.bf16.xpose.msrb.mxu0 %v583_v29  ;;  %630 = vmatpush.bf16.xpose.msrb.mxu2 %v621_v30 }
 0x247   :  { %v498_v34 = vpop.permute.xlu0 %497  ;;  %v482_v40 = vpop.permute.xlu1 %481 }
 0x248   :  { %v486_v35 = vpop.permute.xlu2 %485  ;;  %2033 = vmatmul.msk.bf16.vlgmr.msrb.gmra.mxu0 %vm521_vm7, %v480_v28  ;;  %2035 = vmatmul.msk.bf16.vlgmr.msrb.gmra.mxu2 %vm521_vm7, %v484_v23  ;;  %v602_v36 = vsel %vm521_vm7, %v498_v34, 0 }
 0x249   :  { %796 = vmatpush.bf16.msra.mxu2 %v787_v32  ;;  %2036 = vmatmul.msk.bf16.vlgmr.msrb.gmra.mxu3 %vm521_vm7, %v486_v35 }
 0x24a   :  { %611 = vmatpush.bf16.xpose.msrb.mxu1 %v602_v36 }
 0x24f   :  { %v504_v41 = vpop.permute.xlu0 %503 }
 0x250   :  { %v659_v42 = vsel %vm521_vm7, %v504_v41, 0  ;;  %v488_v46 = vpop.permute.xlu2 %487 }
 0x251   :  { %2034 = vmatmul.msk.bf16.vlgmr.msrb.gmra.mxu1 %vm521_vm7, %v482_v40  ;;  %v537_v43 = vpop.f32.mrf.mxu3  ;;  %668 = vmatpush.bf16.xpose.msra.mxu0 %v659_v42 }
 0x252   :  { %777 = vmatpush.bf16.msra.mxu1 %v768_v37  ;;  %v674_v44 = vadd.f32 %v2444_v39, %v537_v43 }
 0x254   :  { %v683_v45 = vsel %vm682_vm9, %v674_v44, -inf }
 0x255   :  { %684 = vmax.xlane.f32.xlu0 %v683_v45 }
 0x258   :  { %2037 = vmatmul.msk.bf16.vlgmr.msra.gmra.mxu0 %vm521_vm7, %v488_v46 }
 0x259   :  { %v539_v47 = vpop.f32.mrf.mxu3 }
 0x261   :  { %v556_v49 = vpop.f32.mrf.mxu3 }
 0x262   :  { %v675_v50 = vadd.f32 %v2445_v48, %v556_v49 }
 0x264   :  { %v686_v51 = vsel %vm682_vm9, %v675_v50, -inf }
 0x265   :  { %687 = vmax.xlane.f32.xlu1 %v686_v51 }
 0x269   :  { %511 = vrot.lane.b32.xlu0 %v3011_v25, %s2845_s22  ;;  %v558_v52 = vpop.f32.mrf.mxu3 }
 0x2ac   :  { %v575_v53 = vpop.f32.mrf.mxu3 }
 0x2ad   :  { %v676_v54 = vadd.f32 %v2444_v39, %v575_v53 }
 0x2af   :  { %v689_v55 = vsel %vm682_vm9, %v676_v54, -inf }
 0x2b0   :  { %690 = vmax.xlane.f32.xlu2 %v689_v55 }
 0x2b4   :  { %v577_v56 = vpop.f32.mrf.mxu3 }
 0x2c5   :  { %v594_v57 = vpop.f32.mrf.mxu0 }
 0x2c6   :  { %v677_v7 = vadd.f32 %v2445_v48, %v594_v57 }
 0x2c8   :  { %v685_v58 = vpop.xlane.xlu0 %684  ;;  %509 = vrot.lane.b32.xlu2 %v3017_v33, %s2845_s22  ;;  %v692_v16 = vsel %vm682_vm9, %v677_v7, -inf }
 0x2c9   :  { %v707_v11 = vsub.f32 %v674_v44, %v685_v58 }
 0x2cb   :  { %v715_v59 = vmul.f32 1.442695, %v707_v11  ;;  %v632_v60 = vpop.f32.mrf.mxu2 }
 0x2cc   :  { %v3035_v61 = vadd.f32 %v2445_v48, %v632_v60  ;;  %v651_v62 = vpop.f32.mrf.mxu3 }
 0x2cd   :  { %2480 = vpow2.f32 %v715_v59  ;;  %v596_v63 = vpop.f32.mrf.mxu0  ;;  %v680_v20 = vadd.f32 %v2444_v39, %v651_v62 }
 0x2ce   :  { %v613_v15 = vpop.f32.mrf.mxu1  ;;  %v698_v3 = vsel %vm682_vm9, %v3035_v61, -inf }
 0x2cf   :  { %v678_v2 = vadd.f32 %v2444_v39, %v613_v15  ;;  %699 = vmax.xlane.f32.xlu0 %v698_v3  ;;  %v701_v23 = vsel %vm682_vm9, %v680_v20, -inf }
 0x2d1   :  { %v695_v4 = vsel %vm682_vm9, %v678_v2, -inf }
 0x2d2   :  { %696 = vmax.xlane.f32.xlu1 %v695_v4 }
 0x2d3   :  { %v2481_v5 = vpop.eup %2480  ;;  %v634_v6 = vpop.f32.mrf.mxu2 }
 0x2d4   :  { %v755_v9 = vpack.c.bf16 %v2481_v5, %v2481_v5  ;;  %v653_v10 = vpop.f32.mrf.mxu3  ;;  %v731_v31 = vsel %vm682_vm9, %v2481_v5, 0.0 }
 0x2d5   :  { %v670_v13 = vpop.f32.mrf.mxu0 }
 0x2d6   :  { %v615_v12 = vpop.f32.mrf.mxu1  ;;  %2038 = vmatmul.msk.bf16.vlgmr.msra.gmra.mxu1 %vm682_vm9, %v755_v9  ;;  %v3049_v27 = vadd.f32 %v2445_v48, %v670_v13 }
 0x2d8   :  { %v688_v14 = vpop.xlane.xlu1 %687  ;;  %v704_v28 = vsel %vm682_vm9, %v3049_v27, -inf }
 0x2d9   :  { %v708_v17 = vsub.f32 %v675_v50, %v688_v14 }
 0x2da   :  { %693 = vmax.xlane.f32.xlu1 %v692_v16 }
 0x2db   :  { %v717_v18 = vmul.f32 1.442695, %v708_v17  ;;  %v512_v19 = vpop.permute.xlu0 %511 }
 0x2dc   :  { %v825_v21 = vsel %vm766_vm8, %v512_v19, 0  ;;  %v2371_v19 = vld [vmem:[#allocation11 + $0x8] sm:$0xff] }
 0x2dd   :  { %2482 = vpow2.f32 %v717_v18  ;;  %834 = vmatpush.bf16.msrb.mxu0 %v825_v21  ;;  %v672_v22 = vpop.f32.mrf.mxu0 }
 0x2e2   :  { %702 = vmax.xlane.f32.xlu1 %v701_v23 }
 0x2e3   :  { %v2483_v24 = vpop.eup %2482  ;;  %513 = vrot.lane.b32.xlu0 %v3017_v33, %s2827_s21 }
 0x2e4   :  { %v756_v26 = vpack.c.bf16 %v2483_v24, %v2483_v24  ;;  %v734_v29 = vsel %vm682_vm9, %v2483_v24, 0.0 }
 0x2e6   :  { %2039 = vmatmul.msk.bf16.vlgmr.msra.gmra.mxu2 %vm682_vm9, %v756_v26 }
 0x2eb   :  { %517 = vrot.lane.b32.xlu0 %v3017_v33, %s2846_s5 }
 0x2f1   :  { %705 = vmax.xlane.f32.xlu2 %v704_v28 }
 0x2f3   :  { %519 = vrot.lane.b32.xlu0 %v3011_v25, %s2846_s5 }
 0x2fb   :  { %515 = vrot.lane.b32.xlu1 %v3011_v25, %s2827_s21 }
 0x31d   :  { %735 = vadd.xlane.f32.xlu0 %v734_v29 }
 0x323   :  { %v691_v30 = vpop.xlane.xlu2 %690 }
 0x324   :  { %v709_v32 = vsub.f32 %v676_v54, %v691_v30 }
 0x325   :  { %732 = vadd.xlane.f32.xlu1 %v731_v31 }
 0x326   :  { %v719_v33 = vmul.f32 1.442695, %v709_v32 }
 0x328   :  { %2484 = vpow2.f32 %v719_v33 }
 0x32b   :  { %v510_v34 = vpop.permute.xlu2 %509 }
 0x32c   :  { %v806_v35 = vsel %vm766_vm8, %v510_v34, 0  ;;  %v2373_v34 = vld [vmem:[#allocation11 + $0x18] sm:$0xff] }
 0x32d   :  { %815 = vmatpush.bf16.msra.mxu3 %v806_v35 }
 0x32e   :  { %v2485_v36 = vpop.eup %2484 }
 0x32f   :  { %v757_v37 = vpack.c.bf16 %v2485_v36, %v2485_v36  ;;  %v737_v57 = vsel %vm682_vm9, %v2485_v36, 0.0  ;;  %v2372_v36 = vld [vmem:[#allocation11 + $0x10] sm:$0xff] }
 0x331   :  { %2040 = vmatmul.msk.bf16.vlgmr.msra.gmra.mxu3 %vm682_vm9, %v757_v37 }
 0x342   :  { %v700_v40 = vpop.xlane.xlu0 %699 }
 0x343   :  { %v712_v44 = vsub.f32 %v3035_v61, %v700_v40 }
 0x345   :  { %v697_v38 = vpop.xlane.xlu1 %696  ;;  %v725_v47 = vmul.f32 1.442695, %v712_v44 }
 0x346   :  { %v711_v25 = vsub.f32 %v678_v2, %v697_v38 }
 0x348   :  { %v723_v39 = vmul.f32 1.442695, %v711_v25 }
 0x34a   :  { %2486 = vpow2.f32 %v723_v39  ;;  %v2377_v39 = vld [vmem:[#allocation11 + $0x38] sm:$0xff] }
 0x34d   :  { %v694_v41 = vpop.xlane.xlu1 %693 }
 0x34e   :  { %v710_v42 = vsub.f32 %v677_v7, %v694_v41  ;;  %v2376_v41 = vld [vmem:[#allocation11 + $0x30] sm:$0xff] }
 0x350   :  { %v2487_v43 = vpop.eup %2486  ;;  %v721_v45 = vmul.f32 1.442695, %v710_v42 }
 0x351   :  { %v743_v46 = vsel %vm682_vm9, %v2487_v43, 0.0  ;;  %v759_v55 = vpack.c.bf16 %v2487_v43, %v2487_v43  ;;  %v2375_v43 = vld [vmem:[#allocation11 + $0x28] sm:$0xff] }
 0x352   :  { %2488 = vpow2.f32 %v721_v45  ;;  %744 = vadd.xlane.f32.xlu2 %v743_v46 }
 0x353   :  { %v779_v48 = vpop.f32.mrf.mxu1  ;;  %2490 = vpow2.f32 %v725_v47 }
 0x355   :  { %v703_v49 = vpop.xlane.xlu1 %702  ;;  %v514_v51 = vpop.permute.xlu0 %513 }
 0x356   :  { %v713_v50 = vsub.f32 %v680_v20, %v703_v49  ;;  %v844_v52 = vsel %vm766_vm8, %v514_v51, 0  ;;  %v2370_v20 = vld [vmem:[#allocation11] sm:$0xff] }
 0x357   :  { %853 = vmatpush.bf16.msrb.mxu1 %v844_v52 }
 0x358   :  { %v2489_v53 = vpop.eup %2488  ;;  %v727_v54 = vmul.f32 1.442695, %v713_v50  ;;  %v2374_v50 = vld [vmem:[#allocation11 + $0x20] sm:$0xff] }
 0x359   :  { %v758_v56 = vpack.c.bf16 %v2489_v53, %v2489_v53  ;;  %v740_v58 = vsel %vm682_vm9, %v2489_v53, 0.0  ;;  %v2491_v59 = vpop.eup %2490 }
 0x35a   :  { %2492 = vpow2.f32 %v727_v54  ;;  %738 = vadd.xlane.f32.xlu2 %v737_v57  ;;  %741 = vadd.xlane.f32.xlu1 %v740_v58  ;;  %v746_v15 = vsel %vm682_vm9, %v2491_v59, 0.0  ;;  %v760_v14 = vpack.c.bf16 %v2491_v59, %v2491_v59 }
 0x35b   :  { %2041 = vmatmul.msk.bf16.vlgmr.msrb.gmra.mxu0 %vm682_vm9, %v758_v56  ;;  %2042 = vmatmul.msk.bf16.vlgmr.msrb.gmra.mxu1 %vm682_vm9, %v759_v55  ;;  %v781_v11 = vpop.f32.mrf.mxu1 }
 0x35c   :  { %975 = vmatpush.bf16.msra.mxu1 %v2373_v34 }
 0x35d   :  { %v518_v60 = vpop.permute.xlu0 %517 }
 0x35e   :  { %v882_v61 = vsel %vm766_vm8, %v518_v60, 0 }
 0x35f   :  { %891 = vmatpush.bf16.msrb.mxu3 %v882_v61 }
 0x360   :  { %v2493_v62 = vpop.eup %2492  ;;  %976 = vmatpush.bf16.msra.mxu1 %v2372_v36 }
 0x361   :  { %v761_v63 = vpack.c.bf16 %v2493_v62, %v2493_v62  ;;  %v749_v7 = vsel %vm682_vm9, %v2493_v62, 0.0 }
 0x362   :  { %747 = vadd.xlane.f32.xlu2 %v746_v15 }
 0x363   :  { %2044 = vmatmul.msk.bf16.vlgmr.msrb.gmra.mxu3 %vm682_vm9, %v761_v63 }
 0x364   :  { %v706_v2 = vpop.xlane.xlu2 %705  ;;  %1048 = vmatpush.bf16.msra.mxu3 %v2375_v43 }
 0x365   :  { %v714_v3 = vsub.f32 %v3049_v27, %v706_v2  ;;  %v520_v4 = vpop.permute.xlu0 %519 }
 0x366   :  { %v901_v5 = vsel %vm766_vm8, %v520_v4, 0 }
 0x367   :  { %v729_v6 = vmul.f32 1.442695, %v714_v3  ;;  %910 = vmatpush.bf16.msra.mxu0 %v901_v5 }
 0x368   :  { %1049 = vmatpush.bf16.msra.mxu3 %v2374_v50 }
 0x369   :  { %2494 = vpow2.f32 %v729_v6  ;;  %v798_v9 = vpop.f32.mrf.mxu2 }
 0x36a   :  { %750 = vadd.xlane.f32.xlu2 %v749_v7 }
 0x36b   :  { %1089 = vmatpush.bf16.msrb.mxu0 %v2377_v39 }
 0x36d   :  { %v516_v10 = vpop.permute.xlu1 %515 }
 0x36e   :  { %v863_v12 = vsel %vm766_vm8, %v516_v10, 0 }
 0x36f   :  { %872 = vmatpush.bf16.msrb.mxu2 %v863_v12  ;;  %v2495_v13 = vpop.eup %2494  ;;  %1090 = vmatpush.bf16.msrb.mxu0 %v2376_v41 }
 0x370   :  { %v762_v16 = vpack.c.bf16 %v2495_v13, %v2495_v13  ;;  %v752_v17 = vsel %vm682_vm9, %v2495_v13, 0.0 }
 0x371   :  { %v800_v18 = vpop.f32.mrf.mxu2  ;;  %753 = vadd.xlane.f32.xlu0 %v752_v17 }
 0x372   :  { %2043 = vmatmul.msk.bf16.vlgmr.msrb.gmra.mxu2 %vm682_vm9, %v760_v14  ;;  %2045 = vmatmul.msk.bf16.vlgmr.msra.gmra.mxu0 %vm682_vm9, %v762_v16 }
 0x373   :  { %1009 = vmatpush.bf16.msra.mxu2 %v2371_v19 }
 0x377   :  { %1010 = vmatpush.bf16.msra.mxu2 %v2370_v20 }
 0x390   :  { %v736_v21 = vpop.xlane.xlu0 %735 }
 0x391   :  { %2496 = vrcp.f32 %v736_v21 }
 0x397   :  { %v2497_v23 = vpop.eup %2496 }
 0x398   :  { %v733_v22 = vpop.xlane.xlu1 %732  ;;  %v925_v24 = vmul.f32 %v2497_v23, %v798_v9 }
 0x399   :  { %2498 = vrcp.f32 %v733_v22 }
 0x39a   :  { %v933_v27 = vpack.c.bf16 %v925_v24, %v925_v24 }
 0x39c   :  { %v986_v30 = vunpack.c.l.b16 %v933_v27 }
 0x39f   :  { %v2499_v26 = vpop.eup %2498 }
 0x3a0   :  { %v924_v28 = vmul.f32 %v2499_v26, %v779_v48 }
 0x3a2   :  { %v932_v29 = vpack.c.bf16 %v924_v28, %v924_v28 }
 0x3a4   :  { %v985_v31 = vunpack.c.l.b16 %v932_v29  ;;  %v2470_v29 = vld [vmem:[#allocation13] ss:$0 sm:$0xff] }
 0x3a6   :  { %v987_v32 = vpack.c.b16 %v986_v30, %v985_v31 }
 0x3a8   :  { %2063 = vmatmul.msk.bf16.vlgmr.msra.gmra.mxu2 %vm521_vm7, %v987_v32 }
 0x3b4   :  { %v817_v33 = vpop.f32.mrf.mxu3 }
 0x3bc   :  { %v819_v35 = vpop.f32.mrf.mxu3 }
 0x3c5   :  { %v745_v37 = vpop.xlane.xlu2 %744 }
 0x3cd   :  { %v739_v38 = vpop.xlane.xlu2 %738  ;;  %v742_v25 = vpop.xlane.xlu1 %741 }
 0x3ce   :  { %2500 = vrcp.f32 %v739_v38 }
 0x3cf   :  { %2502 = vrcp.f32 %v742_v25 }
 0x3d4   :  { %v2501_v40 = vpop.eup %2500 }
 0x3d5   :  { %v926_v42 = vmul.f32 %v2501_v40, %v817_v33  ;;  %v2503_v44 = vpop.eup %2502  ;;  %v748_v47 = vpop.xlane.xlu2 %747 }
 0x3d7   :  { %v934_v49 = vpack.c.bf16 %v926_v42, %v926_v42 }
 0x3d8   :  { %v836_v45 = vpop.f32.mrf.mxu0  ;;  %v855_v46 = vpop.f32.mrf.mxu1 }
 0x3d9   :  { %v927_v48 = vmul.f32 %v2503_v44, %v836_v45  ;;  %v951_v52 = vunpack.c.l.b16 %v934_v49  ;;  %v2406_v49 = vld [vmem:[#allocation16 + $0xe4] sm:$0xf] }
 0x3db   :  { %v935_v51 = vpack.c.bf16 %v927_v48, %v927_v48  ;;  %v2408_v48 = vld [vmem:[#allocation16 + $0xec] sm:$0xf0] }
 0x3dd   :  { %v952_v53 = vunpack.c.l.b16 %v935_v51  ;;  %v751_v57 = vpop.xlane.xlu2 %750  ;;  %v2198_v51 = vld [vmem:[#allocation16 + $0xf0] sm:$0xf0] }
 0x3de   :  { %2504 = vrcp.f32 %v751_v57  ;;  %v2206_v57 = vld [vmem:[#allocation16 + $0xf8] sm:$0xf0] }
 0x3df   :  { %v953_v54 = vpack.c.b16 %v952_v53, %v951_v52  ;;  %v2204_v52 = vld [vmem:[#allocation16 + $0xe8] sm:$0xf]  ;;  %v2409_v53 = vld [vmem:[#allocation16 + $0xf4] sm:$0xf0] }
 0x3e0   :  { %v838_v55 = vpop.f32.mrf.mxu0  ;;  %v857_v56 = vpop.f32.mrf.mxu1 }
 0x3e1   :  { %2054 = vmatmul.msk.bf16.vlgmr.msra.gmra.mxu1 %vm521_vm7, %v953_v54  ;;  %v2201_v54 = vor.u32 %v2406_v49, %v2198_v51  ;;  %v2205_v55 = vor.u32 %v2409_v53, %v2204_v52  ;;  %v2407_v56 = vld [vmem:[#allocation16 + $0xec] sm:$0xf]  ;;  %v2388_v49 = vld [vmem:[#allocation16 + $0x4c] sm:$0xf0]  ;;  %v2118_v52 = vld [vmem:[#allocation16 + $0x50] sm:$0xf0] }
 0x3e2   :  { %v2124_v53 = vld [vmem:[#allocation16 + $0x48] sm:$0xf] }
 0x3e3   :  { %1376 = vmatpush.bf16.msrb.mxu2 %v2201_v54  ;;  %1390 = vmatpush.bf16.msrb.mxu3 %v2205_v55  ;;  %v2389_v54 = vld [vmem:[#allocation16 + $0x54] sm:$0xf0] }
 0x3e4   :  { %v754_v11 = vpop.xlane.xlu0 %753  ;;  %v2505_v59 = vpop.eup %2504 }
 0x3e5   :  { %2506 = vrcp.f32 %v754_v11  ;;  %v2180_v11 = vld [vmem:[#allocation16 + $0xc0] sm:$0xf] }
 0x3e6   :  { %v893_v58 = vpop.f32.mrf.mxu3  ;;  %2508 = vrcp.f32 %v745_v37 }
 0x3e7   :  { %v930_v60 = vmul.f32 %v2505_v59, %v893_v58  ;;  %2510 = vrcp.f32 %v748_v47  ;;  %v2196_v47 = vld [vmem:[#allocation16 + $0xe0] sm:$0xf]  ;;  %v2209_v58 = vor.u32 %v2407_v56, %v2206_v57  ;;  %v2404_v59 = vld [vmem:[#allocation16 + $0xcc] sm:$0xf0]  ;;  %v2125_v56 = vor.u32 %v2389_v54, %v2124_v53  ;;  %v2387_v57 = vld [vmem:[#allocation16 + $0x4c] sm:$0xf] }
 0x3e8   :  { %v2197_v50 = vor.u32 %v2408_v48, %v2196_v47  ;;  %v2116_v48 = vld [vmem:[#allocation16 + $0x40] sm:$0xf]  ;;  %v2417_v54 = vld [vmem:[#allocation17 + $0x38] sm:$0xff] }
 0x3e9   :  { %v938_v2 = vpack.c.bf16 %v930_v60, %v930_v60  ;;  %v2402_v60 = vld [vmem:[#allocation16 + $0xc4] sm:$0xf]  ;;  %1404 = vmatpush.bf16.msra.mxu0 %v2209_v58  ;;  %v2117_v51 = vor.u32 %v2388_v49, %v2116_v48  ;;  %v2126_v58 = vld [vmem:[#allocation16 + $0x58] sm:$0xf0]  ;;  %v2472_v48 = vld [vmem:[%s3292_s9] ss:$0 sm:$0xff] }
 0x3ea   :  { %1362 = vmatpush.bf16.msrb.mxu1 %v2197_v50  ;;  %v2386_v50 = vld [vmem:[#allocation16 + $0x44] sm:$0xf] }
 0x3eb   :  { %v2507_v62 = vpop.eup %2506  ;;  %v1065_v7 = vunpack.c.l.b16 %v938_v2  ;;  %v2121_v55 = vor.u32 %v2386_v50, %v2118_v52 }
 0x3ec   :  { %v2509_v15 = vpop.eup %2508 }
 0x3ed   :  { %v928_v4 = vmul.f32 %v2509_v15, %v855_v46  ;;  %v2511_v6 = vpop.eup %2510  ;;  %v2405_v15 = vld [vmem:[#allocation16 + $0xd4] sm:$0xf0] }
 0x3ee   :  { %v895_v61 = vpop.f32.mrf.mxu3 }
 0x3ef   :  { %v912_v63 = vpop.f32.mrf.mxu0  ;;  %v936_v12 = vpack.c.bf16 %v928_v4, %v928_v4  ;;  %v2181_v61 = vor.u32 %v2404_v59, %v2180_v11  ;;  %v2403_v4 = vld [vmem:[#allocation16 + $0xcc] sm:$0xf]  ;;  %v2129_v11 = vor.u32 %v2387_v57, %v2126_v58  ;;  %v2100_v59 = vld [vmem:[#allocation16 + $0x20] sm:$0xf] }
 0x3f0   :  { %v931_v3 = vmul.f32 %v2507_v62, %v912_v63  ;;  %v2182_v62 = vld [vmem:[#allocation16 + $0xd0] sm:$0xf0]  ;;  %v2188_v63 = vld [vmem:[#allocation16 + $0xc8] sm:$0xf] }
 0x3f1   :  { %v1024_v18 = vunpack.c.l.b16 %v936_v12  ;;  %v2185_v2 = vor.u32 %v2402_v60, %v2182_v62  ;;  %1363 = vmatpush.bf16.msrb.mxu1 %v2181_v61  ;;  %v2384_v60 = vld [vmem:[#allocation16 + $0x2c] sm:$0xf0]  ;;  %v2382_v61 = vld [vmem:[#allocation16 + $0x24] sm:$0xf] }
 0x3f2   :  { %v939_v5 = vpack.c.bf16 %v931_v3, %v931_v3  ;;  %v2189_v3 = vor.u32 %v2405_v15, %v2188_v63  ;;  %v2101_v62 = vor.u32 %v2384_v60, %v2100_v59  ;;  %v2102_v63 = vld [vmem:[#allocation16 + $0x30] sm:$0xf0]  ;;  %v2108_v15 = vld [vmem:[#allocation16 + $0x28] sm:$0xf] }
 0x3f3   :  { %1377 = vmatpush.bf16.msrb.mxu2 %v2185_v2  ;;  %v2385_v2 = vld [vmem:[#allocation16 + $0x34] sm:$0xf0] }
 0x3f4   :  { %v1066_v9 = vunpack.c.l.b16 %v939_v5  ;;  %v2190_v5 = vld [vmem:[#allocation16 + $0xd8] sm:$0xf0]  ;;  %1391 = vmatpush.bf16.msrb.mxu3 %v2189_v3 }
 0x3f5   :  { %v874_v10 = vpop.f32.mrf.mxu2 }
 0x3f6   :  { %v929_v13 = vmul.f32 %v2511_v6, %v874_v10  ;;  %v1067_v14 = vpack.c.b16 %v1066_v9, %v1065_v7  ;;  %v2193_v6 = vor.u32 %v2403_v4, %v2190_v5  ;;  %v2164_v7 = vld [vmem:[#allocation16 + $0xa0] sm:$0xf]  ;;  %v2400_v9 = vld [vmem:[#allocation16 + $0xac] sm:$0xf0]  ;;  %v2398_v10 = vld [vmem:[#allocation16 + $0xa4] sm:$0xf]  ;;  %v2105_v4 = vor.u32 %v2382_v61, %v2102_v63 }
 0x3f7   :  { %v914_v17 = vpop.f32.mrf.mxu0  ;;  %v2165_v12 = vor.u32 %v2400_v9, %v2164_v7  ;;  %v2109_v5 = vor.u32 %v2385_v2, %v2108_v15  ;;  %v2110_v7 = vld [vmem:[#allocation16 + $0x38] sm:$0xf0]  ;;  %v2084_v9 = vld [vmem:[#allocation16] sm:$0xf]  ;;  %v2416_v61 = vld [vmem:[#allocation17 + $0x30] sm:$0xff] }
 0x3f8   :  { %v937_v16 = vpack.c.bf16 %v929_v13, %v929_v13  ;;  %2081 = vmatmul.msk.bf16.vlgmr.msrb.gmra.mxu0 %vm521_vm7, %v1067_v14  ;;  %v2166_v13 = vld [vmem:[#allocation16 + $0xb0] sm:$0xf0]  ;;  %v2172_v14 = vld [vmem:[#allocation16 + $0xa8] sm:$0xf] }
 0x3f9   :  { %1405 = vmatpush.bf16.msra.mxu0 %v2193_v6  ;;  %v2169_v17 = vor.u32 %v2398_v10, %v2166_v13  ;;  %1364 = vmatpush.bf16.msrb.mxu1 %v2165_v12  ;;  %v2383_v6 = vld [vmem:[#allocation16 + $0x2c] sm:$0xf]  ;;  %v2380_v13 = vld [vmem:[#allocation16 + $0xc] sm:$0xf0] }
 0x3fa   :  { %v1025_v19 = vunpack.c.l.b16 %v937_v16  ;;  %v2401_v16 = vld [vmem:[#allocation16 + $0xb4] sm:$0xf0]  ;;  %v2113_v12 = vor.u32 %v2383_v6, %v2110_v7 }
 0x3fb   :  { %1378 = vmatpush.bf16.msrb.mxu2 %v2169_v17  ;;  %v2085_v17 = vor.u32 %v2380_v13, %v2084_v9 }
 0x3fc   :  { %v1026_v20 = vpack.c.b16 %v1025_v19, %v1024_v18  ;;  %v2173_v18 = vor.u32 %v2401_v16, %v2172_v14  ;;  %v2399_v19 = vld [vmem:[#allocation16 + $0xac] sm:$0xf]  ;;  %v2378_v14 = vld [vmem:[#allocation16 + $0x4] sm:$0xf]  ;;  %v2086_v16 = vld [vmem:[#allocation16 + $0x10] sm:$0xf0] }
 0x3fd   :  { %v876_v21 = vpop.f32.mrf.mxu2 }
 0x3fe   :  { %2072 = vmatmul.msk.bf16.vlgmr.msra.gmra.mxu3 %vm521_vm7, %v1026_v20  ;;  %v2174_v20 = vld [vmem:[#allocation16 + $0xb8] sm:$0xf0] }
 0x3ff   :  { %v2177_v21 = vor.u32 %v2399_v19, %v2174_v20  ;;  %1392 = vmatpush.bf16.msrb.mxu3 %v2173_v18  ;;  %v2089_v18 = vor.u32 %v2378_v14, %v2086_v16  ;;  %v2092_v19 = vld [vmem:[#allocation16 + $0x8] sm:$0xf]  ;;  %v2381_v20 = vld [vmem:[#allocation16 + $0x14] sm:$0xf0] }
 0x401   :  { %1406 = vmatpush.bf16.msra.mxu0 %v2177_v21  ;;  %v2379_v21 = vld [vmem:[#allocation16 + $0xc] sm:$0xf] }
 0x42b   :  { %v1012_v23 = vpop.f32.mrf.mxu2 }
 0x433   :  { %v1014_v33 = vpop.f32.mrf.mxu2 }
 0x45e   :  { %v978_v22 = vpop.f32.mrf.mxu1 }
 0x45f   :  { %v1013_v24 = vadd.f32 %v1012_v23, %v978_v22  ;;  %v2148_v22 = vld [vmem:[#allocation16 + $0x80] sm:$0xf]  ;;  %v2396_v23 = vld [vmem:[#allocation16 + $0x8c] sm:$0xf0] }
 0x466   :  { %v980_v31 = vpop.f32.mrf.mxu1 }
 0x467   :  { %v1015_v34 = vadd.f32 %v1014_v33, %v980_v31  ;;  %v2158_v33 = vld [vmem:[#allocation16 + $0x98] sm:$0xf0] }
 0x475   :  { %v1092_v26 = vpop.f32.mrf.mxu0 }
 0x47d   :  { %v1094_v38 = vpop.f32.mrf.mxu0 }
 0x481   :  { %v1051_v27 = vpop.f32.mrf.mxu3 }
 0x482   :  { %v1056_v28 = vadd.f32 %v1051_v27, %v1013_v24  ;;  %v2394_v24 = vld [vmem:[#allocation16 + $0x84] sm:$0xf]  ;;  %v2150_v27 = vld [vmem:[#allocation16 + $0x90] sm:$0xf0] }
 0x484   :  { %v1097_v30 = vadd.f32 %v1092_v26, %v1056_v28  ;;  %v2149_v26 = vor.u32 %v2396_v23, %v2148_v22  ;;  %v2156_v28 = vld [vmem:[#allocation16 + $0x88] sm:$0xf]  ;;  %v2093_v23 = vor.u32 %v2381_v20, %v2092_v19  ;;  %v2424_v19 = vld [vmem:[#allocation17 + $0x70] sm:$0xff] }
 0x485   :  { %v2432_v20 = vld [vmem:[#allocation17 + $0xb0] sm:$0xff] }
 0x486   :  { %v1103_v32 = vadd.f32 %v2470_v29, %v1097_v30  ;;  %v2153_v30 = vor.u32 %v2394_v24, %v2150_v27  ;;  %1365 = vmatpush.bf16.msrb.mxu1 %v2149_v26  ;;  %v2094_v24 = vld [vmem:[#allocation16 + $0x18] sm:$0xf0] }
 0x487   :  { %v2097_v26 = vor.u32 %v2379_v21, %v2094_v24 }
 0x488   :  { %v3083_v35 = vadd.f32 %v1103_v32, %v2965_v0  ;;  %v2395_v32 = vld [vmem:[#allocation16 + $0x8c] sm:$0xf]  ;;  %1379 = vmatpush.bf16.msrb.mxu2 %v2153_v30 }
 0x489   :  { %v1053_v36 = vpop.f32.mrf.mxu3 }
 0x48a   :  { %v1057_v37 = vadd.f32 %v1053_v36, %v1015_v34  ;;  %1109 = vadd.xlane.f32.xlu1 %v3083_v35  ;;  %v2161_v34 = vor.u32 %v2395_v32, %v2158_v33  ;;  %v2132_v36 = vld [vmem:[#allocation16 + $0x60] sm:$0xf] }
 0x48c   :  { %v1098_v25 = vadd.f32 %v1094_v38, %v1057_v37  ;;  %v2392_v37 = vld [vmem:[#allocation16 + $0x6c] sm:$0xf0]  ;;  %v2390_v38 = vld [vmem:[#allocation16 + $0x64] sm:$0xf]  ;;  %1407 = vmatpush.bf16.msra.mxu0 %v2161_v34 }
 0x48e   :  { %v1104_v39 = vadd.f32 %v2470_v29, %v1098_v25  ;;  %v2397_v29 = vld [vmem:[#allocation16 + $0x94] sm:$0xf0]  ;;  %v2133_v25 = vor.u32 %v2392_v37, %v2132_v36 }
 0x48f   :  { %v2157_v31 = vor.u32 %v2397_v29, %v2156_v28 }
 0x490   :  { %v3087_v40 = vadd.f32 %v1104_v39, %v2968_v1  ;;  %v2134_v39 = vld [vmem:[#allocation16 + $0x70] sm:$0xf0]  ;;  %1366 = vmatpush.bf16.msrb.mxu1 %v2133_v25 }
 0x491   :  { %1393 = vmatpush.bf16.msrb.mxu3 %v2157_v31 }
 0x492   :  { %1111 = vadd.xlane.f32.xlu2 %v3087_v40 }
 0x494   :  { %1367 = vmatpush.bf16.msrb.mxu1 %v2117_v51 }
 0x498   :  { %1368 = vmatpush.bf16.msrb.mxu1 %v2101_v62  ;;  %v2440_v62 = vld [vmem:[#allocation17 + $0xf0] sm:$0xff] }
 0x49c   :  { %1369 = vmatpush.bf16.msrb.mxu1 %v2085_v17 }
 0x4a0   :  { %1850 = vmatpush.bf16.msra.mxu1 %v2417_v54 }
 0x4a4   :  { %1851 = vmatpush.bf16.msra.mxu1 %v2416_v61 }
 0x4fd   :  { %v1110_v41 = vpop.xlane.xlu1 %1109 }
 0x4fe   :  { %v1113_v42 = vmul.f32 %v1110_v41, %v2971_v8  ;;  %v2140_v41 = vld [vmem:[#allocation16 + $0x68] sm:$0xf] }
 0x500   :  { %v3092_v43 = vsub.f32 %v3083_v35, %v1113_v42  ;;  %v2393_v42 = vld [vmem:[#allocation16 + $0x74] sm:$0xf0] }
 0x502   :  { %v1117_v0 = vmul.f32 %v3092_v43, %v3092_v43 }
 0x504   :  { %1119 = vadd.xlane.f32.xlu0 %v1117_v0  ;;  %v2137_v0 = vor.u32 %v2390_v38, %v2134_v39 }
 0x505   :  { %v1112_v44 = vpop.xlane.xlu2 %1111 }
 0x506   :  { %v1114_v45 = vmul.f32 %v1112_v44, %v2971_v8  ;;  %v2141_v44 = vor.u32 %v2393_v42, %v2140_v41  ;;  %1380 = vmatpush.bf16.msrb.mxu2 %v2137_v0  ;;  %v2471_v0 = vld [vmem:[#allocation14] ss:$0 sm:$0xff] }
 0x508   :  { %v3098_v46 = vsub.f32 %v3087_v40, %v1114_v45  ;;  %v2391_v45 = vld [vmem:[#allocation16 + $0x6c] sm:$0xf]  ;;  %1394 = vmatpush.bf16.msrb.mxu3 %v2141_v44 }
 0x50a   :  { %v1118_v1 = vmul.f32 %v3098_v46, %v3098_v46  ;;  %1381 = vmatpush.bf16.msrb.mxu2 %v2121_v55  ;;  %v2441_v55 = vld [vmem:[#allocation17 + $0xf8] sm:$0xff] }
 0x50c   :  { %1121 = vadd.xlane.f32.xlu1 %v1118_v1  ;;  %v2142_v1 = vld [vmem:[#allocation16 + $0x78] sm:$0xf0]  ;;  %1395 = vmatpush.bf16.msrb.mxu3 %v2125_v56 }
 0x50d   :  { %v2145_v47 = vor.u32 %v2391_v45, %v2142_v1 }
 0x50e   :  { %1382 = vmatpush.bf16.msrb.mxu2 %v2105_v4  ;;  %v2433_v4 = vld [vmem:[#allocation17 + $0xb8] sm:$0xff] }
 0x50f   :  { %1408 = vmatpush.bf16.msra.mxu0 %v2145_v47 }
 0x510   :  { %1396 = vmatpush.bf16.msrb.mxu3 %v2109_v5 }
 0x512   :  { %1383 = vmatpush.bf16.msrb.mxu2 %v2089_v18 }
 0x513   :  { %1409 = vmatpush.bf16.msra.mxu0 %v2129_v11 }
 0x514   :  { %1397 = vmatpush.bf16.msrb.mxu3 %v2093_v23 }
 0x517   :  { %1410 = vmatpush.bf16.msra.mxu0 %v2113_v12  ;;  %v2439_v12 = vld [vmem:[#allocation17 + $0xe8] sm:$0xff] }
 0x518   :  { %1878 = vmatpush.bf16.msra.mxu3 %v2433_v4  ;;  %v2428_v4 = vld [vmem:[#allocation17 + $0x90] sm:$0xff] }
 0x51b   :  { %1411 = vmatpush.bf16.msra.mxu0 %v2097_v26  ;;  %v2414_v26 = vld [vmem:[#allocation17 + $0x20] sm:$0xff] }
 0x51c   :  { %1879 = vmatpush.bf16.msra.mxu3 %v2432_v20  ;;  %v2427_v20 = vld [vmem:[#allocation17 + $0x88] sm:$0xff] }
 0x51f   :  { %1892 = vmatpush.bf16.msrb.mxu0 %v2441_v55  ;;  %v2411_v55 = vld [vmem:[#allocation17 + $0x8] sm:$0xff] }
 0x523   :  { %1893 = vmatpush.bf16.msrb.mxu0 %v2440_v62 }
 0x527   :  { %1894 = vmatpush.bf16.msrb.mxu0 %v2439_v12 }
 0x577   :  { %v1120_v3 = vpop.xlane.xlu0 %1119 }
 0x578   :  { %v1123_v10 = vmul.f32 %v1120_v3, %v2971_v8  ;;  %v2425_v3 = vld [vmem:[#allocation17 + $0x78] sm:$0xff] }
 0x579   :  { %1864 = vmatpush.bf16.msra.mxu2 %v2425_v3 }
 0x57a   :  { %v1125_v22 = vadd.f32 1e-05, %v1123_v10  ;;  %v2415_v10 = vld [vmem:[#allocation17 + $0x28] sm:$0xff] }
 0x57b   :  { %1852 = vmatpush.bf16.msra.mxu1 %v2415_v10  ;;  %v2434_v10 = vld [vmem:[#allocation17 + $0xc0] sm:$0xff] }
 0x57c   :  { %2512 = vrsqrt.f32 %v1125_v22  ;;  %vm1133_vm11 = vweird.f32 %v1125_v22 }
 0x57d   :  { %1865 = vmatpush.bf16.msra.mxu2 %v2424_v19  ;;  %v2419_v19 = vld [vmem:[#allocation17 + $0x48] sm:$0xff] }
 0x57f   :  { %v1122_v27 = vpop.xlane.xlu1 %1121  ;;  %1853 = vmatpush.bf16.msra.mxu1 %v2414_v26 }
 0x580   :  { %v1124_v28 = vmul.f32 %v1122_v27, %v2971_v8  ;;  %v2438_v27 = vld [vmem:[#allocation17 + $0xe0] sm:$0xff] }
 0x581   :  { %1895 = vmatpush.bf16.msrb.mxu0 %v2438_v27 }
 0x582   :  { %v2513_v29 = vpop.eup %2512  ;;  %v1126_v30 = vadd.f32 1e-05, %v1124_v28 }
 0x583   :  { %v1128_v31 = vmul.f32 %v2513_v29, %v1125_v22  ;;  %vm1134_vm10 = vweird.f32 %v2513_v29 }
 0x584   :  { %2514 = vrsqrt.f32 %v1126_v30  ;;  %vm1135_vm12 = vmor %vm1133_vm11, %vm1134_vm10  ;;  %vm1143_vm14 = vweird.f32 %v1126_v30 }
 0x585   :  { %v1129_v32 = vmul.f32 %v2513_v29, %v1128_v31  ;;  %v2423_v31 = vld [vmem:[#allocation17 + $0x68] sm:$0xff] }
 0x586   :  { %1866 = vmatpush.bf16.msra.mxu2 %v2423_v31  ;;  %v2418_v31 = vld [vmem:[#allocation17 + $0x40] sm:$0xff] }
 0x587   :  { %v1130_v33 = vmul.f32 0.5, %v1129_v32  ;;  %v2431_v32 = vld [vmem:[#allocation17 + $0xa8] sm:$0xff] }
 0x588   :  { %1880 = vmatpush.bf16.msra.mxu3 %v2431_v32  ;;  %v2426_v32 = vld [vmem:[#allocation17 + $0x80] sm:$0xff] }
 0x589   :  { %v1131_v34 = vsub.f32 1.5, %v1130_v33 }
 0x58a   :  { %v2515_v36 = vpop.eup %2514 }
 0x58b   :  { %v1132_v37 = vmul.f32 %v2513_v29, %v1131_v34  ;;  %v1138_v38 = vmul.f32 %v2515_v36, %v1126_v30  ;;  %vm1144_vm13 = vweird.f32 %v2515_v36 }
 0x58c   :  { %vm1145_vm15 = vmor %vm1143_vm14, %vm1144_vm13 }
 0x58d   :  { %v1139_v25 = vmul.f32 %v2515_v36, %v1138_v38  ;;  %v1136_v39 = vsel %vm1135_vm12, %v2513_v29, %v1132_v37 }
 0x58e   :  { %v1147_v8 = vmul.f32 %v1136_v39, %v3092_v43  ;;  %v3112_v43 = vld [vmem:[%s3294_s11] sm:$0xf] }
 0x58f   :  { %v1140_v41 = vmul.f32 0.5, %v1139_v25  ;;  %v1197_v53 = vperm.slane %v3112_v43, 3  ;;  %v1195_v60 = vperm.slane %v3112_v43, 1  ;;  %v1196_v15 = vperm.slane %v3112_v43, 2 }
 0x590   :  { %v1152_v47 = vmul.f32 %v2471_v0, %v1147_v8  ;;  %v2422_v8 = vld [vmem:[#allocation17 + $0x60] sm:$0xff] }
 0x591   :  { %v1141_v42 = vsub.f32 1.5, %v1140_v41  ;;  %v2413_v41 = vld [vmem:[#allocation17 + $0x18] sm:$0xff]  ;;  %1867 = vmatpush.bf16.msra.mxu2 %v2422_v8 }
 0x592   :  { %v1157_v50 = vadd.f32 %v2472_v48, %v1152_v47  ;;  %1854 = vmatpush.bf16.msra.mxu1 %v2413_v41  ;;  %v2436_v47 = vld [vmem:[#allocation17 + $0xd0] sm:$0xff] }
 0x593   :  { %v1142_v44 = vmul.f32 %v2515_v36, %v1141_v42  ;;  %v2437_v42 = vld [vmem:[#allocation17 + $0xd8] sm:$0xff] }
 0x594   :  { %1896 = vmatpush.bf16.msrb.mxu0 %v2437_v42 }
 0x595   :  { %v1146_v45 = vsel %vm1145_vm15, %v2515_v36, %v1142_v44 }
 0x596   :  { %v1148_v1 = vmul.f32 %v1146_v45, %v3098_v46  ;;  %v1194_v46 = vperm.slane %v3112_v43, 0 }
 0x598   :  { %v1153_v49 = vmul.f32 %v2471_v0, %v1148_v1  ;;  %v2430_v0 = vld [vmem:[#allocation17 + $0xa0] sm:$0xff]  ;;  %v2412_v1 = vld [vmem:[#allocation17 + $0x10] sm:$0xff]  ;;  %1897 = vmatpush.bf16.msrb.mxu0 %v2436_v47 }
 0x599   :  { %1881 = vmatpush.bf16.msra.mxu3 %v2430_v0  ;;  %1855 = vmatpush.bf16.msra.mxu1 %v2412_v1 }
 0x59a   :  { %v1158_v51 = vadd.f32 %v2472_v48, %v1153_v49 }
 0x59c   :  { %v1159_v52 = vpack.c.bf16 %v1158_v51, %v1157_v50  ;;  %v2421_v50 = vld [vmem:[#allocation17 + $0x58] sm:$0xff] }
 0x59d   :  { %v2429_v51 = vld [vmem:[#allocation17 + $0x98] sm:$0xff]  ;;  %1868 = vmatpush.bf16.msra.mxu2 %v2421_v50  ;;  %1856 = vmatpush.bf16.msra.mxu1 %v2411_v55 }
 0x59e   :  { %1370 = vmatmul.bf16.vlgmr.msrb.gmra.mxu1 %v1159_v52  ;;  %1384 = vmatmul.bf16.vlgmr.msrb.gmra.mxu2 %v1159_v52 }
 0x59f   :  { %1398 = vmatmul.bf16.vlgmr.msrb.gmra.mxu3 %v1159_v52  ;;  %1412 = vmatmul.bf16.vlgmr.msra.gmra.mxu0 %v1159_v52 }
 0x5a0   :  { %1882 = vmatpush.bf16.msra.mxu3 %v2429_v51 }
 0x5a4   :  { %1883 = vmatpush.bf16.msra.mxu3 %v2428_v4 }
 0x5a8   :  { %1884 = vmatpush.bf16.msra.mxu3 %v2427_v20 }
 0x5ac   :  { %1885 = vmatpush.bf16.msra.mxu3 %v2426_v32 }
 0x61b   :  { %v1371_v56 = vpop.f32.mrf.mxu1 }
 0x61c   :  { %v3116_v57 = vadd.f32 %v1371_v56, %v1194_v46  ;;  %v1413_v58 = vpop.f32.mrf.mxu0  ;;  %v2435_v56 = vld [vmem:[#allocation17 + $0xc8] sm:$0xff] }
 0x61d   :  { %v3118_v11 = vadd.f32 %v1413_v58, %v1197_v53  ;;  %1898 = vmatpush.bf16.msrb.mxu0 %v2435_v56 }
 0x61e   :  { %v2210_v59 = vmul.f32 -1.702, %v3116_v57 }
 0x61f   :  { %v2213_v63 = vmul.f32 -1.702, %v3118_v11 }
 0x620   :  { %v1434_v2 = vmul.f32 1.442695, %v2210_v59 }
 0x621   :  { %v1440_v5 = vmul.f32 1.442695, %v2213_v63  ;;  %v1385_v6 = vpop.f32.mrf.mxu2  ;;  %1899 = vmatpush.bf16.msrb.mxu0 %v2434_v10 }
 0x622   :  { %2516 = vpow2.f32 %v1434_v2  ;;  %v3124_v7 = vadd.f32 %v1385_v6, %v1195_v60  ;;  %v1399_v9 = vpop.f32.mrf.mxu3  ;;  %v2420_v2 = vld [vmem:[#allocation17 + $0x50] sm:$0xff] }
 0x623   :  { %2518 = vpow2.f32 %v1440_v5  ;;  %v3128_v13 = vadd.f32 %v1399_v9, %v1196_v15  ;;  %v1373_v14 = vpop.f32.mrf.mxu1  ;;  %1869 = vmatpush.bf16.msra.mxu2 %v2420_v2  ;;  %v2410_v9 = vld [vmem:[#allocation17] sm:$0xff] }
 0x624   :  { %v2211_v16 = vmul.f32 -1.702, %v3124_v7  ;;  %v3131_v17 = vadd.f32 %v1373_v14, %v1194_v46  ;;  %v1415_v18 = vpop.f32.mrf.mxu0  ;;  %1857 = vmatpush.bf16.msra.mxu1 %v2410_v9 }
 0x625   :  { %v2212_v21 = vmul.f32 -1.702, %v3128_v13  ;;  %v3134_v22 = vadd.f32 %v1415_v18, %v1197_v53 }
 0x626   :  { %v1436_v23 = vmul.f32 1.442695, %v2211_v16  ;;  %v2214_v24 = vmul.f32 -1.702, %v3131_v17 }
 0x627   :  { %v2217_v28 = vmul.f32 -1.702, %v3134_v22  ;;  %v1438_v25 = vmul.f32 1.442695, %v2212_v21  ;;  %1870 = vmatpush.bf16.msra.mxu2 %v2419_v19 }
 0x628   :  { %v2517_v29 = vpop.eup %2516  ;;  %2520 = vpow2.f32 %v1436_v23  ;;  %v1442_v30 = vmul.f32 1.442695, %v2214_v24 }
 0x629   :  { %v2519_v33 = vpop.eup %2518  ;;  %v3138_v34 = vadd.f32 1.0, %v2517_v29  ;;  %v1448_v36 = vmul.f32 1.442695, %v2217_v28  ;;  %v1387_v37 = vpop.f32.mrf.mxu2 }
 0x62a   :  { %v3140_v38 = vadd.f32 1.0, %v2519_v33  ;;  %2522 = vpow2.f32 %v1442_v30  ;;  %v3142_v39 = vadd.f32 %v1387_v37, %v1195_v60  ;;  %v1401_v63 = vpop.f32.mrf.mxu3 }
 0x62b   :  { %2524 = vrcp.f32 %v3138_v34  ;;  %v3170_v16 = vadd.f32 %v1401_v63, %v1196_v15  ;;  %v1467_v18 = vand.u32 2147483647, %v3138_v34  ;;  %v1469_v21 = vand.u32 2147483648, %v3138_v34  ;;  %1871 = vmatpush.bf16.msra.mxu2 %v2418_v31 }
 0x62c   :  { %2526 = vrcp.f32 %v3140_v38  ;;  %v2215_v44 = vmul.f32 -1.702, %v3142_v39  ;;  %v1512_v23 = vand.u32 2147483647, %v3140_v38  ;;  %v1514_v27 = vand.u32 2147483648, %v3140_v38 }
 0x62d   :  { %2528 = vpow2.f32 %v1448_v36  ;;  %v2216_v28 = vmul.f32 -1.702, %v3170_v16  ;;  %vm1463_vm1 = vweird.f32 %v3138_v34  ;;  %vm3185_vm2 = vcmp.eq.f32.partialorder %v1467_v18, 8.507059e+37 }
 0x62e   :  { %v2521_v45 = vpop.eup %2520  ;;  %2530 = vpow2.f32 %v1438_v25  ;;  %v1444_v46 = vmul.f32 1.442695, %v2215_v44  ;;  %vm1508_vm3 = vweird.f32 %v3140_v38  ;;  %v1470_v36 = vor.u32 1.1754944e-38, %v1469_v21 }
 0x62f   :  { %v3147_v48 = vadd.f32 1.0, %v2521_v45  ;;  %vm3197_vm6 = vcmp.eq.f32.partialorder %v1512_v23, 8.507059e+37  ;;  %v1515_v44 = vor.u32 1.1754944e-38, %v1514_v27  ;;  %v1446_v47 = vmul.f32 1.442695, %v2216_v28 }
 0x630   :  { %v2523_v49 = vpop.eup %2522 }
 0x631   :  { %v3149_v52 = vpop.eup %2524  ;;  %2532 = vrcp.f32 %v3147_v48  ;;  %v3158_v62 = vadd.f32 1.0, %v2523_v49  ;;  %v1484_v21 = vand.u32 2147483648, %v3147_v48 }
 0x632   :  { %v3152_v53 = vpop.eup %2526  ;;  %v1459_v54 = vmul.f32 %v3149_v52, %v3138_v34  ;;  %2534 = vpow2.f32 %v1444_v46  ;;  %vm1464_vm0 = vweird.f32 %v3149_v52 }
 0x633   :  { %v2529_v58 = vpop.eup %2528  ;;  %v1504_v59 = vmul.f32 %v3152_v53, %v3140_v38  ;;  %2536 = vrcp.f32 %v3158_v62  ;;  %vm3192_vm4 = vmor %vm1463_vm1, %vm1464_vm0  ;;  %vm1509_vm5 = vweird.f32 %v3152_v53  ;;  %vm1523_vm7 = vweird.f32 %v3158_v62 }
 0x634   :  { %v2531_v60 = vpop.eup %2530  ;;  %v1460_v61 = vsub.f32 1.0, %v1459_v54  ;;  %v3160_v3 = vadd.f32 1.0, %v2529_v58  ;;  %v1527_v49 = vand.u32 2147483647, %v3158_v62  ;;  %v1529_v50 = vand.u32 2147483648, %v3158_v62  ;;  %vm3221_vm8 = vmor %vm1508_vm3, %vm1509_vm5 }
 0x635   :  { %v1505_v6 = vsub.f32 1.0, %v1504_v59  ;;  %v3166_v14 = vadd.f32 1.0, %v2531_v60  ;;  %vm1478_vm1 = vweird.f32 %v3147_v48  ;;  %v1485_v33 = vor.u32 1.1754944e-38, %v1484_v21 }
 0x636   :  { %v1461_v5 = vmul.f32 %v3149_v52, %v1460_v61  ;;  %2538 = vrcp.f32 %v3160_v3  ;;  %v1572_v59 = vand.u32 2147483647, %v3160_v3  ;;  %v1574_v60 = vand.u32 2147483648, %v3160_v3 }
 0x637   :  { %v3164_v12 = vpop.eup %2532  ;;  %v1506_v43 = vmul.f32 %v3152_v53, %v1505_v6  ;;  %2540 = vrcp.f32 %v3166_v14  ;;  %vm1528_vm13 = vcmp.eq.f32.partialorder %v1527_v49, 8.507059e+37  ;;  %vm1568_vm14 = vweird.f32 %v3160_v3 }
 0x638   :  { %v1462_v24 = vadd.f32 %v3149_v52, %v1461_v5  ;;  %v1474_v15 = vmul.f32 %v3164_v12, %v3147_v48  ;;  %v2535_v26 = vpop.eup %2534  ;;  %vm1479_vm11 = vweird.f32 %v3164_v12  ;;  %v1575_v19 = vor.u32 1.1754944e-38, %v1574_v60 }
 0x639   :  { %v2537_v29 = vpop.eup %2536  ;;  %v1507_v42 = vadd.f32 %v3152_v53, %v1506_v43  ;;  %v3206_v0 = vadd.f32 1.0, %v2535_v26  ;;  %vm1573_vm0 = vcmp.eq.f32.partialorder %v1572_v59, 8.507059e+37 }
 0x63a   :  { %v1519_v34 = vmul.f32 %v2537_v29, %v3158_v62  ;;  %v1466_v41 = vsel %vm3192_vm4, %v3149_v52, %v1462_v24  ;;  %v1475_v8 = vsub.f32 1.0, %v1474_v15  ;;  %vm1524_vm9 = vweird.f32 %v2537_v29 }
 0x63b   :  { %2542 = vrcp.f32 %v3206_v0  ;;  %v1471_v52 = vsel %vm3185_vm2, %v1470_v36, %v1466_v41  ;;  %v1511_v56 = vsel %vm3221_vm8, %v3152_v53, %v1507_v42  ;;  %vm1525_vm12 = vmor %vm1523_vm7, %vm1524_vm9  ;;  %v1530_v53 = vor.u32 1.1754944e-38, %v1529_v50 }
 0x63c   :  { %v2539_v25 = vpop.eup %2538  ;;  %v1520_v45 = vsub.f32 1.0, %v1519_v34  ;;  %v1476_v58 = vmul.f32 %v3164_v12, %v1475_v8  ;;  %2544 = vpow2.f32 %v1446_v47  ;;  %v1578_v2 = vmul.f32 %v1471_v52, %v3116_v57  ;;  %vm3250_vm2 = vmor %vm1478_vm1, %vm1479_vm11 }
 0x63d   :  { %v1564_v1 = vmul.f32 %v2539_v25, %v3160_v3  ;;  %v3213_v51 = vpop.eup %2540  ;;  %vm1569_vm10 = vweird.f32 %v2539_v25  ;;  %v1516_v9 = vsel %vm3197_vm6, %v1515_v44, %v1511_v56  ;;  %v1482_v3 = vand.u32 2147483647, %v3147_v48 }
 0x63e   :  { %v1521_v54 = vmul.f32 %v2537_v29, %v1520_v45  ;;  %v1489_v38 = vmul.f32 %v3213_v51, %v3166_v14  ;;  %v1477_v10 = vadd.f32 %v3164_v12, %v1476_v58  ;;  %vm1570_vm15 = vmor %vm1568_vm14, %vm1569_vm10  ;;  %v1581_v43 = vmul.f32 %v1516_v9, %v3118_v11 }
 0x63f   :  { %v1565_v55 = vsub.f32 1.0, %v1564_v1  ;;  %v1544_v48 = vand.u32 2147483648, %v3206_v0  ;;  %v1542_v32 = vand.u32 2147483647, %v3206_v0  ;;  %vm1483_vm4 = vcmp.eq.f32.partialorder %v1482_v3, 8.507059e+37 }
 0x640   :  { %v1522_v61 = vadd.f32 %v2537_v29, %v1521_v54  ;;  %v1481_v28 = vsel %vm3250_vm2, %v3164_v12, %v1477_v10  ;;  %vm1538_vm5 = vweird.f32 %v3206_v0  ;;  %vm1494_vm8 = vweird.f32 %v3213_v51 }
 0x641   :  { %v1566_v63 = vmul.f32 %v2539_v25, %v1565_v55  ;;  %v2543_v6 = vpop.eup %2542  ;;  %v1545_v12 = vor.u32 1.1754944e-38, %v1544_v48  ;;  %vm1543_vm7 = vcmp.eq.f32.partialorder %v1542_v32, 8.507059e+37  ;;  %v1499_v1 = vand.u32 2147483648, %v3166_v14 }
 0x642   :  { %v1526_v4 = vsel %vm1525_vm12, %v2537_v29, %v1522_v61  ;;  %v1534_v57 = vmul.f32 %v2543_v6, %v3206_v0  ;;  %v2545_v24 = vpop.eup %2544  ;;  %v1490_v29 = vsub.f32 1.0, %v1489_v38  ;;  %vm1539_vm3 = vweird.f32 %v2543_v6 }
 0x643   :  { %v1567_v5 = vadd.f32 %v2539_v25, %v1566_v63  ;;  %v1531_v18 = vsel %vm1528_vm13, %v1530_v53, %v1526_v4  ;;  %v1456_v30 = vadd.f32 1.0, %v2545_v24  ;;  %vm1540_vm6 = vmor %vm1538_vm5, %vm1539_vm3  ;;  %vm1493_vm9 = vweird.f32 %v3166_v14  ;;  %v2473_v63 = vld [vmem:[%s3296_s13] ss:$0 sm:$0xff] }
 0x644   :  { %v1582_v62 = vmul.f32 %v1531_v18, %v3131_v17  ;;  %v1535_v27 = vsub.f32 1.0, %v1534_v57  ;;  %v1491_v37 = vmul.f32 %v3213_v51, %v1490_v29  ;;  %v1497_v47 = vand.u32 2147483647, %v3166_v14  ;;  %vm1495_vm10 = vmor %vm1493_vm9, %vm1494_vm8 }
 0x645   :  { %v1571_v20 = vsel %vm1570_vm15, %v2539_v25, %v1567_v5  ;;  %2546 = vrcp.f32 %v1456_v30  ;;  %v1559_v50 = vand.u32 2147483648, %v1456_v30  ;;  %v1557_v52 = vand.u32 2147483647, %v1456_v30 }
 0x646   :  { %v1576_v23 = vsel %vm1573_vm0, %v1575_v19, %v1571_v20  ;;  %v1586_v17 = vpack.c.bf16 %v1582_v62, %v1578_v2  ;;  %v1536_v11 = vmul.f32 %v2543_v6, %v1535_v27  ;;  %v1492_v44 = vadd.f32 %v3213_v51, %v1491_v37 }
 0x647   :  { %v1585_v26 = vmul.f32 %v1576_v23, %v3134_v22  ;;  %v1486_v22 = vsel %vm1483_vm4, %v1485_v33, %v1481_v28  ;;  %v1500_v46 = vor.u32 1.1754944e-38, %v1499_v1  ;;  %vm1498_vm12 = vcmp.eq.f32.partialorder %v1497_v47, 8.507059e+37 }
 0x648   :  { %1858 = vmatmul.bf16.vlgmr.msra.gmra.mxu1 %v1586_v17  ;;  %v1537_v36 = vadd.f32 %v2543_v6, %v1536_v11  ;;  %v1579_v41 = vmul.f32 %v1486_v22, %v3124_v7  ;;  %v1496_v7 = vsel %vm1495_vm10, %v3213_v51, %v1492_v44  ;;  %vm1553_vm13 = vweird.f32 %v1456_v30 }
 0x649   :  { %v1589_v31 = vpack.c.bf16 %v1585_v26, %v1581_v43  ;;  %v1501_v55 = vsel %vm1498_vm12, %v1500_v46, %v1496_v7  ;;  %v1560_v56 = vor.u32 1.1754944e-38, %v1559_v50  ;;  %vm1558_vm15 = vcmp.eq.f32.partialorder %v1557_v52, 8.507059e+37 }
 0x64a   :  { %v1541_v34 = vsel %vm1540_vm6, %v2543_v6, %v1537_v36  ;;  %v1580_v14 = vmul.f32 %v1501_v55, %v3128_v13 }
 0x64b   :  { %1900 = vmatmul.bf16.vlgmr.msrb.gmra.mxu0 %v1589_v31  ;;  %v1546_v25 = vsel %vm1543_vm7, %v1545_v12, %v1541_v34  ;;  %v2547_v8 = vpop.eup %2546 }
 0x64c   :  { %v1583_v42 = vmul.f32 %v1546_v25, %v3142_v39  ;;  %v1549_v0 = vmul.f32 %v2547_v8, %v1456_v30  ;;  %vm1554_vm11 = vweird.f32 %v2547_v8 }
 0x64d   :  { %vm1555_vm14 = vmor %vm1553_vm13, %vm1554_vm11 }
 0x64e   :  { %v1587_v45 = vpack.c.bf16 %v1583_v42, %v1579_v41  ;;  %v1550_v49 = vsub.f32 1.0, %v1549_v0 }
 0x650   :  { %1872 = vmatmul.bf16.vlgmr.msra.gmra.mxu2 %v1587_v45  ;;  %v1551_v39 = vmul.f32 %v2547_v8, %v1550_v49 }
 0x652   :  { %v1552_v54 = vadd.f32 %v2547_v8, %v1551_v39 }
 0x654   :  { %v1556_v58 = vsel %vm1555_vm14, %v2547_v8, %v1552_v54 }
 0x655   :  { %v1561_v59 = vsel %vm1558_vm15, %v1560_v56, %v1556_v58 }
 0x656   :  { %v1584_v60 = vmul.f32 %v1561_v59, %v3170_v16 }
 0x658   :  { %v1588_v61 = vpack.c.bf16 %v1584_v60, %v1580_v14 }
 0x65a   :  { %1886 = vmatmul.bf16.vlgmr.msra.gmra.mxu3 %v1588_v61 }
 0x6c5   :  { %v1859_v51 = vpop.f32.mrf.mxu1 }
 0x6c6   :  { %v1860_v53 = vadd.f32 %v2473_v63, %v1859_v51 }
 0x6c8   :  { %v1901_v4 = vpop.f32.mrf.mxu0 }
 0x6cd   :  { %v1861_v5 = vpop.f32.mrf.mxu1 }
 0x6ce   :  { %v1862_v18 = vadd.f32 %v2473_v63, %v1861_v5 }
 0x6d0   :  { %v1903_v57 = vpop.f32.mrf.mxu0 }
 0x6d3   :  { %v1873_v38 = vpop.f32.mrf.mxu2 }
 0x6d4   :  { %v1874_v2 = vadd.f32 %v1873_v38, %v1860_v53 }
 0x6db   :  { %v1875_v10 = vpop.f32.mrf.mxu2 }
 0x6dc   :  { %v1876_v16 = vadd.f32 %v1875_v10, %v1862_v18 }
 0x6dd   :  { %v1887_v6 = vpop.f32.mrf.mxu3 }
 0x6de   :  { %v1888_v9 = vadd.f32 %v1887_v6, %v1874_v2 }
 0x6e0   :  { %v1902_v19 = vadd.f32 %v1901_v4, %v1888_v9 }
 0x6e2   :  { %v1906_v13 = vadd.f32 %v1902_v19, %v3083_v35 }
 0x6e4   :  { %1908 = vst [vmem:[#allocation19] sm:$0xff] %v1906_v13 }
 0x6e5   :  { %v1889_v62 = vpop.f32.mrf.mxu3 }
 0x6e6   :  { %v1890_v20 = vadd.f32 %v1889_v62, %v1876_v16 }
 0x6e8   :  { %v1904_v3 = vadd.f32 %v1903_v57, %v1890_v20 }
 0x6ea   :  { %v1907_v21 = vadd.f32 %v1904_v3, %v3087_v40 }
 0x6ec   :  { %1909 = vst [vmem:[#allocation19 + $0x8] sm:$0xff] %v1907_v21 }
 0x6ed   :  { %1922 = dma.vmem_to_hbm [thread:$0]  %s1915_s17, 256, %s1917_s6, [#allocation4], %s2833_s25, %s2833_s25, %s2834_s1  }
 0x6ee   :  { %2824 = dma.done.wait [#allocation4], 256  }
 0x6ef   :  { %2825 = vsyncadd [#allocation4], 4294967040 }
 0x6f0   :  { %1927 = vsyncpa [#allocation3], 1 }
 0x6f1   :  { %1928 = vsyncpa [#allocation6], 1 }
 0x6f2   :  { %1929 = vsyncpa [#allocation9], 1 }
 0x6f3   :  { %1930 = vsyncpa [#allocation12], 1 }
 0x6f4   :  { %1931 = vsyncpa [#allocation15], 1 }
 0x6f5   :  { %1932 = vsyncpa [#allocation18], 1 }
 0x6f6   :  { %1933 = vsyncpa [#allocation4], 1 }

// kernel: tpu_custom_call.1
= control target key start
LH: loop header
LB: loop body
LE: loop exit
PB: predicated region body
PF: predicated region fallthrough
CT: control target
= control target key end

     0   :  { %19 = vsyncpa [#allocation3], 0  ;;  %s3283_s0 = inlined_call_operand.hbm [shape: f32[2,8,128], index: 0, kind: input, shape index: {}]   ;;  %s3284_s1 = inlined_call_operand.hbm [shape: bf16[2,8,8], index: 1, kind: input, shape index: {}]   ;;  %s3285_s2 = inlined_call_operand.hbm [shape: f32[1,128], index: 2, kind: input, shape index: {}]   ;;  %s3286_s3 = inlined_call_operand.hbm [shape: f32[1,128], index: 3, kind: input, shape index: {}]   ;;  %s3287_s4 = inlined_call_operand.hbm [shape: bf16[128,384], index: 4, kind: input, shape index: {}]   ;;  %s3288_s5 = inlined_call_operand.vmem [shape: f32[1,384], index: 5, kind: input, shape index: {}]   ;;  %s3289_s6 = inlined_call_operand.hbm [shape: bf16[4,32,128], index: 6, kind: input, shape index: {}]   ;;  %s3290_s7 = inlined_call_operand.hbm [shape: f32[1,128], index: 7, kind: input, shape index: {}]   ;;  %s3291_s8 = inlined_call_operand.hbm [shape: f32[1,128], index: 8, kind: input, shape index: {}]   ;;  %s3292_s9 = inlined_call_operand.vmem [shape: f32[1,128], index: 9, kind: input, shape index: {}]   ;;  %s3293_s10 = inlined_call_operand.hbm [shape: bf16[128,512], index: 10, kind: input, shape index: {}]   ;;  %s3294_s11 = inlined_call_operand.vmem [shape: f32[1,512], index: 11, kind: input, shape index: {}]   ;;  %s3295_s12 = inlined_call_operand.hbm [shape: bf16[512,128], index: 12, kind: input, shape index: {}]   ;;  %s3296_s13 = inlined_call_operand.vmem [shape: f32[1,128], index: 13, kind: input, shape index: {}]   ;;  %s3297_s14 = inlined_call_operand.hbm [shape: f32[2,8,128], index: 14, kind: output, shape index: {}]  }
   0x1   :  { %20 = vsyncpa [#allocation6], 0 }
   0x2   :  { %21 = vsyncpa [#allocation9], 0 }
   0x3   :  { %22 = vsyncpa [#allocation12], 0 }
   0x4   :  { %23 = vsyncpa [#allocation15], 0 }
   0x5   :  { %24 = vsyncpa [#allocation18], 0  ;;  %s43_s15 = sshll.u32 %s3284_s1, 4  ;;  %s44_s15 = int_to_ptr.hbm [resolvable:$true] %s43_s15 }
   0x6   :  { %25 = vsyncpa [#allocation4], 0  ;;  %s2826_s16 = smov [#allocation5]   ;;  %s68_s20 = sshll.u32 %s3286_s3, 4  ;;  %s69_s20 = int_to_ptr.hbm [resolvable:$true] %s68_s20 }
   0x7   :  { %s45_s17 = sshll.u32 %s2826_s16, 4  ;;  %s2827_s21 = smov 64   ;;  %s46_s17 = int_to_ptr.vmem [resolvable:$true] %s45_s17 }
   0x8   :  { %s2828_s22 = smov 4   ;;  %s2829_s23 = smov [#allocation8]  }
   0x9   :  { %51 = dma.hbm_to_vmem [thread:$0]  %s44_s15, 128, %s46_s17, [#allocation6], %s2827_s21, %s2827_s21, %s2828_s22  }
   0xa   :  { %s70_s24 = sshll.u32 %s2829_s23, 4  ;;  %s93_s26 = sshll.u32 %s3289_s6, 4  ;;  %s71_s24 = int_to_ptr.vmem [resolvable:$true] %s70_s24  ;;  %s94_s26 = int_to_ptr.hbm [resolvable:$true] %s93_s26 }
   0xb   :  { %73 = dma.hbm_to_vmem [thread:$0]  %s69_s20, 16, %s71_s24, [#allocation9]  }
   0xc   :  { %s118_s3 = sshll.u32 %s3291_s8, 4  ;;  %s2830_s29 = smov [#allocation11]   ;;  %s119_s3 = int_to_ptr.hbm [resolvable:$true] %s118_s3 }
   0xd   :  { %s95_s30 = sshll.u32 %s2830_s29, 4  ;;  %s2831_s15 = smov [#allocation14]   ;;  %s96_s30 = int_to_ptr.vmem [resolvable:$true] %s95_s30 }
   0xe   :  { %101 = dma.hbm_to_vmem [thread:$0]  %s94_s26, 1024, %s96_s30, [#allocation12], %s2827_s21, %s2827_s21, %s2828_s22  }
   0xf   :  { %s120_s16 = sshll.u32 %s2831_s15, 4  ;;  %s30_s6 = sshll.u32 %s3283_s0, 4  ;;  %s121_s16 = int_to_ptr.vmem [resolvable:$true] %s120_s16  ;;  %s31_s6 = int_to_ptr.hbm [resolvable:$true] %s30_s6 }
  0x10   :  { %123 = dma.hbm_to_vmem [thread:$0]  %s119_s3, 16, %s121_s16, [#allocation15]  }
  0x11   :  { %s2832_s19 = smov [#allocation2]   ;;  %s57_s24 = sshll.u32 %s3285_s2, 4  ;;  %s58_s24 = int_to_ptr.hbm [resolvable:$true] %s57_s24 }
  0x12   :  { %s32_s20 = sshll.u32 %s2832_s19, 4  ;;  %s2833_s25 = smov 128   ;;  %s33_s20 = int_to_ptr.vmem [resolvable:$true] %s32_s20 }
  0x13   :  { %s2834_s1 = smov 8   ;;  %s2835_s26 = smov [#allocation7]  }
  0x14   :  { %38 = dma.hbm_to_vmem [thread:$0]  %s31_s6, 256, %s33_s20, [#allocation3], %s2833_s25, %s2833_s25, %s2834_s1  }
  0x15   :  { %s59_s27 = sshll.u32 %s2835_s26, 4  ;;  %s78_s3 = sshll.u32 %s3287_s4, 4  ;;  %s60_s27 = int_to_ptr.vmem [resolvable:$true] %s59_s27  ;;  %s79_s3 = int_to_ptr.hbm [resolvable:$true] %s78_s3 }
  0x16   :  { %62 = dma.hbm_to_vmem [thread:$0]  %s58_s24, 16, %s60_s27, [#allocation6]  }
  0x17   :  { %s2836_s29 = smov [#allocation10]   ;;  %s107_s16 = sshll.u32 %s3290_s7, 4  ;;  %s108_s16 = int_to_ptr.hbm [resolvable:$true] %s107_s16 }
  0x18   :  { %s80_s30 = sshll.u32 %s2836_s29, 4  ;;  %s2837_s17 = smov 192   ;;  %s81_s30 = int_to_ptr.vmem [resolvable:$true] %s80_s30 }
  0x19   :  { %s2838_s18 = smov 12   ;;  %s2839_s6 = smov [#allocation13]  }
  0x1a   :  { %86 = dma.hbm_to_vmem [thread:$0]  %s79_s3, 3072, %s81_s30, [#allocation9], %s2837_s17, %s2837_s17, %s2838_s18  }
  0x1b   :  { %s109_s19 = sshll.u32 %s2839_s6, 4  ;;  %s130_s4 = sshll.u32 %s3293_s10, 4  ;;  %s110_s19 = int_to_ptr.vmem [resolvable:$true] %s109_s19  ;;  %s131_s4 = int_to_ptr.hbm [resolvable:$true] %s130_s4 }
  0x1c   :  { %112 = dma.hbm_to_vmem [thread:$0]  %s108_s16, 16, %s110_s19, [#allocation12]  }
  0x1d   :  { %s2840_s23 = smov [#allocation16]   ;;  %s145_s7 = sshll.u32 %s3295_s12, 4  ;;  %s146_s7 = int_to_ptr.hbm [resolvable:$true] %s145_s7 }
  0x1e   :  { %s132_s24 = sshll.u32 %s2840_s23, 4  ;;  %s2841_s0 = smov 256   ;;  %s133_s24 = int_to_ptr.vmem [resolvable:$true] %s132_s24 }
  0x1f   :  { %s2842_s28 = smov 16   ;;  %s2843_s3 = smov [#allocation17]  }
  0x20   :  { %138 = dma.hbm_to_vmem [thread:$0]  %s131_s4, 4096, %s133_s24, [#allocation15], %s2841_s0, %s2841_s0, %s2842_s28  }
  0x21   :  { %s147_s29 = sshll.u32 %s2843_s3, 4  ;;  %s148_s29 = int_to_ptr.vmem [resolvable:$true] %s147_s29 }
  0x22   :  { %153 = dma.hbm_to_vmem [thread:$0]  %s146_s7, 4096, %s148_s29, [#allocation18], %s2827_s21, %s2827_s21, %s2828_s22  }
  0x23   :  { %2812 = dma.done.wait [#allocation3], 256  }
  0x24   :  { %2813 = vsyncadd [#allocation3], 4294967040 }
  0x25   :  { %2814 = dma.done.wait [#allocation6], 144  }
  0x26   :  { %2815 = vsyncadd [#allocation6], 4294967152 }
  0x27   :  { %2816 = dma.done.wait [#allocation9], 3088  }
  0x28   :  { %2817 = vsyncadd [#allocation9], 4294964208 }
  0x29   :  { %2818 = dma.done.wait [#allocation12], 1040  }
  0x2a   :  { %2819 = vsyncadd [#allocation12], 4294966256 }
  0x2b   :  { %2820 = dma.done.wait [#allocation15], 4112  }
  0x2c   :  { %2821 = vsyncadd [#allocation15], 4294963184 }
  0x2d   :  { %2822 = dma.done.wait [#allocation18], 4096  }
  0x2e   :  { %2823 = vsyncadd [#allocation18], 4294963200  ;;  %v2965_v0 = vld [vmem:[#allocation2] sm:$0xff]  ;;  %v2968_v1 = vld [vmem:[#allocation2 + $0x8] sm:$0xff]  ;;  %v2844_v2 = vmov 128.0   ;;  %vm521_vm7 = vcmask 261120  }
  0x2f   :  { %205 = vadd.xlane.f32.xlu0 %v2965_v0  ;;  %2474 = vrcp.f32 %v2844_v2  ;;  %v2020_v17 = vld [vmem:[#allocation10 + $0xa8] sm:$0xf]  ;;  %v2368_v18 = vld [vmem:[#allocation10 + $0xb0] sm:$0xf0]  ;;  %v2367_v19 = vld [vmem:[#allocation10 + $0xac] sm:$0xf] }
  0x30   :  { %v2021_v20 = vor.u32 %v2368_v18, %v2020_v17  ;;  %v2022_v21 = vld [vmem:[#allocation10 + $0xb4] sm:$0xf0]  ;;  %v2028_v22 = vld [vmem:[#allocation10 + $0xb0] sm:$0xf]  ;;  %v2369_v23 = vld [vmem:[#allocation10 + $0xb8] sm:$0xf0] }
  0x31   :  { %v2025_v24 = vor.u32 %v2367_v19, %v2022_v21  ;;  %v2029_v25 = vor.u32 %v2369_v23, %v2028_v22  ;;  %v2008_v26 = vld [vmem:[#allocation10 + $0x90] sm:$0xf]  ;;  %v2365_v27 = vld [vmem:[#allocation10 + $0x98] sm:$0xf0]  ;;  %v2364_v28 = vld [vmem:[#allocation10 + $0x94] sm:$0xf] }
  0x32   :  { %431 = vmatpush.bf16.msra.mxu0 %v2021_v20  ;;  %v2009_v29 = vor.u32 %v2365_v27, %v2008_v26  ;;  %v2010_v30 = vld [vmem:[#allocation10 + $0x9c] sm:$0xf0]  ;;  %v2016_v31 = vld [vmem:[#allocation10 + $0x98] sm:$0xf]  ;;  %v2366_v32 = vld [vmem:[#allocation10 + $0xa0] sm:$0xf0] }
  0x33   :  { %445 = vmatpush.bf16.msra.mxu1 %v2025_v24  ;;  %459 = vmatpush.bf16.msra.mxu2 %v2029_v25  ;;  %v2013_v33 = vor.u32 %v2364_v28, %v2010_v30  ;;  %v2017_v34 = vor.u32 %v2366_v32, %v2016_v31  ;;  %v1996_v35 = vld [vmem:[#allocation10 + $0x78] sm:$0xf]  ;;  %v2362_v36 = vld [vmem:[#allocation10 + $0x80] sm:$0xf0]  ;;  %v2361_v37 = vld [vmem:[#allocation10 + $0x7c] sm:$0xf] }
  0x34   :  { %v1997_v38 = vor.u32 %v2362_v36, %v1996_v35  ;;  %v1998_v39 = vld [vmem:[#allocation10 + $0x84] sm:$0xf0]  ;;  %v2004_v40 = vld [vmem:[#allocation10 + $0x80] sm:$0xf]  ;;  %v2363_v41 = vld [vmem:[#allocation10 + $0x88] sm:$0xf0] }
  0x35   :  { %v2475_v3 = vpop.eup %2474  ;;  %v2001_v42 = vor.u32 %v2361_v37, %v1998_v39  ;;  %v2005_v43 = vor.u32 %v2363_v41, %v2004_v40  ;;  %v1984_v44 = vld [vmem:[#allocation10 + $0x60] sm:$0xf]  ;;  %v2359_v45 = vld [vmem:[#allocation10 + $0x68] sm:$0xf0]  ;;  %v2358_v46 = vld [vmem:[#allocation10 + $0x64] sm:$0xf] }
  0x36   :  { %v210_v4 = vmul.f32 128.0, %v2475_v3  ;;  %vm214_vm0 = vweird.f32 %v2475_v3  ;;  %432 = vmatpush.bf16.msra.mxu0 %v2009_v29  ;;  %v1985_v47 = vor.u32 %v2359_v45, %v1984_v44  ;;  %v1986_v48 = vld [vmem:[#allocation10 + $0x6c] sm:$0xf0]  ;;  %v1992_v49 = vld [vmem:[#allocation10 + $0x68] sm:$0xf]  ;;  %s2845_s22 = smov 96  }
  0x37   :  { %207 = vadd.xlane.f32.xlu0 %v2968_v1  ;;  %446 = vmatpush.bf16.msra.mxu1 %v2013_v33  ;;  %v2360_v50 = vld [vmem:[#allocation10 + $0x70] sm:$0xf0]  ;;  %v1989_v51 = vor.u32 %v2358_v46, %v1986_v48  ;;  %v1972_v53 = vld [vmem:[#allocation10 + $0x48] sm:$0xf]  ;;  %v2355_v55 = vld [vmem:[#allocation10 + $0x4c] sm:$0xf] }
  0x38   :  { %v211_v5 = vsub.f32 1.0, %v210_v4  ;;  %460 = vmatpush.bf16.msra.mxu2 %v2017_v34  ;;  %v1993_v52 = vor.u32 %v2360_v50, %v1992_v49  ;;  %v2356_v54 = vld [vmem:[#allocation10 + $0x50] sm:$0xf0]  ;;  %v1974_v57 = vld [vmem:[#allocation10 + $0x54] sm:$0xf0]  ;;  %vm766_vm8 = vcmask 1043456  }
  0x39   :  { %v1973_v56 = vor.u32 %v2356_v54, %v1972_v53  ;;  %v1980_v58 = vld [vmem:[#allocation10 + $0x50] sm:$0xf]  ;;  %v2357_v59 = vld [vmem:[#allocation10 + $0x58] sm:$0xf0]  ;;  %v1977_v60 = vor.u32 %v2355_v55, %v1974_v57  ;;  %v2352_v2 = vld [vmem:[#allocation10 + $0x34] sm:$0xf] }
  0x3a   :  { %v212_v6 = vmul.f32 %v2475_v3, %v211_v5  ;;  %433 = vmatpush.bf16.msra.mxu0 %v1997_v38  ;;  %v1981_v61 = vor.u32 %v2357_v59, %v1980_v58  ;;  %v1960_v62 = vld [vmem:[#allocation10 + $0x30] sm:$0xf]  ;;  %v2353_v63 = vld [vmem:[#allocation10 + $0x38] sm:$0xf0]  ;;  %v1962_v4 = vld [vmem:[#allocation10 + $0x3c] sm:$0xf0] }
  0x3b   :  { %447 = vmatpush.bf16.msra.mxu1 %v2001_v42  ;;  %v1968_v5 = vld [vmem:[#allocation10 + $0x38] sm:$0xf]  ;;  %v1956_v17 = vld [vmem:[#allocation10 + $0x20] sm:$0xf]  ;;  %v2351_v18 = vld [vmem:[#allocation10 + $0x28] sm:$0xf0] }
  0x3c   :  { %v213_v7 = vadd.f32 %v2475_v3, %v212_v6  ;;  %461 = vmatpush.bf16.msra.mxu2 %v2005_v43  ;;  %v2354_v6 = vld [vmem:[#allocation10 + $0x40] sm:$0xf0]  ;;  %v1957_v20 = vor.u32 %v2351_v18, %v1956_v17  ;;  %v1936_v21 = vld [vmem:[#allocation10] sm:$0xf]  ;;  %v2347_v22 = vld [vmem:[#allocation10 + $0x8] sm:$0xf0] }
  0x3d   :  { %v2346_v23 = vld [vmem:[#allocation10 + $0x4] sm:$0xf]  ;;  %v1937_v25 = vor.u32 %v2347_v22, %v1936_v21  ;;  %v1938_v26 = vld [vmem:[#allocation10 + $0xc] sm:$0xf0]  ;;  %v1944_v27 = vld [vmem:[#allocation10 + $0x8] sm:$0xf] }
  0x3e   :  { %v2971_v8 = vsel %vm214_vm0, %v2475_v3, %v213_v7  ;;  %434 = vmatpush.bf16.msra.mxu0 %v1985_v47  ;;  %v1961_v3 = vor.u32 %v2353_v63, %v1960_v62  ;;  %v1965_v7 = vor.u32 %v2352_v2, %v1962_v4  ;;  %v2348_v28 = vld [vmem:[#allocation10 + $0x10] sm:$0xf0]  ;;  %v1941_v30 = vor.u32 %v2346_v23, %v1938_v26  ;;  %v2468_v49 = vld [vmem:[#allocation7] ss:$0 sm:$0xff]  ;;  %v2469_v54 = vld [vmem:[#allocation8] ss:$0 sm:$0xff] }
  0x3f   :  { %448 = vmatpush.bf16.msra.mxu1 %v1989_v51  ;;  %v1945_v31 = vor.u32 %v2348_v28, %v1944_v27  ;;  %vm682_vm9 = vcmask 64512   ;;  %s2847_s16 = smov [#allocation19]   ;;  %s1916_s6 = sshll.u32 %s3297_s14, 4  ;;  %s1917_s6 = int_to_ptr.hbm [resolvable:$true] %s1916_s6 }
  0x40   :  { %462 = vmatpush.bf16.msra.mxu2 %v1993_v52  ;;  %s1914_s17 = sshll.u32 %s2847_s16, 4  ;;  %s1915_s17 = int_to_ptr.vmem [resolvable:$true] %s1914_s17 }
  0x42   :  { %435 = vmatpush.bf16.msra.mxu0 %v1973_v56 }
  0x43   :  { %449 = vmatpush.bf16.msra.mxu1 %v1977_v60 }
  0x44   :  { %463 = vmatpush.bf16.msra.mxu2 %v1981_v61 }
  0x46   :  { %436 = vmatpush.bf16.msra.mxu0 %v1961_v3 }
  0x47   :  { %450 = vmatpush.bf16.msra.mxu1 %v1965_v7 }
  0xa2   :  { %v206_v9 = vpop.xlane.xlu0 %205 }
  0xa3   :  { %v216_v10 = vmul.f32 %v2971_v8, %v206_v9  ;;  %v1969_v9 = vor.u32 %v2354_v6, %v1968_v5 }
  0xa5   :  { %v2975_v11 = vsub.f32 %v2965_v0, %v216_v10  ;;  %464 = vmatpush.bf16.msra.mxu2 %v1969_v9  ;;  %v1948_v10 = vld [vmem:[#allocation10 + $0x18] sm:$0xf] }
  0xa7   :  { %v220_v12 = vmul.f32 %v2975_v11, %v2975_v11 }
  0xa9   :  { %222 = vadd.xlane.f32.xlu1 %v220_v12  ;;  %v2350_v12 = vld [vmem:[#allocation10 + $0x20] sm:$0xf0]  ;;  %465 = vmatpush.bf16.msra.mxu2 %v1957_v20 }
  0xaa   :  { %v208_v13 = vpop.xlane.xlu0 %207 }
  0xab   :  { %v217_v14 = vmul.f32 %v2971_v8, %v208_v13  ;;  %v2349_v13 = vld [vmem:[#allocation10 + $0x1c] sm:$0xf] }
  0xad   :  { %v2981_v15 = vsub.f32 %v2968_v1, %v217_v14  ;;  %v1949_v14 = vor.u32 %v2350_v12, %v1948_v10  ;;  %466 = vmatpush.bf16.msra.mxu2 %v1945_v31 }
  0xaf   :  { %v221_v16 = vmul.f32 %v2981_v15, %v2981_v15  ;;  %437 = vmatpush.bf16.msra.mxu0 %v1949_v14 }
  0xb1   :  { %224 = vadd.xlane.f32.xlu1 %v221_v16  ;;  %v1950_v16 = vld [vmem:[#allocation10 + $0x24] sm:$0xf0] }
  0xb2   :  { %v1953_v19 = vor.u32 %v2349_v13, %v1950_v16 }
  0xb3   :  { %438 = vmatpush.bf16.msra.mxu0 %v1937_v25 }
  0xb4   :  { %451 = vmatpush.bf16.msra.mxu1 %v1953_v19 }
  0xb8   :  { %452 = vmatpush.bf16.msra.mxu1 %v1941_v30 }
 0x11c   :  { %v223_v24 = vpop.xlane.xlu1 %222 }
 0x11d   :  { %v226_v29 = vmul.f32 %v223_v24, %v2971_v8 }
 0x11f   :  { %v228_v32 = vadd.f32 1e-05, %v226_v29 }
 0x121   :  { %2476 = vrsqrt.f32 %v228_v32  ;;  %vm236_vm2 = vweird.f32 %v228_v32 }
 0x124   :  { %v225_v33 = vpop.xlane.xlu1 %224 }
 0x125   :  { %v227_v34 = vmul.f32 %v225_v33, %v2971_v8 }
 0x127   :  { %v2477_v35 = vpop.eup %2476  ;;  %v229_v36 = vadd.f32 1e-05, %v227_v34 }
 0x128   :  { %v231_v37 = vmul.f32 %v2477_v35, %v228_v32  ;;  %vm237_vm1 = vweird.f32 %v2477_v35 }
 0x129   :  { %2478 = vrsqrt.f32 %v229_v36  ;;  %vm238_vm3 = vmor %vm236_vm2, %vm237_vm1  ;;  %vm246_vm5 = vweird.f32 %v229_v36 }
 0x12a   :  { %v232_v38 = vmul.f32 %v2477_v35, %v231_v37 }
 0x12c   :  { %v233_v39 = vmul.f32 0.5, %v232_v38  ;;  %v2443_v38 = vld [vmem:[#allocation5] sm:$0xff]  }
 0x12e   :  { %v234_v40 = vsub.f32 1.5, %v233_v39  ;;  %v2444_v39 = vunpack.c.l.bf16 %v2443_v38 }
 0x12f   :  { %v2479_v41 = vpop.eup %2478 }
 0x130   :  { %v235_v42 = vmul.f32 %v2477_v35, %v234_v40  ;;  %v241_v43 = vmul.f32 %v2479_v41, %v229_v36  ;;  %vm247_vm4 = vweird.f32 %v2479_v41 }
 0x131   :  { %vm248_vm6 = vmor %vm246_vm5, %vm247_vm4 }
 0x132   :  { %v242_v44 = vmul.f32 %v2479_v41, %v241_v43  ;;  %v239_v45 = vsel %vm238_vm3, %v2477_v35, %v235_v42 }
 0x133   :  { %v250_v48 = vmul.f32 %v239_v45, %v2975_v11  ;;  %v295_v11 = vld [vmem:[%s3288_s5] sm:$0x7]  ;;  %s2846_s5 = smov 32  }
 0x134   :  { %v243_v46 = vmul.f32 0.5, %v242_v44  ;;  %v298_v59 = vperm.slane %v295_v11, 1  ;;  %v297_v63 = vperm.slane %v295_v11, 0  ;;  %v299_v22 = vperm.slane %v295_v11, 2 }
 0x135   :  { %v255_v53 = vmul.f32 %v2468_v49, %v250_v48  ;;  %v2445_v48 = vunpack.c.h.bf16 %v2443_v38 }
 0x136   :  { %v244_v47 = vsub.f32 1.5, %v243_v46 }
 0x137   :  { %v260_v56 = vadd.f32 %v2469_v54, %v255_v53 }
 0x138   :  { %v245_v50 = vmul.f32 %v2479_v41, %v244_v47 }
 0x13a   :  { %v249_v51 = vsel %vm248_vm6, %v2479_v41, %v245_v50 }
 0x13b   :  { %v251_v52 = vmul.f32 %v249_v51, %v2981_v15 }
 0x13d   :  { %v256_v55 = vmul.f32 %v2468_v49, %v251_v52 }
 0x13f   :  { %v261_v57 = vadd.f32 %v2469_v54, %v256_v55 }
 0x141   :  { %v262_v58 = vpack.c.bf16 %v261_v57, %v260_v56 }
 0x143   :  { %439 = vmatmul.bf16.vlgmr.msra.gmra.mxu0 %v262_v58  ;;  %453 = vmatmul.bf16.vlgmr.msra.gmra.mxu1 %v262_v58 }
 0x144   :  { %467 = vmatmul.bf16.vlgmr.msra.gmra.mxu2 %v262_v58 }
 0x1c0   :  { %v454_v60 = vpop.f32.mrf.mxu1  ;;  %v440_v15 = vpop.f32.mrf.mxu0 }
 0x1c1   :  { %v455_v61 = vadd.f32 %v454_v60, %v298_v59  ;;  %v441_v3 = vadd.f32 %v440_v15, %v297_v63 }
 0x1c3   :  { %v489_v62 = vpack.c.bf16 %v455_v61, %v455_v61  ;;  %v473_v7 = vpack.c.bf16 %v441_v3, %v441_v3 }
 0x1c5   :  { %493 = vrot.lane.b32.xlu2 %v489_v62, %s2845_s22  ;;  %v526_v2 = vsel %vm521_vm7, %v489_v62, 0 }
 0x1c6   :  { %535 = vmatpush.bf16.xpose.msra.mxu3 %v526_v2 }
 0x1c7   :  { %v468_v18 = vpop.f32.mrf.mxu2 }
 0x1c8   :  { %v456_v4 = vpop.f32.mrf.mxu1  ;;  %v442_v10 = vpop.f32.mrf.mxu0  ;;  %v469_v31 = vadd.f32 %v468_v18, %v299_v22 }
 0x1c9   :  { %v457_v5 = vadd.f32 %v456_v4, %v298_v59  ;;  %v443_v12 = vadd.f32 %v442_v10, %v297_v63 }
 0x1ca   :  { %v3017_v33 = vpack.c.bf16 %v469_v31, %v469_v31 }
 0x1cb   :  { %v490_v6 = vpack.c.bf16 %v457_v5, %v457_v5  ;;  %v474_v13 = vpack.c.bf16 %v443_v12, %v443_v12 }
 0x1cc   :  { %v768_v37 = vsel %vm766_vm8, %v3017_v33, 0 }
 0x1cd   :  { %495 = vrot.lane.b32.xlu1 %v490_v6, %s2845_s22  ;;  %499 = vrot.lane.b32.xlu0 %v490_v6, %s2827_s21  ;;  %v545_v9 = vsel %vm521_vm7, %v490_v6, 0 }
 0x1ce   :  { %477 = vrot.lane.b32.xlu2 %v473_v7, %s2845_s22  ;;  %2030 = vmatmul.msk.bf16.vlgmr.msra.gmra.mxu3 %vm521_vm7, %v473_v7 }
 0x1cf   :  { %554 = vmatpush.bf16.xpose.msrb.mxu3 %v545_v9  ;;  %v470_v21 = vpop.f32.mrf.mxu2 }
 0x1d0   :  { %v471_v24 = vadd.f32 %v470_v21, %v299_v22 }
 0x1d2   :  { %v3011_v25 = vpack.c.bf16 %v471_v24, %v471_v24 }
 0x1d4   :  { %v787_v32 = vsel %vm766_vm8, %v3011_v25, 0 }
 0x1d5   :  { %497 = vrot.lane.b32.xlu0 %v489_v62, %s2827_s21  ;;  %481 = vrot.lane.b32.xlu1 %v473_v7, %s2827_s21 }
 0x1d6   :  { %501 = vrot.lane.b32.xlu2 %v489_v62, %s2846_s5 }
 0x1dd   :  { %503 = vrot.lane.b32.xlu0 %v490_v6, %s2846_s5 }
 0x1de   :  { %483 = vrot.lane.b32.xlu2 %v474_v13, %s2827_s21  ;;  %2031 = vmatmul.msk.bf16.vlgmr.msrb.gmra.mxu3 %vm521_vm7, %v474_v13 }
 0x1e6   :  { %479 = vrot.lane.b32.xlu2 %v474_v13, %s2845_s22 }
 0x1ee   :  { %485 = vrot.lane.b32.xlu2 %v473_v7, %s2846_s5 }
 0x1f6   :  { %487 = vrot.lane.b32.xlu2 %v474_v13, %s2846_s5 }
 0x21f   :  { %v494_v14 = vpop.permute.xlu2 %493 }
 0x220   :  { %v564_v16 = vsel %vm521_vm7, %v494_v14, 0 }
 0x221   :  { %573 = vmatpush.bf16.xpose.msra.mxu3 %v564_v16 }
 0x228   :  { %v478_v17 = vpop.permute.xlu2 %477 }
 0x229   :  { %2032 = vmatmul.msk.bf16.vlgmr.msra.gmra.mxu3 %vm521_vm7, %v478_v17 }
 0x230   :  { %v502_v19 = vpop.permute.xlu2 %501 }
 0x231   :  { %v640_v20 = vsel %vm521_vm7, %v502_v19, 0 }
 0x232   :  { %649 = vmatpush.bf16.xpose.msrb.mxu3 %v640_v20 }
 0x238   :  { %v484_v23 = vpop.permute.xlu2 %483 }
 0x23f   :  { %v496_v26 = vpop.permute.xlu1 %495  ;;  %v500_v27 = vpop.permute.xlu0 %499 }
 0x240   :  { %v480_v28 = vpop.permute.xlu2 %479  ;;  %v583_v29 = vsel %vm521_vm7, %v496_v26, 0  ;;  %v621_v30 = vsel %vm521_vm7, %v500_v27, 0 }
 0x241   :  { %592 = vmatpush.bf16.xpose.msrb.mxu0 %v583_v29  ;;  %630 = vmatpush.bf16.xpose.msrb.mxu2 %v621_v30 }
 0x247   :  { %v498_v34 = vpop.permute.xlu0 %497  ;;  %v482_v40 = vpop.permute.xlu1 %481 }
 0x248   :  { %v486_v35 = vpop.permute.xlu2 %485  ;;  %2033 = vmatmul.msk.bf16.vlgmr.msrb.gmra.mxu0 %vm521_vm7, %v480_v28  ;;  %2035 = vmatmul.msk.bf16.vlgmr.msrb.gmra.mxu2 %vm521_vm7, %v484_v23  ;;  %v602_v36 = vsel %vm521_vm7, %v498_v34, 0 }
 0x249   :  { %796 = vmatpush.bf16.msra.mxu2 %v787_v32  ;;  %2036 = vmatmul.msk.bf16.vlgmr.msrb.gmra.mxu3 %vm521_vm7, %v486_v35 }
 0x24a   :  { %611 = vmatpush.bf16.xpose.msrb.mxu1 %v602_v36 }
 0x24f   :  { %v504_v41 = vpop.permute.xlu0 %503 }
 0x250   :  { %v659_v42 = vsel %vm521_vm7, %v504_v41, 0  ;;  %v488_v46 = vpop.permute.xlu2 %487 }
 0x251   :  { %2034 = vmatmul.msk.bf16.vlgmr.msrb.gmra.mxu1 %vm521_vm7, %v482_v40  ;;  %v537_v43 = vpop.f32.mrf.mxu3  ;;  %668 = vmatpush.bf16.xpose.msra.mxu0 %v659_v42 }
 0x252   :  { %777 = vmatpush.bf16.msra.mxu1 %v768_v37  ;;  %v674_v44 = vadd.f32 %v2444_v39, %v537_v43 }
 0x254   :  { %v683_v45 = vsel %vm682_vm9, %v674_v44, -inf }
 0x255   :  { %684 = vmax.xlane.f32.xlu0 %v683_v45 }
 0x258   :  { %2037 = vmatmul.msk.bf16.vlgmr.msra.gmra.mxu0 %vm521_vm7, %v488_v46 }
 0x259   :  { %v539_v47 = vpop.f32.mrf.mxu3 }
 0x261   :  { %v556_v49 = vpop.f32.mrf.mxu3 }
 0x262   :  { %v675_v50 = vadd.f32 %v2445_v48, %v556_v49 }
 0x264   :  { %v686_v51 = vsel %vm682_vm9, %v675_v50, -inf }
 0x265   :  { %687 = vmax.xlane.f32.xlu1 %v686_v51 }
 0x269   :  { %511 = vrot.lane.b32.xlu0 %v3011_v25, %s2845_s22  ;;  %v558_v52 = vpop.f32.mrf.mxu3 }
 0x2ac   :  { %v575_v53 = vpop.f32.mrf.mxu3 }
 0x2ad   :  { %v676_v54 = vadd.f32 %v2444_v39, %v575_v53 }
 0x2af   :  { %v689_v55 = vsel %vm682_vm9, %v676_v54, -inf }
 0x2b0   :  { %690 = vmax.xlane.f32.xlu2 %v689_v55 }
 0x2b4   :  { %v577_v56 = vpop.f32.mrf.mxu3 }
 0x2c5   :  { %v594_v57 = vpop.f32.mrf.mxu0 }
 0x2c6   :  { %v677_v7 = vadd.f32 %v2445_v48, %v594_v57 }
 0x2c8   :  { %v685_v58 = vpop.xlane.xlu0 %684  ;;  %509 = vrot.lane.b32.xlu2 %v3017_v33, %s2845_s22  ;;  %v692_v16 = vsel %vm682_vm9, %v677_v7, -inf }
 0x2c9   :  { %v707_v11 = vsub.f32 %v674_v44, %v685_v58 }
 0x2cb   :  { %v715_v59 = vmul.f32 1.442695, %v707_v11  ;;  %v632_v60 = vpop.f32.mrf.mxu2 }
 0x2cc   :  { %v3035_v61 = vadd.f32 %v2445_v48, %v632_v60  ;;  %v651_v62 = vpop.f32.mrf.mxu3 }
 0x2cd   :  { %2480 = vpow2.f32 %v715_v59  ;;  %v596_v63 = vpop.f32.mrf.mxu0  ;;  %v680_v20 = vadd.f32 %v2444_v39, %v651_v62 }
 0x2ce   :  { %v613_v15 = vpop.f32.mrf.mxu1  ;;  %v698_v3 = vsel %vm682_vm9, %v3035_v61, -inf }
 0x2cf   :  { %v678_v2 = vadd.f32 %v2444_v39, %v613_v15  ;;  %699 = vmax.xlane.f32.xlu0 %v698_v3  ;;  %v701_v23 = vsel %vm682_vm9, %v680_v20, -inf }
 0x2d1   :  { %v695_v4 = vsel %vm682_vm9, %v678_v2, -inf }
 0x2d2   :  { %696 = vmax.xlane.f32.xlu1 %v695_v4 }
 0x2d3   :  { %v2481_v5 = vpop.eup %2480  ;;  %v634_v6 = vpop.f32.mrf.mxu2 }
 0x2d4   :  { %v755_v9 = vpack.c.bf16 %v2481_v5, %v2481_v5  ;;  %v653_v10 = vpop.f32.mrf.mxu3  ;;  %v731_v31 = vsel %vm682_vm9, %v2481_v5, 0.0 }
 0x2d5   :  { %v670_v13 = vpop.f32.mrf.mxu0 }
 0x2d6   :  { %v615_v12 = vpop.f32.mrf.mxu1  ;;  %2038 = vmatmul.msk.bf16.vlgmr.msra.gmra.mxu1 %vm682_vm9, %v755_v9  ;;  %v3049_v27 = vadd.f32 %v2445_v48, %v670_v13 }
 0x2d8   :  { %v688_v14 = vpop.xlane.xlu1 %687  ;;  %v704_v28 = vsel %vm682_vm9, %v3049_v27, -inf }
 0x2d9   :  { %v708_v17 = vsub.f32 %v675_v50, %v688_v14 }
 0x2da   :  { %693 = vmax.xlane.f32.xlu1 %v692_v16 }
 0x2db   :  { %v717_v18 = vmul.f32 1.442695, %v708_v17  ;;  %v512_v19 = vpop.permute.xlu0 %511 }
 0x2dc   :  { %v825_v21 = vsel %vm766_vm8, %v512_v19, 0  ;;  %v2371_v19 = vld [vmem:[#allocation11 + $0x8] sm:$0xff] }
 0x2dd   :  { %2482 = vpow2.f32 %v717_v18  ;;  %834 = vmatpush.bf16.msrb.mxu0 %v825_v21  ;;  %v672_v22 = vpop.f32.mrf.mxu0 }
 0x2e2   :  { %702 = vmax.xlane.f32.xlu1 %v701_v23 }
 0x2e3   :  { %v2483_v24 = vpop.eup %2482  ;;  %513 = vrot.lane.b32.xlu0 %v3017_v33, %s2827_s21 }
 0x2e4   :  { %v756_v26 = vpack.c.bf16 %v2483_v24, %v2483_v24  ;;  %v734_v29 = vsel %vm682_vm9, %v2483_v24, 0.0 }
 0x2e6   :  { %2039 = vmatmul.msk.bf16.vlgmr.msra.gmra.mxu2 %vm682_vm9, %v756_v26 }
 0x2eb   :  { %517 = vrot.lane.b32.xlu0 %v3017_v33, %s2846_s5 }
 0x2f1   :  { %705 = vmax.xlane.f32.xlu2 %v704_v28 }
 0x2f3   :  { %519 = vrot.lane.b32.xlu0 %v3011_v25, %s2846_s5 }
 0x2fb   :  { %515 = vrot.lane.b32.xlu1 %v3011_v25, %s2827_s21 }
 0x31d   :  { %735 = vadd.xlane.f32.xlu0 %v734_v29 }
 0x323   :  { %v691_v30 = vpop.xlane.xlu2 %690 }
 0x324   :  { %v709_v32 = vsub.f32 %v676_v54, %v691_v30 }
 0x325   :  { %732 = vadd.xlane.f32.xlu1 %v731_v31 }
 0x326   :  { %v719_v33 = vmul.f32 1.442695, %v709_v32 }
 0x328   :  { %2484 = vpow2.f32 %v719_v33 }
 0x32b   :  { %v510_v34 = vpop.permute.xlu2 %509 }
 0x32c   :  { %v806_v35 = vsel %vm766_vm8, %v510_v34, 0  ;;  %v2373_v34 = vld [vmem:[#allocation11 + $0x18] sm:$0xff] }
 0x32d   :  { %815 = vmatpush.bf16.msra.mxu3 %v806_v35 }
 0x32e   :  { %v2485_v36 = vpop.eup %2484 }
 0x32f   :  { %v757_v37 = vpack.c.bf16 %v2485_v36, %v2485_v36  ;;  %v737_v57 = vsel %vm682_vm9, %v2485_v36, 0.0  ;;  %v2372_v36 = vld [vmem:[#allocation11 + $0x10] sm:$0xff] }
 0x331   :  { %2040 = vmatmul.msk.bf16.vlgmr.msra.gmra.mxu3 %vm682_vm9, %v757_v37 }
 0x342   :  { %v700_v40 = vpop.xlane.xlu0 %699 }
 0x343   :  { %v712_v44 = vsub.f32 %v3035_v61, %v700_v40 }
 0x345   :  { %v697_v38 = vpop.xlane.xlu1 %696  ;;  %v725_v47 = vmul.f32 1.442695, %v712_v44 }
 0x346   :  { %v711_v25 = vsub.f32 %v678_v2, %v697_v38 }
 0x348   :  { %v723_v39 = vmul.f32 1.442695, %v711_v25 }
 0x34a   :  { %2486 = vpow2.f32 %v723_v39  ;;  %v2377_v39 = vld [vmem:[#allocation11 + $0x38] sm:$0xff] }
 0x34d   :  { %v694_v41 = vpop.xlane.xlu1 %693 }
 0x34e   :  { %v710_v42 = vsub.f32 %v677_v7, %v694_v41  ;;  %v2376_v41 = vld [vmem:[#allocation11 + $0x30] sm:$0xff] }
 0x350   :  { %v2487_v43 = vpop.eup %2486  ;;  %v721_v45 = vmul.f32 1.442695, %v710_v42 }
 0x351   :  { %v743_v46 = vsel %vm682_vm9, %v2487_v43, 0.0  ;;  %v759_v55 = vpack.c.bf16 %v2487_v43, %v2487_v43  ;;  %v2375_v43 = vld [vmem:[#allocation11 + $0x28] sm:$0xff] }
 0x352   :  { %2488 = vpow2.f32 %v721_v45  ;;  %744 = vadd.xlane.f32.xlu2 %v743_v46 }
 0x353   :  { %v779_v48 = vpop.f32.mrf.mxu1  ;;  %2490 = vpow2.f32 %v725_v47 }
 0x355   :  { %v703_v49 = vpop.xlane.xlu1 %702  ;;  %v514_v51 = vpop.permute.xlu0 %513 }
 0x356   :  { %v713_v50 = vsub.f32 %v680_v20, %v703_v49  ;;  %v844_v52 = vsel %vm766_vm8, %v514_v51, 0  ;;  %v2370_v20 = vld [vmem:[#allocation11] sm:$0xff] }
 0x357   :  { %853 = vmatpush.bf16.msrb.mxu1 %v844_v52 }
 0x358   :  { %v2489_v53 = vpop.eup %2488  ;;  %v727_v54 = vmul.f32 1.442695, %v713_v50  ;;  %v2374_v50 = vld [vmem:[#allocation11 + $0x20] sm:$0xff] }
 0x359   :  { %v758_v56 = vpack.c.bf16 %v2489_v53, %v2489_v53  ;;  %v740_v58 = vsel %vm682_vm9, %v2489_v53, 0.0  ;;  %v2491_v59 = vpop.eup %2490 }
 0x35a   :  { %2492 = vpow2.f32 %v727_v54  ;;  %738 = vadd.xlane.f32.xlu2 %v737_v57  ;;  %741 = vadd.xlane.f32.xlu1 %v740_v58  ;;  %v746_v15 = vsel %vm682_vm9, %v2491_v59, 0.0  ;;  %v760_v14 = vpack.c.bf16 %v2491_v59, %v2491_v59 }
 0x35b   :  { %2041 = vmatmul.msk.bf16.vlgmr.msrb.gmra.mxu0 %vm682_vm9, %v758_v56  ;;  %2042 = vmatmul.msk.bf16.vlgmr.msrb.gmra.mxu1 %vm682_vm9, %v759_v55  ;;  %v781_v11 = vpop.f32.mrf.mxu1 }
 0x35c   :  { %975 = vmatpush.bf16.msra.mxu1 %v2373_v34 }
 0x35d   :  { %v518_v60 = vpop.permute.xlu0 %517 }
 0x35e   :  { %v882_v61 = vsel %vm766_vm8, %v518_v60, 0 }
 0x35f   :  { %891 = vmatpush.bf16.msrb.mxu3 %v882_v61 }
 0x360   :  { %v2493_v62 = vpop.eup %2492  ;;  %976 = vmatpush.bf16.msra.mxu1 %v2372_v36 }
 0x361   :  { %v761_v63 = vpack.c.bf16 %v2493_v62, %v2493_v62  ;;  %v749_v7 = vsel %vm682_vm9, %v2493_v62, 0.0 }
 0x362   :  { %747 = vadd.xlane.f32.xlu2 %v746_v15 }
 0x363   :  { %2044 = vmatmul.msk.bf16.vlgmr.msrb.gmra.mxu3 %vm682_vm9, %v761_v63 }
 0x364   :  { %v706_v2 = vpop.xlane.xlu2 %705  ;;  %1048 = vmatpush.bf16.msra.mxu3 %v2375_v43 }
 0x365   :  { %v714_v3 = vsub.f32 %v3049_v27, %v706_v2  ;;  %v520_v4 = vpop.permute.xlu0 %519 }
 0x366   :  { %v901_v5 = vsel %vm766_vm8, %v520_v4, 0 }
 0x367   :  { %v729_v6 = vmul.f32 1.442695, %v714_v3  ;;  %910 = vmatpush.bf16.msra.mxu0 %v901_v5 }
 0x368   :  { %1049 = vmatpush.bf16.msra.mxu3 %v2374_v50 }
 0x369   :  { %2494 = vpow2.f32 %v729_v6  ;;  %v798_v9 = vpop.f32.mrf.mxu2 }
 0x36a   :  { %750 = vadd.xlane.f32.xlu2 %v749_v7 }
 0x36b   :  { %1089 = vmatpush.bf16.msrb.mxu0 %v2377_v39 }
 0x36d   :  { %v516_v10 = vpop.permute.xlu1 %515 }
 0x36e   :  { %v863_v12 = vsel %vm766_vm8, %v516_v10, 0 }
 0x36f   :  { %872 = vmatpush.bf16.msrb.mxu2 %v863_v12  ;;  %v2495_v13 = vpop.eup %2494  ;;  %1090 = vmatpush.bf16.msrb.mxu0 %v2376_v41 }
 0x370   :  { %v762_v16 = vpack.c.bf16 %v2495_v13, %v2495_v13  ;;  %v752_v17 = vsel %vm682_vm9, %v2495_v13, 0.0 }
 0x371   :  { %v800_v18 = vpop.f32.mrf.mxu2  ;;  %753 = vadd.xlane.f32.xlu0 %v752_v17 }
 0x372   :  { %2043 = vmatmul.msk.bf16.vlgmr.msrb.gmra.mxu2 %vm682_vm9, %v760_v14  ;;  %2045 = vmatmul.msk.bf16.vlgmr.msra.gmra.mxu0 %vm682_vm9, %v762_v16 }
 0x373   :  { %1009 = vmatpush.bf16.msra.mxu2 %v2371_v19 }
 0x377   :  { %1010 = vmatpush.bf16.msra.mxu2 %v2370_v20 }
 0x390   :  { %v736_v21 = vpop.xlane.xlu0 %735 }
 0x391   :  { %2496 = vrcp.f32 %v736_v21 }
 0x397   :  { %v2497_v23 = vpop.eup %2496 }
 0x398   :  { %v733_v22 = vpop.xlane.xlu1 %732  ;;  %v925_v24 = vmul.f32 %v2497_v23, %v798_v9 }
 0x399   :  { %2498 = vrcp.f32 %v733_v22 }
 0x39a   :  { %v933_v27 = vpack.c.bf16 %v925_v24, %v925_v24 }
 0x39c   :  { %v986_v30 = vunpack.c.l.b16 %v933_v27 }
 0x39f   :  { %v2499_v26 = vpop.eup %2498 }
 0x3a0   :  { %v924_v28 = vmul.f32 %v2499_v26, %v779_v48 }
 0x3a2   :  { %v932_v29 = vpack.c.bf16 %v924_v28, %v924_v28 }
 0x3a4   :  { %v985_v31 = vunpack.c.l.b16 %v932_v29  ;;  %v2470_v29 = vld [vmem:[#allocation13] ss:$0 sm:$0xff] }
 0x3a6   :  { %v987_v32 = vpack.c.b16 %v986_v30, %v985_v31 }
 0x3a8   :  { %2063 = vmatmul.msk.bf16.vlgmr.msra.gmra.mxu2 %vm521_vm7, %v987_v32 }
 0x3b4   :  { %v817_v33 = vpop.f32.mrf.mxu3 }
 0x3bc   :  { %v819_v35 = vpop.f32.mrf.mxu3 }
 0x3c5   :  { %v745_v37 = vpop.xlane.xlu2 %744 }
 0x3cd   :  { %v739_v38 = vpop.xlane.xlu2 %738  ;;  %v742_v25 = vpop.xlane.xlu1 %741 }
 0x3ce   :  { %2500 = vrcp.f32 %v739_v38 }
 0x3cf   :  { %2502 = vrcp.f32 %v742_v25 }
 0x3d4   :  { %v2501_v40 = vpop.eup %2500 }
 0x3d5   :  { %v926_v42 = vmul.f32 %v2501_v40, %v817_v33  ;;  %v2503_v44 = vpop.eup %2502  ;;  %v748_v47 = vpop.xlane.xlu2 %747 }
 0x3d7   :  { %v934_v49 = vpack.c.bf16 %v926_v42, %v926_v42 }
 0x3d8   :  { %v836_v45 = vpop.f32.mrf.mxu0  ;;  %v855_v46 = vpop.f32.mrf.mxu1 }
 0x3d9   :  { %v927_v48 = vmul.f32 %v2503_v44, %v836_v45  ;;  %v951_v52 = vunpack.c.l.b16 %v934_v49  ;;  %v2406_v49 = vld [vmem:[#allocation16 + $0xe4] sm:$0xf] }
 0x3db   :  { %v935_v51 = vpack.c.bf16 %v927_v48, %v927_v48  ;;  %v2408_v48 = vld [vmem:[#allocation16 + $0xec] sm:$0xf0] }
 0x3dd   :  { %v952_v53 = vunpack.c.l.b16 %v935_v51  ;;  %v751_v57 = vpop.xlane.xlu2 %750  ;;  %v2198_v51 = vld [vmem:[#allocation16 + $0xf0] sm:$0xf0] }
 0x3de   :  { %2504 = vrcp.f32 %v751_v57  ;;  %v2206_v57 = vld [vmem:[#allocation16 + $0xf8] sm:$0xf0] }
 0x3df   :  { %v953_v54 = vpack.c.b16 %v952_v53, %v951_v52  ;;  %v2204_v52 = vld [vmem:[#allocation16 + $0xe8] sm:$0xf]  ;;  %v2409_v53 = vld [vmem:[#allocation16 + $0xf4] sm:$0xf0] }
 0x3e0   :  { %v838_v55 = vpop.f32.mrf.mxu0  ;;  %v857_v56 = vpop.f32.mrf.mxu1 }
 0x3e1   :  { %2054 = vmatmul.msk.bf16.vlgmr.msra.gmra.mxu1 %vm521_vm7, %v953_v54  ;;  %v2201_v54 = vor.u32 %v2406_v49, %v2198_v51  ;;  %v2205_v55 = vor.u32 %v2409_v53, %v2204_v52  ;;  %v2407_v56 = vld [vmem:[#allocation16 + $0xec] sm:$0xf]  ;;  %v2388_v49 = vld [vmem:[#allocation16 + $0x4c] sm:$0xf0]  ;;  %v2118_v52 = vld [vmem:[#allocation16 + $0x50] sm:$0xf0] }
 0x3e2   :  { %v2124_v53 = vld [vmem:[#allocation16 + $0x48] sm:$0xf] }
 0x3e3   :  { %1376 = vmatpush.bf16.msrb.mxu2 %v2201_v54  ;;  %1390 = vmatpush.bf16.msrb.mxu3 %v2205_v55  ;;  %v2389_v54 = vld [vmem:[#allocation16 + $0x54] sm:$0xf0] }
 0x3e4   :  { %v754_v11 = vpop.xlane.xlu0 %753  ;;  %v2505_v59 = vpop.eup %2504 }
 0x3e5   :  { %2506 = vrcp.f32 %v754_v11  ;;  %v2180_v11 = vld [vmem:[#allocation16 + $0xc0] sm:$0xf] }
 0x3e6   :  { %v893_v58 = vpop.f32.mrf.mxu3  ;;  %2508 = vrcp.f32 %v745_v37 }
 0x3e7   :  { %v930_v60 = vmul.f32 %v2505_v59, %v893_v58  ;;  %2510 = vrcp.f32 %v748_v47  ;;  %v2196_v47 = vld [vmem:[#allocation16 + $0xe0] sm:$0xf]  ;;  %v2209_v58 = vor.u32 %v2407_v56, %v2206_v57  ;;  %v2404_v59 = vld [vmem:[#allocation16 + $0xcc] sm:$0xf0]  ;;  %v2125_v56 = vor.u32 %v2389_v54, %v2124_v53  ;;  %v2387_v57 = vld [vmem:[#allocation16 + $0x4c] sm:$0xf] }
 0x3e8   :  { %v2197_v50 = vor.u32 %v2408_v48, %v2196_v47  ;;  %v2116_v48 = vld [vmem:[#allocation16 + $0x40] sm:$0xf]  ;;  %v2417_v54 = vld [vmem:[#allocation17 + $0x38] sm:$0xff] }
 0x3e9   :  { %v938_v2 = vpack.c.bf16 %v930_v60, %v930_v60  ;;  %v2402_v60 = vld [vmem:[#allocation16 + $0xc4] sm:$0xf]  ;;  %1404 = vmatpush.bf16.msra.mxu0 %v2209_v58  ;;  %v2117_v51 = vor.u32 %v2388_v49, %v2116_v48  ;;  %v2126_v58 = vld [vmem:[#allocation16 + $0x58] sm:$0xf0]  ;;  %v2472_v48 = vld [vmem:[%s3292_s9] ss:$0 sm:$0xff] }
 0x3ea   :  { %1362 = vmatpush.bf16.msrb.mxu1 %v2197_v50  ;;  %v2386_v50 = vld [vmem:[#allocation16 + $0x44] sm:$0xf] }
 0x3eb   :  { %v2507_v62 = vpop.eup %2506  ;;  %v1065_v7 = vunpack.c.l.b16 %v938_v2  ;;  %v2121_v55 = vor.u32 %v2386_v50, %v2118_v52 }
 0x3ec   :  { %v2509_v15 = vpop.eup %2508 }
 0x3ed   :  { %v928_v4 = vmul.f32 %v2509_v15, %v855_v46  ;;  %v2511_v6 = vpop.eup %2510  ;;  %v2405_v15 = vld [vmem:[#allocation16 + $0xd4] sm:$0xf0] }
 0x3ee   :  { %v895_v61 = vpop.f32.mrf.mxu3 }
 0x3ef   :  { %v912_v63 = vpop.f32.mrf.mxu0  ;;  %v936_v12 = vpack.c.bf16 %v928_v4, %v928_v4  ;;  %v2181_v61 = vor.u32 %v2404_v59, %v2180_v11  ;;  %v2403_v4 = vld [vmem:[#allocation16 + $0xcc] sm:$0xf]  ;;  %v2129_v11 = vor.u32 %v2387_v57, %v2126_v58  ;;  %v2100_v59 = vld [vmem:[#allocation16 + $0x20] sm:$0xf] }
 0x3f0   :  { %v931_v3 = vmul.f32 %v2507_v62, %v912_v63  ;;  %v2182_v62 = vld [vmem:[#allocation16 + $0xd0] sm:$0xf0]  ;;  %v2188_v63 = vld [vmem:[#allocation16 + $0xc8] sm:$0xf] }
 0x3f1   :  { %v1024_v18 = vunpack.c.l.b16 %v936_v12  ;;  %v2185_v2 = vor.u32 %v2402_v60, %v2182_v62  ;;  %1363 = vmatpush.bf16.msrb.mxu1 %v2181_v61  ;;  %v2384_v60 = vld [vmem:[#allocation16 + $0x2c] sm:$0xf0]  ;;  %v2382_v61 = vld [vmem:[#allocation16 + $0x24] sm:$0xf] }
 0x3f2   :  { %v939_v5 = vpack.c.bf16 %v931_v3, %v931_v3  ;;  %v2189_v3 = vor.u32 %v2405_v15, %v2188_v63  ;;  %v2101_v62 = vor.u32 %v2384_v60, %v2100_v59  ;;  %v2102_v63 = vld [vmem:[#allocation16 + $0x30] sm:$0xf0]  ;;  %v2108_v15 = vld [vmem:[#allocation16 + $0x28] sm:$0xf] }
 0x3f3   :  { %1377 = vmatpush.bf16.msrb.mxu2 %v2185_v2  ;;  %v2385_v2 = vld [vmem:[#allocation16 + $0x34] sm:$0xf0] }
 0x3f4   :  { %v1066_v9 = vunpack.c.l.b16 %v939_v5  ;;  %v2190_v5 = vld [vmem:[#allocation16 + $0xd8] sm:$0xf0]  ;;  %1391 = vmatpush.bf16.msrb.mxu3 %v2189_v3 }
 0x3f5   :  { %v874_v10 = vpop.f32.mrf.mxu2 }
 0x3f6   :  { %v929_v13 = vmul.f32 %v2511_v6, %v874_v10  ;;  %v1067_v14 = vpack.c.b16 %v1066_v9, %v1065_v7  ;;  %v2193_v6 = vor.u32 %v2403_v4, %v2190_v5  ;;  %v2164_v7 = vld [vmem:[#allocation16 + $0xa0] sm:$0xf]  ;;  %v2400_v9 = vld [vmem:[#allocation16 + $0xac] sm:$0xf0]  ;;  %v2398_v10 = vld [vmem:[#allocation16 + $0xa4] sm:$0xf]  ;;  %v2105_v4 = vor.u32 %v2382_v61, %v2102_v63 }
 0x3f7   :  { %v914_v17 = vpop.f32.mrf.mxu0  ;;  %v2165_v12 = vor.u32 %v2400_v9, %v2164_v7  ;;  %v2109_v5 = vor.u32 %v2385_v2, %v2108_v15  ;;  %v2110_v7 = vld [vmem:[#allocation16 + $0x38] sm:$0xf0]  ;;  %v2084_v9 = vld [vmem:[#allocation16] sm:$0xf]  ;;  %v2416_v61 = vld [vmem:[#allocation17 + $0x30] sm:$0xff] }
 0x3f8   :  { %v937_v16 = vpack.c.bf16 %v929_v13, %v929_v13  ;;  %2081 = vmatmul.msk.bf16.vlgmr.msrb.gmra.mxu0 %vm521_vm7, %v1067_v14  ;;  %v2166_v13 = vld [vmem:[#allocation16 + $0xb0] sm:$0xf0]  ;;  %v2172_v14 = vld [vmem:[#allocation16 + $0xa8] sm:$0xf] }
 0x3f9   :  { %1405 = vmatpush.bf16.msra.mxu0 %v2193_v6  ;;  %v2169_v17 = vor.u32 %v2398_v10, %v2166_v13  ;;  %1364 = vmatpush.bf16.msrb.mxu1 %v2165_v12  ;;  %v2383_v6 = vld [vmem:[#allocation16 + $0x2c] sm:$0xf]  ;;  %v2380_v13 = vld [vmem:[#allocation16 + $0xc] sm:$0xf0] }
 0x3fa   :  { %v1025_v19 = vunpack.c.l.b16 %v937_v16  ;;  %v2401_v16 = vld [vmem:[#allocation16 + $0xb4] sm:$0xf0]  ;;  %v2113_v12 = vor.u32 %v2383_v6, %v2110_v7 }
 0x3fb   :  { %1378 = vmatpush.bf16.msrb.mxu2 %v2169_v17  ;;  %v2085_v17 = vor.u32 %v2380_v13, %v2084_v9 }
 0x3fc   :  { %v1026_v20 = vpack.c.b16 %v1025_v19, %v1024_v18  ;;  %v2173_v18 = vor.u32 %v2401_v16, %v2172_v14  ;;  %v2399_v19 = vld [vmem:[#allocation16 + $0xac] sm:$0xf]  ;;  %v2378_v14 = vld [vmem:[#allocation16 + $0x4] sm:$0xf]  ;;  %v2086_v16 = vld [vmem:[#allocation16 + $0x10] sm:$0xf0] }
 0x3fd   :  { %v876_v21 = vpop.f32.mrf.mxu2 }
 0x3fe   :  { %2072 = vmatmul.msk.bf16.vlgmr.msra.gmra.mxu3 %vm521_vm7, %v1026_v20  ;;  %v2174_v20 = vld [vmem:[#allocation16 + $0xb8] sm:$0xf0] }
 0x3ff   :  { %v2177_v21 = vor.u32 %v2399_v19, %v2174_v20  ;;  %1392 = vmatpush.bf16.msrb.mxu3 %v2173_v18  ;;  %v2089_v18 = vor.u32 %v2378_v14, %v2086_v16  ;;  %v2092_v19 = vld [vmem:[#allocation16 + $0x8] sm:$0xf]  ;;  %v2381_v20 = vld [vmem:[#allocation16 + $0x14] sm:$0xf0] }
 0x401   :  { %1406 = vmatpush.bf16.msra.mxu0 %v2177_v21  ;;  %v2379_v21 = vld [vmem:[#allocation16 + $0xc] sm:$0xf] }
 0x42b   :  { %v1012_v23 = vpop.f32.mrf.mxu2 }
 0x433   :  { %v1014_v33 = vpop.f32.mrf.mxu2 }
 0x45e   :  { %v978_v22 = vpop.f32.mrf.mxu1 }
 0x45f   :  { %v1013_v24 = vadd.f32 %v1012_v23, %v978_v22  ;;  %v2148_v22 = vld [vmem:[#allocation16 + $0x80] sm:$0xf]  ;;  %v2396_v23 = vld [vmem:[#allocation16 + $0x8c] sm:$0xf0] }
 0x466   :  { %v980_v31 = vpop.f32.mrf.mxu1 }
 0x467   :  { %v1015_v34 = vadd.f32 %v1014_v33, %v980_v31  ;;  %v2158_v33 = vld [vmem:[#allocation16 + $0x98] sm:$0xf0] }
 0x475   :  { %v1092_v26 = vpop.f32.mrf.mxu0 }
 0x47d   :  { %v1094_v38 = vpop.f32.mrf.mxu0 }
 0x481   :  { %v1051_v27 = vpop.f32.mrf.mxu3 }
 0x482   :  { %v1056_v28 = vadd.f32 %v1051_v27, %v1013_v24  ;;  %v2394_v24 = vld [vmem:[#allocation16 + $0x84] sm:$0xf]  ;;  %v2150_v27 = vld [vmem:[#allocation16 + $0x90] sm:$0xf0] }
 0x484   :  { %v1097_v30 = vadd.f32 %v1092_v26, %v1056_v28  ;;  %v2149_v26 = vor.u32 %v2396_v23, %v2148_v22  ;;  %v2156_v28 = vld [vmem:[#allocation16 + $0x88] sm:$0xf]  ;;  %v2093_v23 = vor.u32 %v2381_v20, %v2092_v19  ;;  %v2424_v19 = vld [vmem:[#allocation17 + $0x70] sm:$0xff] }
 0x485   :  { %v2432_v20 = vld [vmem:[#allocation17 + $0xb0] sm:$0xff] }
 0x486   :  { %v1103_v32 = vadd.f32 %v2470_v29, %v1097_v30  ;;  %v2153_v30 = vor.u32 %v2394_v24, %v2150_v27  ;;  %1365 = vmatpush.bf16.msrb.mxu1 %v2149_v26  ;;  %v2094_v24 = vld [vmem:[#allocation16 + $0x18] sm:$0xf0] }
 0x487   :  { %v2097_v26 = vor.u32 %v2379_v21, %v2094_v24 }
 0x488   :  { %v3083_v35 = vadd.f32 %v1103_v32, %v2965_v0  ;;  %v2395_v32 = vld [vmem:[#allocation16 + $0x8c] sm:$0xf]  ;;  %1379 = vmatpush.bf16.msrb.mxu2 %v2153_v30 }
 0x489   :  { %v1053_v36 = vpop.f32.mrf.mxu3 }
 0x48a   :  { %v1057_v37 = vadd.f32 %v1053_v36, %v1015_v34  ;;  %1109 = vadd.xlane.f32.xlu1 %v3083_v35  ;;  %v2161_v34 = vor.u32 %v2395_v32, %v2158_v33  ;;  %v2132_v36 = vld [vmem:[#allocation16 + $0x60] sm:$0xf] }
 0x48c   :  { %v1098_v25 = vadd.f32 %v1094_v38, %v1057_v37  ;;  %v2392_v37 = vld [vmem:[#allocation16 + $0x6c] sm:$0xf0]  ;;  %v2390_v38 = vld [vmem:[#allocation16 + $0x64] sm:$0xf]  ;;  %1407 = vmatpush.bf16.msra.mxu0 %v2161_v34 }
 0x48e   :  { %v1104_v39 = vadd.f32 %v2470_v29, %v1098_v25  ;;  %v2397_v29 = vld [vmem:[#allocation16 + $0x94] sm:$0xf0]  ;;  %v2133_v25 = vor.u32 %v2392_v37, %v2132_v36 }
 0x48f   :  { %v2157_v31 = vor.u32 %v2397_v29, %v2156_v28 }
 0x490   :  { %v3087_v40 = vadd.f32 %v1104_v39, %v2968_v1  ;;  %v2134_v39 = vld [vmem:[#allocation16 + $0x70] sm:$0xf0]  ;;  %1366 = vmatpush.bf16.msrb.mxu1 %v2133_v25 }
 0x491   :  { %1393 = vmatpush.bf16.msrb.mxu3 %v2157_v31 }
 0x492   :  { %1111 = vadd.xlane.f32.xlu2 %v3087_v40 }
 0x494   :  { %1367 = vmatpush.bf16.msrb.mxu1 %v2117_v51 }
 0x498   :  { %1368 = vmatpush.bf16.msrb.mxu1 %v2101_v62  ;;  %v2440_v62 = vld [vmem:[#allocation17 + $0xf0] sm:$0xff] }
 0x49c   :  { %1369 = vmatpush.bf16.msrb.mxu1 %v2085_v17 }
 0x4a0   :  { %1850 = vmatpush.bf16.msra.mxu1 %v2417_v54 }
 0x4a4   :  { %1851 = vmatpush.bf16.msra.mxu1 %v2416_v61 }
 0x4fd   :  { %v1110_v41 = vpop.xlane.xlu1 %1109 }
 0x4fe   :  { %v1113_v42 = vmul.f32 %v1110_v41, %v2971_v8  ;;  %v2140_v41 = vld [vmem:[#allocation16 + $0x68] sm:$0xf] }
 0x500   :  { %v3092_v43 = vsub.f32 %v3083_v35, %v1113_v42  ;;  %v2393_v42 = vld [vmem:[#allocation16 + $0x74] sm:$0xf0] }
 0x502   :  { %v1117_v0 = vmul.f32 %v3092_v43, %v3092_v43 }
 0x504   :  { %1119 = vadd.xlane.f32.xlu0 %v1117_v0  ;;  %v2137_v0 = vor.u32 %v2390_v38, %v2134_v39 }
 0x505   :  { %v1112_v44 = vpop.xlane.xlu2 %1111 }
 0x506   :  { %v1114_v45 = vmul.f32 %v1112_v44, %v2971_v8  ;;  %v2141_v44 = vor.u32 %v2393_v42, %v2140_v41  ;;  %1380 = vmatpush.bf16.msrb.mxu2 %v2137_v0  ;;  %v2471_v0 = vld [vmem:[#allocation14] ss:$0 sm:$0xff] }
 0x508   :  { %v3098_v46 = vsub.f32 %v3087_v40, %v1114_v45  ;;  %v2391_v45 = vld [vmem:[#allocation16 + $0x6c] sm:$0xf]  ;;  %1394 = vmatpush.bf16.msrb.mxu3 %v2141_v44 }
 0x50a   :  { %v1118_v1 = vmul.f32 %v3098_v46, %v3098_v46  ;;  %1381 = vmatpush.bf16.msrb.mxu2 %v2121_v55  ;;  %v2441_v55 = vld [vmem:[#allocation17 + $0xf8] sm:$0xff] }
 0x50c   :  { %1121 = vadd.xlane.f32.xlu1 %v1118_v1  ;;  %v2142_v1 = vld [vmem:[#allocation16 + $0x78] sm:$0xf0]  ;;  %1395 = vmatpush.bf16.msrb.mxu3 %v2125_v56 }
 0x50d   :  { %v2145_v47 = vor.u32 %v2391_v45, %v2142_v1 }
 0x50e   :  { %1382 = vmatpush.bf16.msrb.mxu2 %v2105_v4  ;;  %v2433_v4 = vld [vmem:[#allocation17 + $0xb8] sm:$0xff] }
 0x50f   :  { %1408 = vmatpush.bf16.msra.mxu0 %v2145_v47 }
 0x510   :  { %1396 = vmatpush.bf16.msrb.mxu3 %v2109_v5 }
 0x512   :  { %1383 = vmatpush.bf16.msrb.mxu2 %v2089_v18 }
 0x513   :  { %1409 = vmatpush.bf16.msra.mxu0 %v2129_v11 }
 0x514   :  { %1397 = vmatpush.bf16.msrb.mxu3 %v2093_v23 }
 0x517   :  { %1410 = vmatpush.bf16.msra.mxu0 %v2113_v12  ;;  %v2439_v12 = vld [vmem:[#allocation17 + $0xe8] sm:$0xff] }
 0x518   :  { %1878 = vmatpush.bf16.msra.mxu3 %v2433_v4  ;;  %v2428_v4 = vld [vmem:[#allocation17 + $0x90] sm:$0xff] }
 0x51b   :  { %1411 = vmatpush.bf16.msra.mxu0 %v2097_v26  ;;  %v2414_v26 = vld [vmem:[#allocation17 + $0x20] sm:$0xff] }
 0x51c   :  { %1879 = vmatpush.bf16.msra.mxu3 %v2432_v20  ;;  %v2427_v20 = vld [vmem:[#allocation17 + $0x88] sm:$0xff] }
 0x51f   :  { %1892 = vmatpush.bf16.msrb.mxu0 %v2441_v55  ;;  %v2411_v55 = vld [vmem:[#allocation17 + $0x8] sm:$0xff] }
 0x523   :  { %1893 = vmatpush.bf16.msrb.mxu0 %v2440_v62 }
 0x527   :  { %1894 = vmatpush.bf16.msrb.mxu0 %v2439_v12 }
 0x577   :  { %v1120_v3 = vpop.xlane.xlu0 %1119 }
 0x578   :  { %v1123_v10 = vmul.f32 %v1120_v3, %v2971_v8  ;;  %v2425_v3 = vld [vmem:[#allocation17 + $0x78] sm:$0xff] }
 0x579   :  { %1864 = vmatpush.bf16.msra.mxu2 %v2425_v3 }
 0x57a   :  { %v1125_v22 = vadd.f32 1e-05, %v1123_v10  ;;  %v2415_v10 = vld [vmem:[#allocation17 + $0x28] sm:$0xff] }
 0x57b   :  { %1852 = vmatpush.bf16.msra.mxu1 %v2415_v10  ;;  %v2434_v10 = vld [vmem:[#allocation17 + $0xc0] sm:$0xff] }
 0x57c   :  { %2512 = vrsqrt.f32 %v1125_v22  ;;  %vm1133_vm11 = vweird.f32 %v1125_v22 }
 0x57d   :  { %1865 = vmatpush.bf16.msra.mxu2 %v2424_v19  ;;  %v2419_v19 = vld [vmem:[#allocation17 + $0x48] sm:$0xff] }
 0x57f   :  { %v1122_v27 = vpop.xlane.xlu1 %1121  ;;  %1853 = vmatpush.bf16.msra.mxu1 %v2414_v26 }
 0x580   :  { %v1124_v28 = vmul.f32 %v1122_v27, %v2971_v8  ;;  %v2438_v27 = vld [vmem:[#allocation17 + $0xe0] sm:$0xff] }
 0x581   :  { %1895 = vmatpush.bf16.msrb.mxu0 %v2438_v27 }
 0x582   :  { %v2513_v29 = vpop.eup %2512  ;;  %v1126_v30 = vadd.f32 1e-05, %v1124_v28 }
 0x583   :  { %v1128_v31 = vmul.f32 %v2513_v29, %v1125_v22  ;;  %vm1134_vm10 = vweird.f32 %v2513_v29 }
 0x584   :  { %2514 = vrsqrt.f32 %v1126_v30  ;;  %vm1135_vm12 = vmor %vm1133_vm11, %vm1134_vm10  ;;  %vm1143_vm14 = vweird.f32 %v1126_v30 }
 0x585   :  { %v1129_v32 = vmul.f32 %v2513_v29, %v1128_v31  ;;  %v2423_v31 = vld [vmem:[#allocation17 + $0x68] sm:$0xff] }
 0x586   :  { %1866 = vmatpush.bf16.msra.mxu2 %v2423_v31  ;;  %v2418_v31 = vld [vmem:[#allocation17 + $0x40] sm:$0xff] }
 0x587   :  { %v1130_v33 = vmul.f32 0.5, %v1129_v32  ;;  %v2431_v32 = vld [vmem:[#allocation17 + $0xa8] sm:$0xff] }
 0x588   :  { %1880 = vmatpush.bf16.msra.mxu3 %v2431_v32  ;;  %v2426_v32 = vld [vmem:[#allocation17 + $0x80] sm:$0xff] }
 0x589   :  { %v1131_v34 = vsub.f32 1.5, %v1130_v33 }
 0x58a   :  { %v2515_v36 = vpop.eup %2514 }
 0x58b   :  { %v1132_v37 = vmul.f32 %v2513_v29, %v1131_v34  ;;  %v1138_v38 = vmul.f32 %v2515_v36, %v1126_v30  ;;  %vm1144_vm13 = vweird.f32 %v2515_v36 }
 0x58c   :  { %vm1145_vm15 = vmor %vm1143_vm14, %vm1144_vm13 }
 0x58d   :  { %v1139_v25 = vmul.f32 %v2515_v36, %v1138_v38  ;;  %v1136_v39 = vsel %vm1135_vm12, %v2513_v29, %v1132_v37 }
 0x58e   :  { %v1147_v8 = vmul.f32 %v1136_v39, %v3092_v43  ;;  %v3112_v43 = vld [vmem:[%s3294_s11] sm:$0xf] }
 0x58f   :  { %v1140_v41 = vmul.f32 0.5, %v1139_v25  ;;  %v1197_v53 = vperm.slane %v3112_v43, 3  ;;  %v1195_v60 = vperm.slane %v3112_v43, 1  ;;  %v1196_v15 = vperm.slane %v3112_v43, 2 }
 0x590   :  { %v1152_v47 = vmul.f32 %v2471_v0, %v1147_v8  ;;  %v2422_v8 = vld [vmem:[#allocation17 + $0x60] sm:$0xff] }
 0x591   :  { %v1141_v42 = vsub.f32 1.5, %v1140_v41  ;;  %v2413_v41 = vld [vmem:[#allocation17 + $0x18] sm:$0xff]  ;;  %1867 = vmatpush.bf16.msra.mxu2 %v2422_v8 }
 0x592   :  { %v1157_v50 = vadd.f32 %v2472_v48, %v1152_v47  ;;  %1854 = vmatpush.bf16.msra.mxu1 %v2413_v41  ;;  %v2436_v47 = vld [vmem:[#allocation17 + $0xd0] sm:$0xff] }
 0x593   :  { %v1142_v44 = vmul.f32 %v2515_v36, %v1141_v42  ;;  %v2437_v42 = vld [vmem:[#allocation17 + $0xd8] sm:$0xff] }
 0x594   :  { %1896 = vmatpush.bf16.msrb.mxu0 %v2437_v42 }
 0x595   :  { %v1146_v45 = vsel %vm1145_vm15, %v2515_v36, %v1142_v44 }
 0x596   :  { %v1148_v1 = vmul.f32 %v1146_v45, %v3098_v46  ;;  %v1194_v46 = vperm.slane %v3112_v43, 0 }
 0x598   :  { %v1153_v49 = vmul.f32 %v2471_v0, %v1148_v1  ;;  %v2430_v0 = vld [vmem:[#allocation17 + $0xa0] sm:$0xff]  ;;  %v2412_v1 = vld [vmem:[#allocation17 + $0x10] sm:$0xff]  ;;  %1897 = vmatpush.bf16.msrb.mxu0 %v2436_v47 }
 0x599   :  { %1881 = vmatpush.bf16.msra.mxu3 %v2430_v0  ;;  %1855 = vmatpush.bf16.msra.mxu1 %v2412_v1 }
 0x59a   :  { %v1158_v51 = vadd.f32 %v2472_v48, %v1153_v49 }
 0x59c   :  { %v1159_v52 = vpack.c.bf16 %v1158_v51, %v1157_v50  ;;  %v2421_v50 = vld [vmem:[#allocation17 + $0x58] sm:$0xff] }
 0x59d   :  { %v2429_v51 = vld [vmem:[#allocation17 + $0x98] sm:$0xff]  ;;  %1868 = vmatpush.bf16.msra.mxu2 %v2421_v50  ;;  %1856 = vmatpush.bf16.msra.mxu1 %v2411_v55 }
 0x59e   :  { %1370 = vmatmul.bf16.vlgmr.msrb.gmra.mxu1 %v1159_v52  ;;  %1384 = vmatmul.bf16.vlgmr.msrb.gmra.mxu2 %v1159_v52 }
 0x59f   :  { %1398 = vmatmul.bf16.vlgmr.msrb.gmra.mxu3 %v1159_v52  ;;  %1412 = vmatmul.bf16.vlgmr.msra.gmra.mxu0 %v1159_v52 }
 0x5a0   :  { %1882 = vmatpush.bf16.msra.mxu3 %v2429_v51 }
 0x5a4   :  { %1883 = vmatpush.bf16.msra.mxu3 %v2428_v4 }
 0x5a8   :  { %1884 = vmatpush.bf16.msra.mxu3 %v2427_v20 }
 0x5ac   :  { %1885 = vmatpush.bf16.msra.mxu3 %v2426_v32 }
 0x61b   :  { %v1371_v56 = vpop.f32.mrf.mxu1 }
 0x61c   :  { %v3116_v57 = vadd.f32 %v1371_v56, %v1194_v46  ;;  %v1413_v58 = vpop.f32.mrf.mxu0  ;;  %v2435_v56 = vld [vmem:[#allocation17 + $0xc8] sm:$0xff] }
 0x61d   :  { %v3118_v11 = vadd.f32 %v1413_v58, %v1197_v53  ;;  %1898 = vmatpush.bf16.msrb.mxu0 %v2435_v56 }
 0x61e   :  { %v2210_v59 = vmul.f32 -1.702, %v3116_v57 }
 0x61f   :  { %v2213_v63 = vmul.f32 -1.702, %v3118_v11 }
 0x620   :  { %v1434_v2 = vmul.f32 1.442695, %v2210_v59 }
 0x621   :  { %v1440_v5 = vmul.f32 1.442695, %v2213_v63  ;;  %v1385_v6 = vpop.f32.mrf.mxu2  ;;  %1899 = vmatpush.bf16.msrb.mxu0 %v2434_v10 }
 0x622   :  { %2516 = vpow2.f32 %v1434_v2  ;;  %v3124_v7 = vadd.f32 %v1385_v6, %v1195_v60  ;;  %v1399_v9 = vpop.f32.mrf.mxu3  ;;  %v2420_v2 = vld [vmem:[#allocation17 + $0x50] sm:$0xff] }
 0x623   :  { %2518 = vpow2.f32 %v1440_v5  ;;  %v3128_v13 = vadd.f32 %v1399_v9, %v1196_v15  ;;  %v1373_v14 = vpop.f32.mrf.mxu1  ;;  %1869 = vmatpush.bf16.msra.mxu2 %v2420_v2  ;;  %v2410_v9 = vld [vmem:[#allocation17] sm:$0xff] }
 0x624   :  { %v2211_v16 = vmul.f32 -1.702, %v3124_v7  ;;  %v3131_v17 = vadd.f32 %v1373_v14, %v1194_v46  ;;  %v1415_v18 = vpop.f32.mrf.mxu0  ;;  %1857 = vmatpush.bf16.msra.mxu1 %v2410_v9 }
 0x625   :  { %v2212_v21 = vmul.f32 -1.702, %v3128_v13  ;;  %v3134_v22 = vadd.f32 %v1415_v18, %v1197_v53 }
 0x626   :  { %v1436_v23 = vmul.f32 1.442695, %v2211_v16  ;;  %v2214_v24 = vmul.f32 -1.702, %v3131_v17 }
 0x627   :  { %v2217_v28 = vmul.f32 -1.702, %v3134_v22  ;;  %v1438_v25 = vmul.f32 1.442695, %v2212_v21  ;;  %1870 = vmatpush.bf16.msra.mxu2 %v2419_v19 }
 0x628   :  { %v2517_v29 = vpop.eup %2516  ;;  %2520 = vpow2.f32 %v1436_v23  ;;  %v1442_v30 = vmul.f32 1.442695, %v2214_v24 }
 0x629   :  { %v2519_v33 = vpop.eup %2518  ;;  %v3138_v34 = vadd.f32 1.0, %v2517_v29  ;;  %v1448_v36 = vmul.f32 1.442695, %v2217_v28  ;;  %v1387_v37 = vpop.f32.mrf.mxu2 }
 0x62a   :  { %v3140_v38 = vadd.f32 1.0, %v2519_v33  ;;  %2522 = vpow2.f32 %v1442_v30  ;;  %v3142_v39 = vadd.f32 %v1387_v37, %v1195_v60  ;;  %v1401_v63 = vpop.f32.mrf.mxu3 }
 0x62b   :  { %2524 = vrcp.f32 %v3138_v34  ;;  %v3170_v16 = vadd.f32 %v1401_v63, %v1196_v15  ;;  %v1467_v18 = vand.u32 2147483647, %v3138_v34  ;;  %v1469_v21 = vand.u32 2147483648, %v3138_v34  ;;  %1871 = vmatpush.bf16.msra.mxu2 %v2418_v31 }
 0x62c   :  { %2526 = vrcp.f32 %v3140_v38  ;;  %v2215_v44 = vmul.f32 -1.702, %v3142_v39  ;;  %v1512_v23 = vand.u32 2147483647, %v3140_v38  ;;  %v1514_v27 = vand.u32 2147483648, %v3140_v38 }
 0x62d   :  { %2528 = vpow2.f32 %v1448_v36  ;;  %v2216_v28 = vmul.f32 -1.702, %v3170_v16  ;;  %vm1463_vm1 = vweird.f32 %v3138_v34  ;;  %vm3185_vm2 = vcmp.eq.f32.partialorder %v1467_v18, 8.507059e+37 }
 0x62e   :  { %v2521_v45 = vpop.eup %2520  ;;  %2530 = vpow2.f32 %v1438_v25  ;;  %v1444_v46 = vmul.f32 1.442695, %v2215_v44  ;;  %vm1508_vm3 = vweird.f32 %v3140_v38  ;;  %v1470_v36 = vor.u32 1.1754944e-38, %v1469_v21 }
 0x62f   :  { %v3147_v48 = vadd.f32 1.0, %v2521_v45  ;;  %vm3197_vm6 = vcmp.eq.f32.partialorder %v1512_v23, 8.507059e+37  ;;  %v1515_v44 = vor.u32 1.1754944e-38, %v1514_v27  ;;  %v1446_v47 = vmul.f32 1.442695, %v2216_v28 }
 0x630   :  { %v2523_v49 = vpop.eup %2522 }
 0x631   :  { %v3149_v52 = vpop.eup %2524  ;;  %2532 = vrcp.f32 %v3147_v48  ;;  %v3158_v62 = vadd.f32 1.0, %v2523_v49  ;;  %v1484_v21 = vand.u32 2147483648, %v3147_v48 }
 0x632   :  { %v3152_v53 = vpop.eup %2526  ;;  %v1459_v54 = vmul.f32 %v3149_v52, %v3138_v34  ;;  %2534 = vpow2.f32 %v1444_v46  ;;  %vm1464_vm0 = vweird.f32 %v3149_v52 }
 0x633   :  { %v2529_v58 = vpop.eup %2528  ;;  %v1504_v59 = vmul.f32 %v3152_v53, %v3140_v38  ;;  %2536 = vrcp.f32 %v3158_v62  ;;  %vm3192_vm4 = vmor %vm1463_vm1, %vm1464_vm0  ;;  %vm1509_vm5 = vweird.f32 %v3152_v53  ;;  %vm1523_vm7 = vweird.f32 %v3158_v62 }
 0x634   :  { %v2531_v60 = vpop.eup %2530  ;;  %v1460_v61 = vsub.f32 1.0, %v1459_v54  ;;  %v3160_v3 = vadd.f32 1.0, %v2529_v58  ;;  %v1527_v49 = vand.u32 2147483647, %v3158_v62  ;;  %v1529_v50 = vand.u32 2147483648, %v3158_v62  ;;  %vm3221_vm8 = vmor %vm1508_vm3, %vm1509_vm5 }
 0x635   :  { %v1505_v6 = vsub.f32 1.0, %v1504_v59  ;;  %v3166_v14 = vadd.f32 1.0, %v2531_v60  ;;  %vm1478_vm1 = vweird.f32 %v3147_v48  ;;  %v1485_v33 = vor.u32 1.1754944e-38, %v1484_v21 }
 0x636   :  { %v1461_v5 = vmul.f32 %v3149_v52, %v1460_v61  ;;  %2538 = vrcp.f32 %v3160_v3  ;;  %v1572_v59 = vand.u32 2147483647, %v3160_v3  ;;  %v1574_v60 = vand.u32 2147483648, %v3160_v3 }
 0x637   :  { %v3164_v12 = vpop.eup %2532  ;;  %v1506_v43 = vmul.f32 %v3152_v53, %v1505_v6  ;;  %2540 = vrcp.f32 %v3166_v14  ;;  %vm1528_vm13 = vcmp.eq.f32.partialorder %v1527_v49, 8.507059e+37  ;;  %vm1568_vm14 = vweird.f32 %v3160_v3 }
 0x638   :  { %v1462_v24 = vadd.f32 %v3149_v52, %v1461_v5  ;;  %v1474_v15 = vmul.f32 %v3164_v12, %v3147_v48  ;;  %v2535_v26 = vpop.eup %2534  ;;  %vm1479_vm11 = vweird.f32 %v3164_v12  ;;  %v1575_v19 = vor.u32 1.1754944e-38, %v1574_v60 }
 0x639   :  { %v2537_v29 = vpop.eup %2536  ;;  %v1507_v42 = vadd.f32 %v3152_v53, %v1506_v43  ;;  %v3206_v0 = vadd.f32 1.0, %v2535_v26  ;;  %vm1573_vm0 = vcmp.eq.f32.partialorder %v1572_v59, 8.507059e+37 }
 0x63a   :  { %v1519_v34 = vmul.f32 %v2537_v29, %v3158_v62  ;;  %v1466_v41 = vsel %vm3192_vm4, %v3149_v52, %v1462_v24  ;;  %v1475_v8 = vsub.f32 1.0, %v1474_v15  ;;  %vm1524_vm9 = vweird.f32 %v2537_v29 }
 0x63b   :  { %2542 = vrcp.f32 %v3206_v0  ;;  %v1471_v52 = vsel %vm3185_vm2, %v1470_v36, %v1466_v41  ;;  %v1511_v56 = vsel %vm3221_vm8, %v3152_v53, %v1507_v42  ;;  %vm1525_vm12 = vmor %vm1523_vm7, %vm1524_vm9  ;;  %v1530_v53 = vor.u32 1.1754944e-38, %v1529_v50 }
 0x63c   :  { %v2539_v25 = vpop.eup %2538  ;;  %v1520_v45 = vsub.f32 1.0, %v1519_v34  ;;  %v1476_v58 = vmul.f32 %v3164_v12, %v1475_v8  ;;  %2544 = vpow2.f32 %v1446_v47  ;;  %v1578_v2 = vmul.f32 %v1471_v52, %v3116_v57  ;;  %vm3250_vm2 = vmor %vm1478_vm1, %vm1479_vm11 }
 0x63d   :  { %v1564_v1 = vmul.f32 %v2539_v25, %v3160_v3  ;;  %v3213_v51 = vpop.eup %2540  ;;  %vm1569_vm10 = vweird.f32 %v2539_v25  ;;  %v1516_v9 = vsel %vm3197_vm6, %v1515_v44, %v1511_v56  ;;  %v1482_v3 = vand.u32 2147483647, %v3147_v48 }
 0x63e   :  { %v1521_v54 = vmul.f32 %v2537_v29, %v1520_v45  ;;  %v1489_v38 = vmul.f32 %v3213_v51, %v3166_v14  ;;  %v1477_v10 = vadd.f32 %v3164_v12, %v1476_v58  ;;  %vm1570_vm15 = vmor %vm1568_vm14, %vm1569_vm10  ;;  %v1581_v43 = vmul.f32 %v1516_v9, %v3118_v11 }
 0x63f   :  { %v1565_v55 = vsub.f32 1.0, %v1564_v1  ;;  %v1544_v48 = vand.u32 2147483648, %v3206_v0  ;;  %v1542_v32 = vand.u32 2147483647, %v3206_v0  ;;  %vm1483_vm4 = vcmp.eq.f32.partialorder %v1482_v3, 8.507059e+37 }
 0x640   :  { %v1522_v61 = vadd.f32 %v2537_v29, %v1521_v54  ;;  %v1481_v28 = vsel %vm3250_vm2, %v3164_v12, %v1477_v10  ;;  %vm1538_vm5 = vweird.f32 %v3206_v0  ;;  %vm1494_vm8 = vweird.f32 %v3213_v51 }
 0x641   :  { %v1566_v63 = vmul.f32 %v2539_v25, %v1565_v55  ;;  %v2543_v6 = vpop.eup %2542  ;;  %v1545_v12 = vor.u32 1.1754944e-38, %v1544_v48  ;;  %vm1543_vm7 = vcmp.eq.f32.partialorder %v1542_v32, 8.507059e+37  ;;  %v1499_v1 = vand.u32 2147483648, %v3166_v14 }
 0x642   :  { %v1526_v4 = vsel %vm1525_vm12, %v2537_v29, %v1522_v61  ;;  %v1534_v57 = vmul.f32 %v2543_v6, %v3206_v0  ;;  %v2545_v24 = vpop.eup %2544  ;;  %v1490_v29 = vsub.f32 1.0, %v1489_v38  ;;  %vm1539_vm3 = vweird.f32 %v2543_v6 }
 0x643   :  { %v1567_v5 = vadd.f32 %v2539_v25, %v1566_v63  ;;  %v1531_v18 = vsel %vm1528_vm13, %v1530_v53, %v1526_v4  ;;  %v1456_v30 = vadd.f32 1.0, %v2545_v24  ;;  %vm1540_vm6 = vmor %vm1538_vm5, %vm1539_vm3  ;;  %vm1493_vm9 = vweird.f32 %v3166_v14  ;;  %v2473_v63 = vld [vmem:[%s3296_s13] ss:$0 sm:$0xff] }
 0x644   :  { %v1582_v62 = vmul.f32 %v1531_v18, %v3131_v17  ;;  %v1535_v27 = vsub.f32 1.0, %v1534_v57  ;;  %v1491_v37 = vmul.f32 %v3213_v51, %v1490_v29  ;;  %v1497_v47 = vand.u32 2147483647, %v3166_v14  ;;  %vm1495_vm10 = vmor %vm1493_vm9, %vm1494_vm8 }
 0x645   :  { %v1571_v20 = vsel %vm1570_vm15, %v2539_v25, %v1567_v5  ;;  %2546 = vrcp.f32 %v1456_v30  ;;  %v1559_v50 = vand.u32 2147483648, %v1456_v30  ;;  %v1557_v52 = vand.u32 2147483647, %v1456_v30 }
 0x646   :  { %v1576_v23 = vsel %vm1573_vm0, %v1575_v19, %v1571_v20  ;;  %v1586_v17 = vpack.c.bf16 %v1582_v62, %v1578_v2  ;;  %v1536_v11 = vmul.f32 %v2543_v6, %v1535_v27  ;;  %v1492_v44 = vadd.f32 %v3213_v51, %v1491_v37 }
 0x647   :  { %v1585_v26 = vmul.f32 %v1576_v23, %v3134_v22  ;;  %v1486_v22 = vsel %vm1483_vm4, %v1485_v33, %v1481_v28  ;;  %v1500_v46 = vor.u32 1.1754944e-38, %v1499_v1  ;;  %vm1498_vm12 = vcmp.eq.f32.partialorder %v1497_v47, 8.507059e+37 }
 0x648   :  { %1858 = vmatmul.bf16.vlgmr.msra.gmra.mxu1 %v1586_v17  ;;  %v1537_v36 = vadd.f32 %v2543_v6, %v1536_v11  ;;  %v1579_v41 = vmul.f32 %v1486_v22, %v3124_v7  ;;  %v1496_v7 = vsel %vm1495_vm10, %v3213_v51, %v1492_v44  ;;  %vm1553_vm13 = vweird.f32 %v1456_v30 }
 0x649   :  { %v1589_v31 = vpack.c.bf16 %v1585_v26, %v1581_v43  ;;  %v1501_v55 = vsel %vm1498_vm12, %v1500_v46, %v1496_v7  ;;  %v1560_v56 = vor.u32 1.1754944e-38, %v1559_v50  ;;  %vm1558_vm15 = vcmp.eq.f32.partialorder %v1557_v52, 8.507059e+37 }
 0x64a   :  { %v1541_v34 = vsel %vm1540_vm6, %v2543_v6, %v1537_v36  ;;  %v1580_v14 = vmul.f32 %v1501_v55, %v3128_v13 }
 0x64b   :  { %1900 = vmatmul.bf16.vlgmr.msrb.gmra.mxu0 %v1589_v31  ;;  %v1546_v25 = vsel %vm1543_vm7, %v1545_v12, %v1541_v34  ;;  %v2547_v8 = vpop.eup %2546 }
 0x64c   :  { %v1583_v42 = vmul.f32 %v1546_v25, %v3142_v39  ;;  %v1549_v0 = vmul.f32 %v2547_v8, %v1456_v30  ;;  %vm1554_vm11 = vweird.f32 %v2547_v8 }
 0x64d   :  { %vm1555_vm14 = vmor %vm1553_vm13, %vm1554_vm11 }
 0x64e   :  { %v1587_v45 = vpack.c.bf16 %v1583_v42, %v1579_v41  ;;  %v1550_v49 = vsub.f32 1.0, %v1549_v0 }
 0x650   :  { %1872 = vmatmul.bf16.vlgmr.msra.gmra.mxu2 %v1587_v45  ;;  %v1551_v39 = vmul.f32 %v2547_v8, %v1550_v49 }
 0x652   :  { %v1552_v54 = vadd.f32 %v2547_v8, %v1551_v39 }
 0x654   :  { %v1556_v58 = vsel %vm1555_vm14, %v2547_v8, %v1552_v54 }
 0x655   :  { %v1561_v59 = vsel %vm1558_vm15, %v1560_v56, %v1556_v58 }
 0x656   :  { %v1584_v60 = vmul.f32 %v1561_v59, %v3170_v16 }
 0x658   :  { %v1588_v61 = vpack.c.bf16 %v1584_v60, %v1580_v14 }
 0x65a   :  { %1886 = vmatmul.bf16.vlgmr.msra.gmra.mxu3 %v1588_v61 }
 0x6c5   :  { %v1859_v51 = vpop.f32.mrf.mxu1 }
 0x6c6   :  { %v1860_v53 = vadd.f32 %v2473_v63, %v1859_v51 }
 0x6c8   :  { %v1901_v4 = vpop.f32.mrf.mxu0 }
 0x6cd   :  { %v1861_v5 = vpop.f32.mrf.mxu1 }
 0x6ce   :  { %v1862_v18 = vadd.f32 %v2473_v63, %v1861_v5 }
 0x6d0   :  { %v1903_v57 = vpop.f32.mrf.mxu0 }
 0x6d3   :  { %v1873_v38 = vpop.f32.mrf.mxu2 }
 0x6d4   :  { %v1874_v2 = vadd.f32 %v1873_v38, %v1860_v53 }
 0x6db   :  { %v1875_v10 = vpop.f32.mrf.mxu2 }
 0x6dc   :  { %v1876_v16 = vadd.f32 %v1875_v10, %v1862_v18 }
 0x6dd   :  { %v1887_v6 = vpop.f32.mrf.mxu3 }
 0x6de   :  { %v1888_v9 = vadd.f32 %v1887_v6, %v1874_v2 }
 0x6e0   :  { %v1902_v19 = vadd.f32 %v1901_v4, %v1888_v9 }
 0x6e2   :  { %v1906_v13 = vadd.f32 %v1902_v19, %v3083_v35 }
 0x6e4   :  { %1908 = vst [vmem:[#allocation19] sm:$0xff] %v1906_v13 }
 0x6e5   :  { %v1889_v62 = vpop.f32.mrf.mxu3 }
 0x6e6   :  { %v1890_v20 = vadd.f32 %v1889_v62, %v1876_v16 }
 0x6e8   :  { %v1904_v3 = vadd.f32 %v1903_v57, %v1890_v20 }
 0x6ea   :  { %v1907_v21 = vadd.f32 %v1904_v3, %v3087_v40 }
 0x6ec   :  { %1909 = vst [vmem:[#allocation19 + $0x8] sm:$0xff] %v1907_v21 }
 0x6ed   :  { %1922 = dma.vmem_to_hbm [thread:$0]  %s1915_s17, 256, %s1917_s6, [#allocation4], %s2833_s25, %s2833_s25, %s2834_s1  }
 0x6ee   :  { %2824 = dma.done.wait [#allocation4], 256  }
 0x6ef   :  { %2825 = vsyncadd [#allocation4], 4294967040 }
 0x6f0   :  { %1927 = vsyncpa [#allocation3], 1 }
 0x6f1   :  { %1928 = vsyncpa [#allocation6], 1 }
 0x6f2   :  { %1929 = vsyncpa [#allocation9], 1 }
 0x6f3   :  { %1930 = vsyncpa [#allocation12], 1 }
 0x6f4   :  { %1931 = vsyncpa [#allocation15], 1 }
 0x6f5   :  { %1932 = vsyncpa [#allocation18], 1 }
 0x6f6   :  { %1933 = vsyncpa [#allocation4], 1 }

</bundles_post_ra>
